<compile_context>
chip_gen: v7x
topology: tpu7x:2x2x1
jax: 0.10.0
libtpu: 0.0.40
codegen_flags: <defaults>
</compile_context>

<pallas_src>
import functools

import jax
import jax.numpy as jnp
from jax.experimental import pallas as pl
from jax.experimental.pallas import tpu as pltpu

N_GATES = 4


def _dnd_lstm_fused_kernel(hidden_dim, dict_len, seq_len, head_dim,
                           # scalar prefetch (SMEM): [mem_count, mem_ptr]
                           scal_ref,
                           # inputs
                           xs_ref, h0_ref, c0_ref,
                           wx_ref, wh_ref, b_ref,
                           keys_in_ref, vals_in_ref,
                           whd_ref, bhd_ref,
                           # outputs
                           slab_ref, keys_ref, vals_ref):
    H, L, T, A1 = hidden_dim, dict_len, seq_len, head_dim

    # DND episodic memory: copy once into the (aliased) resident output blocks,
    # then update them in place inside the time loop.
    keys_ref[...] = keys_in_ref[...]
    vals_ref[...] = vals_in_ref[...]

    mem_count0 = scal_ref[0]
    mem_ptr0 = scal_ref[1]

    # Tiny resident weights: load once, reuse across all unrolled steps.
    wx = wx_ref[...]           # (Din, 5H)
    wh = wh_ref[...]           # (H, 5H)
    b = b_ref[...]             # (1, 5H)
    whd = whd_ref[...]         # (H, A1)
    bhd = bhd_ref[...]         # (1, A1)

    def step(t, carry):
        h, c = carry
        x = xs_ref[pl.ds(t, 1), :]                                 # (1, Din)

        # -- i2h(x) + h2h(h): two MXU pushes, no per-step concat relayout.
        preact = (jnp.dot(x, wx, preferred_element_type=jnp.float32)
                  + jnp.dot(h, wh, preferred_element_type=jnp.float32)
                  + b)                                             # (1, 5H)

        gates = jax.nn.sigmoid(preact[:, :N_GATES * H])
        f_t = gates[:, 0 * H:1 * H]
        i_t = gates[:, 1 * H:2 * H]
        o_t = gates[:, 2 * H:3 * H]
        r_t = gates[:, 3 * H:4 * H]
        c_tilde = jnp.tanh(preact[:, N_GATES * H:])
        c_t = f_t * c + i_t * c_tilde

        # -- dnd.get_memory(x_t): 1NN on the l2 kernel over valid entries
        #    (before this step's save, matching the module's call order).
        n_mem = jnp.minimum(mem_count0 + t, L)
        keys = keys_ref[...][:, 0, :]                              # (L, Din)
        diff = keys - x
        sim = -jnp.sum(diff * diff, axis=-1, keepdims=True)        # (L, 1)
        idx = jax.lax.broadcasted_iota(jnp.int32, (L, 1), 0)
        valid = idx < n_mem
        sim = jnp.where(valid, sim, jnp.float32(-1e30))
        best_sim = jnp.max(sim)
        is_best = jnp.logical_and(sim == best_sim, valid)
        best_idx = jnp.min(jnp.where(is_best, idx, jnp.int32(L - 1)))  # first max
        m_raw = vals_ref[best_idx]                                 # (1, H) dynamic row read
        # empty memory -> zero vector (tanh(0) = 0, matches DND's empty return)
        m_t = jnp.where(n_mem > 0, jnp.tanh(m_raw), jnp.zeros_like(m_raw))

        c_t = c_t + r_t * m_t
        h_t = o_t * jnp.tanh(c_t)

        # -- dnd.save_memory(x_t, c_t): circular-buffer FIFO slot write.
        slot = (mem_ptr0 + t) % L
        keys_ref[slot] = x
        vals_ref[slot] = c_t

        # -- fused A2C head [actor logits | critic value], padded to H lanes.
        head = jnp.dot(h_t, whd, preferred_element_type=jnp.float32) + bhd
        if A1 < H:
            head_pad = jnp.concatenate(
                [head, jnp.zeros((1, H - A1), jnp.float32)], axis=-1)
        else:
            head_pad = head

        # -- single lane-dense (1, 8*H) store per step.
        row = jnp.concatenate(
            [h_t, c_t, f_t, i_t, o_t, r_t, m_t, head_pad], axis=-1)
        slab_ref[t] = row

        return h_t, c_t

    jax.lax.fori_loop(0, T, step, (h0_ref[...], c0_ref[...]), unroll=True)


def dnd_lstm_scan_pallas(xs, h0, c0, params, mem_keys, mem_vals, mem_count, mem_ptr):
    """Run T chained DNDLSTM.forward steps in one pallas_call (time loop in-kernel)."""
    T, Din = xs.shape
    H = h0.shape[-1]
    L = mem_keys.shape[0]
    G = params["w_x"].shape[-1]              # (N_GATES + 1) * H
    A1 = params["w_head"].shape[-1]          # output_dim + 1
    assert A1 <= H, "A2C head row is folded into the H-wide slab"

    mem_scalars = jnp.stack([mem_count, mem_ptr]).astype(jnp.int32)   # (2,) -> SMEM
    keys3 = mem_keys.reshape(L, 1, Din)      # leading-dim slot indexing in-kernel
    vals3 = mem_vals.reshape(L, 1, H)

    grid_spec = pltpu.PrefetchScalarGridSpec(
        num_scalar_prefetch=1,
        grid=(1,),
        in_specs=[
            pl.BlockSpec((T, Din), lambda i, s: (0, 0)),          # xs (resident)
            pl.BlockSpec((1, H), lambda i, s: (0, 0)),            # h0
            pl.BlockSpec((1, H), lambda i, s: (0, 0)),            # c0
            pl.BlockSpec((Din, G), lambda i, s: (0, 0)),          # i2h weight
            pl.BlockSpec((H, G), lambda i, s: (0, 0)),            # h2h weight
            pl.BlockSpec((1, G), lambda i, s: (0, 0)),            # fused bias
            pl.BlockSpec((L, 1, Din), lambda i, s: (0, 0, 0)),    # DND keys (aliased)
            pl.BlockSpec((L, 1, H), lambda i, s: (0, 0, 0)),      # DND vals (aliased)
            pl.BlockSpec((H, A1), lambda i, s: (0, 0)),           # fused actor|critic W
            pl.BlockSpec((1, A1), lambda i, s: (0, 0)),           # fused head bias
        ],
        out_specs=(
            pl.BlockSpec((T, 1, 8 * H), lambda i, s: (0, 0, 0)),  # per-step slab
            pl.BlockSpec((L, 1, Din), lambda i, s: (0, 0, 0)),    # new keys
            pl.BlockSpec((L, 1, H), lambda i, s: (0, 0, 0)),      # new vals
        ),
    )
    out_shape = (
        jax.ShapeDtypeStruct((T, 1, 8 * H), jnp.float32),
        jax.ShapeDtypeStruct((L, 1, Din), jnp.float32),
        jax.ShapeDtypeStruct((L, 1, H), jnp.float32),
    )

    kernel = functools.partial(_dnd_lstm_fused_kernel, H, L, T, A1)
    slab, new_keys, new_vals = pl.pallas_call(
        kernel,
        out_shape=out_shape,
        grid_spec=grid_spec,
        # Input indices include the scalar-prefetch operand:
        #   0=mem_scalars, 1=xs, 2=h0, 3=c0, 4=w_x, 5=w_h, 6=b, 7=keys, 8=vals, ...
        input_output_aliases={7: 1, 8: 2},
        compiler_params=pltpu.CompilerParams(
            dimension_semantics=("arbitrary",)),
    )(mem_scalars, xs, h0, c0,
      params["w_x"], params["w_h"], params["b_xh"],
      keys3, vals3, params["w_head"], params["b_head"])

    return (slab.reshape(T, 8, H),
            new_keys.reshape(L, Din),
            new_vals.reshape(L, H))


def dndlstm_forward_scan(params, xs, h, c, mem_keys, mem_vals, mem_count, mem_ptr, rng_key):
    """T chained DNDLSTM.forward calls (stateful DND handled functionally), one launch."""
    T = xs.shape[0]
    L = mem_keys.shape[0]
    xs_flat = xs.reshape(T, -1)                # per-step x_t.view(x_t.size(1), -1), batch=1
    h_flat = h.reshape(h.shape[1], -1)
    c_flat = c.reshape(c.shape[1], -1)

    slab, new_keys, new_vals = dnd_lstm_scan_pallas(
        xs_flat, h_flat, c_flat, params, mem_keys, mem_vals, mem_count, mem_ptr)

    A1 = params["w_head"].shape[-1]
    A = A1 - 1
    head = slab[:, 7, :A1]                     # (T, A1) folded into slab row 7
    logits = head[:, :A]                       # (T, output_dim)
    v_t = head[:, A:]                          # (T, 1)

    # pick_action: Categorical(softmax(logits)) sampling + log-prob from raw logits.
    a_t = jax.random.categorical(rng_key, logits, axis=-1)                 # (T,)
    log_pi = jax.nn.log_softmax(logits, axis=-1)
    prob_a_t = jnp.take_along_axis(log_pi, a_t[:, None], axis=-1)[:, 0]    # (T,)

    h_seq = slab[:, 0, :]                      # (T, H)
    c_seq = slab[:, 1, :]
    cache = tuple(slab[:, k, :] for k in range(2, 7))   # f_t, i_t, o_t, r_t, m_t

    h_T = h_seq[-1].reshape(1, 1, -1)
    c_T = c_seq[-1].reshape(1, 1, -1)

    new_count = jnp.minimum(mem_count + T, L).astype(jnp.int32)
    new_ptr = ((mem_ptr + T) % L).astype(jnp.int32)

    output = (a_t, prob_a_t, v_t, h_T, c_T)
    new_mem = (new_keys, new_vals, new_count, new_ptr)
    return output, cache, new_mem


def dndlstm_forward(params, x_t, h, c, mem_keys, mem_vals, mem_count, mem_ptr, rng_key):
    """Single-step forward, exactly matching DNDLSTM.forward (T == 1)."""
    return dndlstm_forward_scan(params, x_t[None], h, c,
                                mem_keys, mem_vals, mem_count, mem_ptr, rng_key)


def init_params(key, input_dim, hidden_dim, output_dim):
    """Orthogonal weights (as reset_parameter), zero biases; head fusion built once."""
    ks = jax.random.split(key, 4)
    ortho = jax.nn.initializers.orthogonal()
    G = (N_GATES + 1) * hidden_dim
    # PyTorch nn.Linear weight is (out, in); init there, transpose to (in, out).
    w_x = ortho(ks[0], (G, input_dim), jnp.float32).T                 # i2h: (Din, 5H)
    w_h = ortho(ks[1], (G, hidden_dim), jnp.float32).T                # h2h: (H, 5H)
    w_actor = ortho(ks[2], (output_dim, hidden_dim), jnp.float32).T   # (H, A)
    w_critic = ortho(ks[3], (1, hidden_dim), jnp.float32).T           # (H, 1)
    b_xh = jnp.zeros((1, G), jnp.float32)                             # b_i2h + b_h2h (both 0)
    w_head = jnp.concatenate([w_actor, w_critic], axis=1)             # (H, output_dim+1)
    b_head = jnp.zeros((1, output_dim + 1), jnp.float32)              # [b_actor | b_critic]
    return dict(w_x=w_x, w_h=w_h, b_xh=b_xh, w_head=w_head, b_head=b_head)


if __name__ == "__main__":
    input_dim, hidden_dim, output_dim, dict_len, T = 16, 32, 4, 16, 8

    key = jax.random.PRNGKey(0)
    k_param, k_h, k_c, k_x, k_mk, k_mv, k_act = jax.random.split(key, 7)

    params = init_params(k_param, input_dim, hidden_dim, output_dim)

    # get_init_states-style state (batch of 1) and a sequence of module-style x_t inputs.
    h0 = jax.random.normal(k_h, (1, 1, hidden_dim), jnp.float32) * 0.1
    c0 = jax.random.normal(k_c, (1, 1, hidden_dim), jnp.float32) * 0.1
    xs = jax.random.normal(k_x, (T, 1, 1, input_dim), jnp.float32)

    # Pre-populate a few DND memories so the retrieval path is exercised.
    n_init = 4
    mem_keys = jnp.zeros((dict_len, input_dim), jnp.float32)
    mem_vals = jnp.zeros((dict_len, hidden_dim), jnp.float32)
    mem_keys = mem_keys.at[:n_init].set(jax.random.normal(k_mk, (n_init, input_dim)))
    mem_vals = mem_vals.at[:n_init].set(
        jax.random.normal(k_mv, (n_init, hidden_dim)) * 0.1)
    mem_count = jnp.int32(n_init)
    mem_ptr = jnp.int32(n_init)

    fwd = jax.jit(dndlstm_forward_scan)
    output, cache, new_mem = fwd(params, xs, h0, c0,
                                 mem_keys, mem_vals, mem_count, mem_ptr, k_act)
    jax.block_until_ready((output, cache, new_mem))

    a_t, prob_a_t, v_t, h_T, c_T = output
    new_keys, new_vals, new_count, new_ptr = new_mem
    assert a_t.shape == (T,)
    assert prob_a_t.shape == (T,)
    assert v_t.shape == (T, 1)
    assert h_T.shape == (1, 1, hidden_dim)
    assert c_T.shape == (1, 1, hidden_dim)
    assert all(g.shape == (T, hidden_dim) for g in cache)
    assert bool(jnp.all(jnp.isfinite(v_t)))
    assert bool(jnp.all(jnp.isfinite(prob_a_t)))
    # In-kernel save_memory wrote x_t into slots [n_init, n_init+T) of the buffer.
    assert bool(jnp.allclose(new_keys[n_init:n_init + T], xs.reshape(T, input_dim)))
    assert int(new_count) == min(n_init + T, dict_len)
    assert int(new_ptr) == (n_init + T) % dict_len

    # Single-step path (exact DNDLSTM.forward semantics), chained off the scan state.
    out1, cache1, mem1 = jax.jit(dndlstm_forward)(
        params, xs[0], h_T, c_T, new_keys, new_vals, new_count, new_ptr,
        jax.random.PRNGKey(1))
    jax.block_until_ready((out1, cache1, mem1))
    a1, p1, v1, h1, c1 = out1
    assert a1.shape == (1,) and p1.shape == (1,) and v1.shape == (1, 1)
    assert h1.shape == (1, 1, hidden_dim) and c1.shape == (1, 1, hidden_dim)
    assert all(g.shape == (1, hidden_dim) for g in cache1)

    print("KERNEL_OK")
</pallas_src>

<mosaic_0001>
module attributes {stable_mosaic.version = 11 : i64} {
  func.func @_dnd_lstm_fused_kernel(%arg0: i32, %arg1: memref<2xi32, #tpu.memory_space<smem>>, %arg2: memref<8x16xf32, #tpu.memory_space<vmem>>, %arg3: memref<1x32xf32, #tpu.memory_space<vmem>>, %arg4: memref<1x32xf32, #tpu.memory_space<vmem>>, %arg5: memref<16x160xf32, #tpu.memory_space<vmem>>, %arg6: memref<32x160xf32, #tpu.memory_space<vmem>>, %arg7: memref<1x160xf32, #tpu.memory_space<vmem>>, %arg8: memref<16x1x16xf32, #tpu.memory_space<vmem>>, %arg9: memref<16x1x32xf32, #tpu.memory_space<vmem>>, %arg10: memref<32x5xf32, #tpu.memory_space<vmem>>, %arg11: memref<1x5xf32, #tpu.memory_space<vmem>>, %arg12: memref<8x1x256xf32, #tpu.memory_space<vmem>>, %arg13: memref<16x1x16xf32, #tpu.memory_space<vmem>>, %arg14: memref<16x1x32xf32, #tpu.memory_space<vmem>>) attributes {dimension_semantics = [#tpu.dimension_semantics<arbitrary>], iteration_bounds = array<i64: 1>, scalar_prefetch = 1 : i64, scratch_operands = 0 : i64, tpu.core_type = #tpu.core_type<tc>, window_params = [{pipeline_mode = #tpu.pipeline_mode<synchronous>, transform_indices = @transform_0, window_bounds = array<i64: 8, 16>}, {pipeline_mode = #tpu.pipeline_mode<synchronous>, transform_indices = @transform_1, window_bounds = array<i64: 1, 32>}, {pipeline_mode = #tpu.pipeline_mode<synchronous>, transform_indices = @transform_2, window_bounds = array<i64: 1, 32>}, {pipeline_mode = #tpu.pipeline_mode<synchronous>, transform_indices = @transform_3, window_bounds = array<i64: 16, 160>}, {pipeline_mode = #tpu.pipeline_mode<synchronous>, transform_indices = @transform_4, window_bounds = array<i64: 32, 160>}, {pipeline_mode = #tpu.pipeline_mode<synchronous>, transform_indices = @transform_5, window_bounds = array<i64: 1, 160>}, {pipeline_mode = #tpu.pipeline_mode<synchronous>, transform_indices = @transform_6, window_bounds = array<i64: 16, 1, 16>}, {pipeline_mode = #tpu.pipeline_mode<synchronous>, transform_indices = @transform_7, window_bounds = array<i64: 16, 1, 32>}, {pipeline_mode = #tpu.pipeline_mode<synchronous>, transform_indices = @transform_8, window_bounds = array<i64: 32, 5>}, {pipeline_mode = #tpu.pipeline_mode<synchronous>, transform_indices = @transform_9, window_bounds = array<i64: 1, 5>}, {pipeline_mode = #tpu.pipeline_mode<synchronous>, transform_indices = @transform_10, window_bounds = array<i64: 8, 1, 256>}, {pipeline_mode = #tpu.pipeline_mode<synchronous>, transform_indices = @transform_11, window_bounds = array<i64: 16, 1, 16>}, {pipeline_mode = #tpu.pipeline_mode<synchronous>, transform_indices = @transform_12, window_bounds = array<i64: 16, 1, 32>}]} {
    %c0 = arith.constant 0 : index
    %c0_0 = arith.constant 0 : index
    %c0_1 = arith.constant 0 : index
    %0 = vector.load %arg8[%c0, %c0_0, %c0_1] : memref<16x1x16xf32, #tpu.memory_space<vmem>>, vector<16x1x16xf32>
    %c0_2 = arith.constant 0 : index
    %c0_3 = arith.constant 0 : index
    %c0_4 = arith.constant 0 : index
    %1 = vector.load %arg13[%c0_2, %c0_3, %c0_4] : memref<16x1x16xf32, #tpu.memory_space<vmem>>, vector<16x1x16xf32>
    tpu.vector_store %arg13[%c0_2, %c0_3, %c0_4], %0 {strides = array<i32>} : memref<16x1x16xf32, #tpu.memory_space<vmem>>, vector<16x1x16xf32>,
    %c0_5 = arith.constant 0 : index
    %c0_6 = arith.constant 0 : index
    %c0_7 = arith.constant 0 : index
    %2 = vector.load %arg9[%c0_5, %c0_6, %c0_7] : memref<16x1x32xf32, #tpu.memory_space<vmem>>, vector<16x1x32xf32>
    %c0_8 = arith.constant 0 : index
    %c0_9 = arith.constant 0 : index
    %c0_10 = arith.constant 0 : index
    %3 = vector.load %arg14[%c0_8, %c0_9, %c0_10] : memref<16x1x32xf32, #tpu.memory_space<vmem>>, vector<16x1x32xf32>
    tpu.vector_store %arg14[%c0_8, %c0_9, %c0_10], %2 {strides = array<i32>} : memref<16x1x32xf32, #tpu.memory_space<vmem>>, vector<16x1x32xf32>,
    %c0_11 = arith.constant 0 : index
    %4 = memref.load %arg1[%c0_11] : memref<2xi32, #tpu.memory_space<smem>>
    %c1 = arith.constant 1 : index
    %5 = memref.load %arg1[%c1] : memref<2xi32, #tpu.memory_space<smem>>
    %c0_12 = arith.constant 0 : index
    %c0_13 = arith.constant 0 : index
    %6 = vector.load %arg5[%c0_12, %c0_13] : memref<16x160xf32, #tpu.memory_space<vmem>>, vector<16x160xf32>
    %c0_14 = arith.constant 0 : index
    %c0_15 = arith.constant 0 : index
    %7 = vector.load %arg6[%c0_14, %c0_15] : memref<32x160xf32, #tpu.memory_space<vmem>>, vector<32x160xf32>
    %c0_16 = arith.constant 0 : index
    %c0_17 = arith.constant 0 : index
    %8 = vector.load %arg7[%c0_16, %c0_17] : memref<1x160xf32, #tpu.memory_space<vmem>>, vector<1x160xf32>
    %c0_18 = arith.constant 0 : index
    %c0_19 = arith.constant 0 : index
    %9 = vector.load %arg10[%c0_18, %c0_19] : memref<32x5xf32, #tpu.memory_space<vmem>>, vector<32x5xf32>
    %c0_20 = arith.constant 0 : index
    %c0_21 = arith.constant 0 : index
    %10 = vector.load %arg11[%c0_20, %c0_21] : memref<1x5xf32, #tpu.memory_space<vmem>>, vector<1x5xf32>
    %c0_22 = arith.constant 0 : index
    %c0_23 = arith.constant 0 : index
    %11 = vector.load %arg3[%c0_22, %c0_23] : memref<1x32xf32, #tpu.memory_space<vmem>>, vector<1x32xf32>
    %c0_24 = arith.constant 0 : index
    %c0_25 = arith.constant 0 : index
    %12 = vector.load %arg4[%c0_24, %c0_25] : memref<1x32xf32, #tpu.memory_space<vmem>>, vector<1x32xf32>
    %c0_i32 = arith.constant 0 : i32
    %13 = arith.index_cast %c0_i32 : i32 to index
    %c0_26 = arith.constant 0 : index
    %14 = vector.load %arg2[%13, %c0_26] : memref<8x16xf32, #tpu.memory_space<vmem>>, vector<1x16xf32>
    %cst = arith.constant dense<0.000000e+00> : vector<1x160xf32>
    %15 = tpu.matmul %14, %6, %cst {dimension_numbers = #tpu.dot_dimension_numbers<[1], [0], [0], [1], [0, 0, 1, 1], [], []>} : vector<1x16xf32>, vector<16x160xf32>, vector<1x160xf32> -> vector<1x160xf32>
    %cst_27 = arith.constant dense<0.000000e+00> : vector<1x160xf32>
    %16 = tpu.matmul %11, %7, %cst_27 {dimension_numbers = #tpu.dot_dimension_numbers<[1], [0], [0], [1], [0, 0, 1, 1], [], []>} : vector<1x32xf32>, vector<32x160xf32>, vector<1x160xf32> -> vector<1x160xf32>
    %17 = arith.addf %15, %16 : vector<1x160xf32>
    %18 = arith.addf %17, %8 : vector<1x160xf32>
    %19 = vector.extract_strided_slice %18 {offsets = [0, 0], sizes = [1, 128], strides = [1, 1]} : vector<1x160xf32> to vector<1x128xf32>
    %20 = arith.negf %19 : vector<1x128xf32>
    %21 = math.exp %20 : vector<1x128xf32>
    %cst_28 = arith.constant 1.000000e+00 : f32
    %22 = vector.broadcast %cst_28 : f32 to vector<1x128xf32>
    %23 = arith.addf %22, %21 : vector<1x128xf32>
    %24 = arith.divf %22, %23 : vector<1x128xf32>
    %25 = vector.extract_strided_slice %24 {offsets = [0, 0], sizes = [1, 32], strides = [1, 1]} : vector<1x128xf32> to vector<1x32xf32>
    %26 = vector.extract_strided_slice %24 {offsets = [0, 32], sizes = [1, 32], strides = [1, 1]} : vector<1x128xf32> to vector<1x32xf32>
    %27 = vector.extract_strided_slice %24 {offsets = [0, 64], sizes = [1, 32], strides = [1, 1]} : vector<1x128xf32> to vector<1x32xf32>
    %28 = vector.extract_strided_slice %24 {offsets = [0, 96], sizes = [1, 32], strides = [1, 1]} : vector<1x128xf32> to vector<1x32xf32>
    %29 = vector.extract_strided_slice %18 {offsets = [0, 128], sizes = [1, 32], strides = [1, 1]} : vector<1x160xf32> to vector<1x32xf32>
    %30 = math.tanh %29 : vector<1x32xf32>
    %31 = arith.mulf %25, %12 : vector<1x32xf32>
    %32 = arith.mulf %26, %30 : vector<1x32xf32>
    %33 = arith.addf %31, %32 : vector<1x32xf32>
    %34 = arith.addi %4, %c0_i32 : i32
    %c16_i32 = arith.constant 16 : i32
    %35 = arith.minsi %34, %c16_i32 : i32
    %c0_29 = arith.constant 0 : index
    %c0_30 = arith.constant 0 : index
    %c0_31 = arith.constant 0 : index
    %36 = vector.load %arg13[%c0_29, %c0_30, %c0_31] : memref<16x1x16xf32, #tpu.memory_space<vmem>>, vector<16x1x16xf32>
    %37 = vector.shape_cast %36 : vector<16x1x16xf32> to vector<16x16xf32>
    %38 = vector.broadcast %14 : vector<1x16xf32> to vector<16x16xf32>
    %39 = arith.subf %37, %38 : vector<16x16xf32>
    %40 = arith.mulf %39, %39 : vector<16x16xf32>
    %cst_32 = arith.constant dense<0.000000e+00> : vector<16xf32>
    %41 = vector.multi_reduction <add>, %40, %cst_32 [1] : vector<16x16xf32> to vector<16xf32>
    %42 = vector.shape_cast %41 : vector<16xf32> to vector<16x1xf32>
    %cst_33 = arith.constant 0.000000e+00 : f32
    %43 = vector.broadcast %cst_33 : f32 to vector<16x1xf32>
    %44 = arith.subf %43, %42 : vector<16x1xf32>
    %45 = tpu.iota {dimensions = array<i32: 0>} : vector<16x1xi32>
    %46 = vector.broadcast %35 : i32 to vector<16x1xi32>
    %47 = arith.cmpi slt, %45, %46 : vector<16x1xi32>
    %cst_34 = arith.constant -1.000000e+30 : f32
    %48 = vector.broadcast %cst_34 : f32 to vector<16x1xf32>
    %49 = arith.select %47, %44, %48 : vector<16x1xi1>, vector<16x1xf32>
    %50 = vector.shape_cast %49 : vector<16x1xf32> to vector<1x16x1xf32>
    %cst_35 = arith.constant dense<0xFF800000> : vector<1xf32>
    %51 = vector.multi_reduction <maximumf>, %50, %cst_35 [1, 2] : vector<1x16x1xf32> to vector<1xf32>
    %52 = vector.shape_cast %51 : vector<1xf32> to vector<1x1x1xf32>
    %53 = vector.extract %52[0, 0, 0] : f32 from vector<1x1x1xf32>
    %54 = vector.broadcast %53 : f32 to vector<16x1xf32>
    %55 = arith.cmpf oeq, %49, %54 : vector<16x1xf32>
    %56 = arith.andi %55, %47 : vector<16x1xi1>
    %c15_i32 = arith.constant 15 : i32
    %57 = vector.broadcast %c15_i32 : i32 to vector<16x1xi32>
    %58 = arith.select %56, %45, %57 : vector<16x1xi1>, vector<16x1xi32>
    %59 = vector.shape_cast %58 : vector<16x1xi32> to vector<1x16x1xi32>
    %cst_36 = arith.constant dense<2147483647> : vector<1xi32>
    %60 = vector.multi_reduction <minsi>, %59, %cst_36 [1, 2] : vector<1x16x1xi32> to vector<1xi32>
    %61 = vector.shape_cast %60 : vector<1xi32> to vector<1x1x1xi32>
    %62 = vector.extract %61[0, 0, 0] : i32 from vector<1x1x1xi32>
    %63 = arith.index_cast %62 : i32 to index
    %c0_37 = arith.constant 0 : index
    %c0_38 = arith.constant 0 : index
    %64 = vector.load %arg14[%63, %c0_37, %c0_38] : memref<16x1x32xf32, #tpu.memory_space<vmem>>, vector<1x1x32xf32>
    %65 = vector.shape_cast %64 : vector<1x1x32xf32> to vector<1x32xf32>
    %c0_i32_39 = arith.constant 0 : i32
    %66 = arith.cmpi sgt, %35, %c0_i32_39 : i32
    %67 = math.tanh %65 : vector<1x32xf32>
    %cst_40 = arith.constant 0.000000e+00 : f32
    %68 = vector.broadcast %cst_40 : f32 to vector<1x32xf32>
    %69 = arith.select %66, %67, %68 : vector<1x32xf32>
    %70 = arith.mulf %28, %69 : vector<1x32xf32>
    %71 = arith.addf %33, %70 : vector<1x32xf32>
    %72 = math.tanh %71 : vector<1x32xf32>
    %73 = arith.mulf %27, %72 : vector<1x32xf32>
    %74 = arith.addi %5, %c0_i32 : i32
    %c16_i32_41 = arith.constant 16 : i32
    %c0_i32_42 = arith.constant 0 : i32
    %75 = arith.cmpi eq, %c16_i32_41, %c0_i32_42 : i32
    %c1_i32 = arith.constant 1 : i32
    %76 = arith.select %75, %c1_i32, %c16_i32_41 : i32
    %77 = arith.remsi %74, %76 : i32
    %c0_i32_43 = arith.constant 0 : i32
    %78 = arith.cmpi ne, %77, %c0_i32_43 : i32
    %c0_i32_44 = arith.constant 0 : i32
    %79 = arith.cmpi slt, %77, %c0_i32_44 : i32
    %c0_i32_45 = arith.constant 0 : i32
    %80 = arith.cmpi slt, %76, %c0_i32_45 : i32
    %81 = arith.xori %79, %80 : i1
    %82 = arith.andi %81, %78 : i1
    %83 = arith.addi %77, %76 : i32
    %84 = arith.select %82, %83, %77 : i32
    %85 = arith.index_cast %84 : i32 to index
    %c0_46 = arith.constant 0 : index
    %c0_47 = arith.constant 0 : index
    %86 = vector.load %arg13[%85, %c0_46, %c0_47] : memref<16x1x16xf32, #tpu.memory_space<vmem>>, vector<1x1x16xf32>
    %87 = vector.shape_cast %86 : vector<1x1x16xf32> to vector<1x16xf32>
    %88 = vector.shape_cast %14 : vector<1x16xf32> to vector<1x1x16xf32>
    tpu.vector_store %arg13[%85, %c0_46, %c0_47], %88 {strides = array<i32>} : memref<16x1x16xf32, #tpu.memory_space<vmem>>, vector<1x1x16xf32>,
    %89 = arith.index_cast %84 : i32 to index
    %c0_48 = arith.constant 0 : index
    %c0_49 = arith.constant 0 : index
    %90 = vector.load %arg14[%89, %c0_48, %c0_49] : memref<16x1x32xf32, #tpu.memory_space<vmem>>, vector<1x1x32xf32>
    %91 = vector.shape_cast %90 : vector<1x1x32xf32> to vector<1x32xf32>
    %92 = vector.shape_cast %71 : vector<1x32xf32> to vector<1x1x32xf32>
    tpu.vector_store %arg14[%89, %c0_48, %c0_49], %92 {strides = array<i32>} : memref<16x1x32xf32, #tpu.memory_space<vmem>>, vector<1x1x32xf32>,
    %cst_50 = arith.constant dense<0.000000e+00> : vector<1x5xf32>
    %93 = tpu.matmul %73, %9, %cst_50 {dimension_numbers = #tpu.dot_dimension_numbers<[1], [0], [0], [1], [0, 0, 1, 1], [], []>} : vector<1x32xf32>, vector<32x5xf32>, vector<1x5xf32> -> vector<1x5xf32>
    %94 = arith.addf %93, %10 : vector<1x5xf32>
    %cst_51 = arith.constant 0.000000e+00 : f32
    %95 = vector.broadcast %cst_51 : f32 to vector<1x27xf32>
    %96 = tpu.concatenate %94, %95 in 1 : vector<1x5xf32>, vector<1x27xf32> -> vector<1x32xf32>
    %97 = tpu.concatenate %73, %71, %25, %26, %27, %28, %69, %96 in 1 : vector<1x32xf32>, vector<1x32xf32>, vector<1x32xf32>, vector<1x32xf32>, vector<1x32xf32>, vector<1x32xf32>, vector<1x32xf32>, vector<1x32xf32> -> vector<1x256xf32>
    %98 = arith.index_cast %c0_i32 : i32 to index
    %c0_52 = arith.constant 0 : index
    %c0_53 = arith.constant 0 : index
    %99 = vector.load %arg12[%98, %c0_52, %c0_53] : memref<8x1x256xf32, #tpu.memory_space<vmem>>, vector<1x1x256xf32>
    %100 = vector.shape_cast %99 : vector<1x1x256xf32> to vector<1x256xf32>
    %101 = vector.shape_cast %97 : vector<1x256xf32> to vector<1x1x256xf32>
    tpu.vector_store %arg12[%98, %c0_52, %c0_53], %101 {strides = array<i32>} : memref<8x1x256xf32, #tpu.memory_space<vmem>>, vector<1x1x256xf32>,
    %c1_i32_54 = arith.constant 1 : i32
    %102 = arith.index_cast %c1_i32_54 : i32 to index
    %c0_55 = arith.constant 0 : index
    %103 = vector.load %arg2[%102, %c0_55] : memref<8x16xf32, #tpu.memory_space<vmem>>, vector<1x16xf32>
    %cst_56 = arith.constant dense<0.000000e+00> : vector<1x160xf32>
    %104 = tpu.matmul %103, %6, %cst_56 {dimension_numbers = #tpu.dot_dimension_numbers<[1], [0], [0], [1], [0, 0, 1, 1], [], []>} : vector<1x16xf32>, vector<16x160xf32>, vector<1x160xf32> -> vector<1x160xf32>
    %cst_57 = arith.constant dense<0.000000e+00> : vector<1x160xf32>
    %105 = tpu.matmul %73, %7, %cst_57 {dimension_numbers = #tpu.dot_dimension_numbers<[1], [0], [0], [1], [0, 0, 1, 1], [], []>} : vector<1x32xf32>, vector<32x160xf32>, vector<1x160xf32> -> vector<1x160xf32>
    %106 = arith.addf %104, %105 : vector<1x160xf32>
    %107 = arith.addf %106, %8 : vector<1x160xf32>
    %108 = vector.extract_strided_slice %107 {offsets = [0, 0], sizes = [1, 128], strides = [1, 1]} : vector<1x160xf32> to vector<1x128xf32>
    %109 = arith.negf %108 : vector<1x128xf32>
    %110 = math.exp %109 : vector<1x128xf32>
    %cst_58 = arith.constant 1.000000e+00 : f32
    %111 = vector.broadcast %cst_58 : f32 to vector<1x128xf32>
    %112 = arith.addf %111, %110 : vector<1x128xf32>
    %113 = arith.divf %111, %112 : vector<1x128xf32>
    %114 = vector.extract_strided_slice %113 {offsets = [0, 0], sizes = [1, 32], strides = [1, 1]} : vector<1x128xf32> to vector<1x32xf32>
    %115 = vector.extract_strided_slice %113 {offsets = [0, 32], sizes = [1, 32], strides = [1, 1]} : vector<1x128xf32> to vector<1x32xf32>
    %116 = vector.extract_strided_slice %113 {offsets = [0, 64], sizes = [1, 32], strides = [1, 1]} : vector<1x128xf32> to vector<1x32xf32>
    %117 = vector.extract_strided_slice %113 {offsets = [0, 96], sizes = [1, 32], strides = [1, 1]} : vector<1x128xf32> to vector<1x32xf32>
    %118 = vector.extract_strided_slice %107 {offsets = [0, 128], sizes = [1, 32], strides = [1, 1]} : vector<1x160xf32> to vector<1x32xf32>
    %119 = math.tanh %118 : vector<1x32xf32>
    %120 = arith.mulf %114, %71 : vector<1x32xf32>
    %121 = arith.mulf %115, %119 : vector<1x32xf32>
    %122 = arith.addf %120, %121 : vector<1x32xf32>
    %123 = arith.addi %4, %c1_i32_54 : i32
    %c16_i32_59 = arith.constant 16 : i32
    %124 = arith.minsi %123, %c16_i32_59 : i32
    %c0_60 = arith.constant 0 : index
    %c0_61 = arith.constant 0 : index
    %c0_62 = arith.constant 0 : index
    %125 = vector.load %arg13[%c0_60, %c0_61, %c0_62] : memref<16x1x16xf32, #tpu.memory_space<vmem>>, vector<16x1x16xf32>
    %126 = vector.shape_cast %125 : vector<16x1x16xf32> to vector<16x16xf32>
    %127 = vector.broadcast %103 : vector<1x16xf32> to vector<16x16xf32>
    %128 = arith.subf %126, %127 : vector<16x16xf32>
    %129 = arith.mulf %128, %128 : vector<16x16xf32>
    %cst_63 = arith.constant dense<0.000000e+00> : vector<16xf32>
    %130 = vector.multi_reduction <add>, %129, %cst_63 [1] : vector<16x16xf32> to vector<16xf32>
    %131 = vector.shape_cast %130 : vector<16xf32> to vector<16x1xf32>
    %cst_64 = arith.constant 0.000000e+00 : f32
    %132 = vector.broadcast %cst_64 : f32 to vector<16x1xf32>
    %133 = arith.subf %132, %131 : vector<16x1xf32>
    %134 = tpu.iota {dimensions = array<i32: 0>} : vector<16x1xi32>
    %135 = vector.broadcast %124 : i32 to vector<16x1xi32>
    %136 = arith.cmpi slt, %134, %135 : vector<16x1xi32>
    %cst_65 = arith.constant -1.000000e+30 : f32
    %137 = vector.broadcast %cst_65 : f32 to vector<16x1xf32>
    %138 = arith.select %136, %133, %137 : vector<16x1xi1>, vector<16x1xf32>
    %139 = vector.shape_cast %138 : vector<16x1xf32> to vector<1x16x1xf32>
    %cst_66 = arith.constant dense<0xFF800000> : vector<1xf32>
    %140 = vector.multi_reduction <maximumf>, %139, %cst_66 [1, 2] : vector<1x16x1xf32> to vector<1xf32>
    %141 = vector.shape_cast %140 : vector<1xf32> to vector<1x1x1xf32>
    %142 = vector.extract %141[0, 0, 0] : f32 from vector<1x1x1xf32>
    %143 = vector.broadcast %142 : f32 to vector<16x1xf32>
    %144 = arith.cmpf oeq, %138, %143 : vector<16x1xf32>
    %145 = arith.andi %144, %136 : vector<16x1xi1>
    %c15_i32_67 = arith.constant 15 : i32
    %146 = vector.broadcast %c15_i32_67 : i32 to vector<16x1xi32>
    %147 = arith.select %145, %134, %146 : vector<16x1xi1>, vector<16x1xi32>
    %148 = vector.shape_cast %147 : vector<16x1xi32> to vector<1x16x1xi32>
    %cst_68 = arith.constant dense<2147483647> : vector<1xi32>
    %149 = vector.multi_reduction <minsi>, %148, %cst_68 [1, 2] : vector<1x16x1xi32> to vector<1xi32>
    %150 = vector.shape_cast %149 : vector<1xi32> to vector<1x1x1xi32>
    %151 = vector.extract %150[0, 0, 0] : i32 from vector<1x1x1xi32>
    %152 = arith.index_cast %151 : i32 to index
    %c0_69 = arith.constant 0 : index
    %c0_70 = arith.constant 0 : index
    %153 = vector.load %arg14[%152, %c0_69, %c0_70] : memref<16x1x32xf32, #tpu.memory_space<vmem>>, vector<1x1x32xf32>
    %154 = vector.shape_cast %153 : vector<1x1x32xf32> to vector<1x32xf32>
    %c0_i32_71 = arith.constant 0 : i32
    %155 = arith.cmpi sgt, %124, %c0_i32_71 : i32
    %156 = math.tanh %154 : vector<1x32xf32>
    %cst_72 = arith.constant 0.000000e+00 : f32
    %157 = vector.broadcast %cst_72 : f32 to vector<1x32xf32>
    %158 = arith.select %155, %156, %157 : vector<1x32xf32>
    %159 = arith.mulf %117, %158 : vector<1x32xf32>
    %160 = arith.addf %122, %159 : vector<1x32xf32>
    %161 = math.tanh %160 : vector<1x32xf32>
    %162 = arith.mulf %116, %161 : vector<1x32xf32>
    %163 = arith.addi %5, %c1_i32_54 : i32
    %c16_i32_73 = arith.constant 16 : i32
    %c0_i32_74 = arith.constant 0 : i32
    %164 = arith.cmpi eq, %c16_i32_73, %c0_i32_74 : i32
    %c1_i32_75 = arith.constant 1 : i32
    %165 = arith.select %164, %c1_i32_75, %c16_i32_73 : i32
    %166 = arith.remsi %163, %165 : i32
    %c0_i32_76 = arith.constant 0 : i32
    %167 = arith.cmpi ne, %166, %c0_i32_76 : i32
    %c0_i32_77 = arith.constant 0 : i32
    %168 = arith.cmpi slt, %166, %c0_i32_77 : i32
    %c0_i32_78 = arith.constant 0 : i32
    %169 = arith.cmpi slt, %165, %c0_i32_78 : i32
    %170 = arith.xori %168, %169 : i1
    %171 = arith.andi %170, %167 : i1
    %172 = arith.addi %166, %165 : i32
    %173 = arith.select %171, %172, %166 : i32
    %174 = arith.index_cast %173 : i32 to index
    %c0_79 = arith.constant 0 : index
    %c0_80 = arith.constant 0 : index
    %175 = vector.load %arg13[%174, %c0_79, %c0_80] : memref<16x1x16xf32, #tpu.memory_space<vmem>>, vector<1x1x16xf32>
    %176 = vector.shape_cast %175 : vector<1x1x16xf32> to vector<1x16xf32>
    %177 = vector.shape_cast %103 : vector<1x16xf32> to vector<1x1x16xf32>
    tpu.vector_store %arg13[%174, %c0_79, %c0_80], %177 {strides = array<i32>} : memref<16x1x16xf32, #tpu.memory_space<vmem>>, vector<1x1x16xf32>,
    %178 = arith.index_cast %173 : i32 to index
    %c0_81 = arith.constant 0 : index
    %c0_82 = arith.constant 0 : index
    %179 = vector.load %arg14[%178, %c0_81, %c0_82] : memref<16x1x32xf32, #tpu.memory_space<vmem>>, vector<1x1x32xf32>
    %180 = vector.shape_cast %179 : vector<1x1x32xf32> to vector<1x32xf32>
    %181 = vector.shape_cast %160 : vector<1x32xf32> to vector<1x1x32xf32>
    tpu.vector_store %arg14[%178, %c0_81, %c0_82], %181 {strides = array<i32>} : memref<16x1x32xf32, #tpu.memory_space<vmem>>, vector<1x1x32xf32>,
    %cst_83 = arith.constant dense<0.000000e+00> : vector<1x5xf32>
    %182 = tpu.matmul %162, %9, %cst_83 {dimension_numbers = #tpu.dot_dimension_numbers<[1], [0], [0], [1], [0, 0, 1, 1], [], []>} : vector<1x32xf32>, vector<32x5xf32>, vector<1x5xf32> -> vector<1x5xf32>
    %183 = arith.addf %182, %10 : vector<1x5xf32>
    %cst_84 = arith.constant 0.000000e+00 : f32
    %184 = vector.broadcast %cst_84 : f32 to vector<1x27xf32>
    %185 = tpu.concatenate %183, %184 in 1 : vector<1x5xf32>, vector<1x27xf32> -> vector<1x32xf32>
    %186 = tpu.concatenate %162, %160, %114, %115, %116, %117, %158, %185 in 1 : vector<1x32xf32>, vector<1x32xf32>, vector<1x32xf32>, vector<1x32xf32>, vector<1x32xf32>, vector<1x32xf32>, vector<1x32xf32>, vector<1x32xf32> -> vector<1x256xf32>
    %187 = arith.index_cast %c1_i32_54 : i32 to index
    %c0_85 = arith.constant 0 : index
    %c0_86 = arith.constant 0 : index
    %188 = vector.load %arg12[%187, %c0_85, %c0_86] : memref<8x1x256xf32, #tpu.memory_space<vmem>>, vector<1x1x256xf32>
    %189 = vector.shape_cast %188 : vector<1x1x256xf32> to vector<1x256xf32>
    %190 = vector.shape_cast %186 : vector<1x256xf32> to vector<1x1x256xf32>
    tpu.vector_store %arg12[%187, %c0_85, %c0_86], %190 {strides = array<i32>} : memref<8x1x256xf32, #tpu.memory_space<vmem>>, vector<1x1x256xf32>,
    %c2_i32 = arith.constant 2 : i32
    %191 = arith.index_cast %c2_i32 : i32 to index
    %c0_87 = arith.constant 0 : index
    %192 = vector.load %arg2[%191, %c0_87] : memref<8x16xf32, #tpu.memory_space<vmem>>, vector<1x16xf32>
    %cst_88 = arith.constant dense<0.000000e+00> : vector<1x160xf32>
    %193 = tpu.matmul %192, %6, %cst_88 {dimension_numbers = #tpu.dot_dimension_numbers<[1], [0], [0], [1], [0, 0, 1, 1], [], []>} : vector<1x16xf32>, vector<16x160xf32>, vector<1x160xf32> -> vector<1x160xf32>
    %cst_89 = arith.constant dense<0.000000e+00> : vector<1x160xf32>
    %194 = tpu.matmul %162, %7, %cst_89 {dimension_numbers = #tpu.dot_dimension_numbers<[1], [0], [0], [1], [0, 0, 1, 1], [], []>} : vector<1x32xf32>, vector<32x160xf32>, vector<1x160xf32> -> vector<1x160xf32>
    %195 = arith.addf %193, %194 : vector<1x160xf32>
    %196 = arith.addf %195, %8 : vector<1x160xf32>
    %197 = vector.extract_strided_slice %196 {offsets = [0, 0], sizes = [1, 128], strides = [1, 1]} : vector<1x160xf32> to vector<1x128xf32>
    %198 = arith.negf %197 : vector<1x128xf32>
    %199 = math.exp %198 : vector<1x128xf32>
    %cst_90 = arith.constant 1.000000e+00 : f32
    %200 = vector.broadcast %cst_90 : f32 to vector<1x128xf32>
    %201 = arith.addf %200, %199 : vector<1x128xf32>
    %202 = arith.divf %200, %201 : vector<1x128xf32>
    %203 = vector.extract_strided_slice %202 {offsets = [0, 0], sizes = [1, 32], strides = [1, 1]} : vector<1x128xf32> to vector<1x32xf32>
    %204 = vector.extract_strided_slice %202 {offsets = [0, 32], sizes = [1, 32], strides = [1, 1]} : vector<1x128xf32> to vector<1x32xf32>
    %205 = vector.extract_strided_slice %202 {offsets = [0, 64], sizes = [1, 32], strides = [1, 1]} : vector<1x128xf32> to vector<1x32xf32>
    %206 = vector.extract_strided_slice %202 {offsets = [0, 96], sizes = [1, 32], strides = [1, 1]} : vector<1x128xf32> to vector<1x32xf32>
    %207 = vector.extract_strided_slice %196 {offsets = [0, 128], sizes = [1, 32], strides = [1, 1]} : vector<1x160xf32> to vector<1x32xf32>
    %208 = math.tanh %207 : vector<1x32xf32>
    %209 = arith.mulf %203, %160 : vector<1x32xf32>
    %210 = arith.mulf %204, %208 : vector<1x32xf32>
    %211 = arith.addf %209, %210 : vector<1x32xf32>
    %212 = arith.addi %4, %c2_i32 : i32
    %c16_i32_91 = arith.constant 16 : i32
    %213 = arith.minsi %212, %c16_i32_91 : i32
    %c0_92 = arith.constant 0 : index
    %c0_93 = arith.constant 0 : index
    %c0_94 = arith.constant 0 : index
    %214 = vector.load %arg13[%c0_92, %c0_93, %c0_94] : memref<16x1x16xf32, #tpu.memory_space<vmem>>, vector<16x1x16xf32>
    %215 = vector.shape_cast %214 : vector<16x1x16xf32> to vector<16x16xf32>
    %216 = vector.broadcast %192 : vector<1x16xf32> to vector<16x16xf32>
    %217 = arith.subf %215, %216 : vector<16x16xf32>
    %218 = arith.mulf %217, %217 : vector<16x16xf32>
    %cst_95 = arith.constant dense<0.000000e+00> : vector<16xf32>
    %219 = vector.multi_reduction <add>, %218, %cst_95 [1] : vector<16x16xf32> to vector<16xf32>
    %220 = vector.shape_cast %219 : vector<16xf32> to vector<16x1xf32>
    %cst_96 = arith.constant 0.000000e+00 : f32
    %221 = vector.broadcast %cst_96 : f32 to vector<16x1xf32>
    %222 = arith.subf %221, %220 : vector<16x1xf32>
    %223 = tpu.iota {dimensions = array<i32: 0>} : vector<16x1xi32>
    %224 = vector.broadcast %213 : i32 to vector<16x1xi32>
    %225 = arith.cmpi slt, %223, %224 : vector<16x1xi32>
    %cst_97 = arith.constant -1.000000e+30 : f32
    %226 = vector.broadcast %cst_97 : f32 to vector<16x1xf32>
    %227 = arith.select %225, %222, %226 : vector<16x1xi1>, vector<16x1xf32>
    %228 = vector.shape_cast %227 : vector<16x1xf32> to vector<1x16x1xf32>
    %cst_98 = arith.constant dense<0xFF800000> : vector<1xf32>
    %229 = vector.multi_reduction <maximumf>, %228, %cst_98 [1, 2] : vector<1x16x1xf32> to vector<1xf32>
    %230 = vector.shape_cast %229 : vector<1xf32> to vector<1x1x1xf32>
    %231 = vector.extract %230[0, 0, 0] : f32 from vector<1x1x1xf32>
    %232 = vector.broadcast %231 : f32 to vector<16x1xf32>
    %233 = arith.cmpf oeq, %227, %232 : vector<16x1xf32>
    %234 = arith.andi %233, %225 : vector<16x1xi1>
    %c15_i32_99 = arith.constant 15 : i32
    %235 = vector.broadcast %c15_i32_99 : i32 to vector<16x1xi32>
    %236 = arith.select %234, %223, %235 : vector<16x1xi1>, vector<16x1xi32>
    %237 = vector.shape_cast %236 : vector<16x1xi32> to vector<1x16x1xi32>
    %cst_100 = arith.constant dense<2147483647> : vector<1xi32>
    %238 = vector.multi_reduction <minsi>, %237, %cst_100 [1, 2] : vector<1x16x1xi32> to vector<1xi32>
    %239 = vector.shape_cast %238 : vector<1xi32> to vector<1x1x1xi32>
    %240 = vector.extract %239[0, 0, 0] : i32 from vector<1x1x1xi32>
    %241 = arith.index_cast %240 : i32 to index
    %c0_101 = arith.constant 0 : index
    %c0_102 = arith.constant 0 : index
    %242 = vector.load %arg14[%241, %c0_101, %c0_102] : memref<16x1x32xf32, #tpu.memory_space<vmem>>, vector<1x1x32xf32>
    %243 = vector.shape_cast %242 : vector<1x1x32xf32> to vector<1x32xf32>
    %c0_i32_103 = arith.constant 0 : i32
    %244 = arith.cmpi sgt, %213, %c0_i32_103 : i32
    %245 = math.tanh %243 : vector<1x32xf32>
    %cst_104 = arith.constant 0.000000e+00 : f32
    %246 = vector.broadcast %cst_104 : f32 to vector<1x32xf32>
    %247 = arith.select %244, %245, %246 : vector<1x32xf32>
    %248 = arith.mulf %206, %247 : vector<1x32xf32>
    %249 = arith.addf %211, %248 : vector<1x32xf32>
    %250 = math.tanh %249 : vector<1x32xf32>
    %251 = arith.mulf %205, %250 : vector<1x32xf32>
    %252 = arith.addi %5, %c2_i32 : i32
    %c16_i32_105 = arith.constant 16 : i32
    %c0_i32_106 = arith.constant 0 : i32
    %253 = arith.cmpi eq, %c16_i32_105, %c0_i32_106 : i32
    %c1_i32_107 = arith.constant 1 : i32
    %254 = arith.select %253, %c1_i32_107, %c16_i32_105 : i32
    %255 = arith.remsi %252, %254 : i32
    %c0_i32_108 = arith.constant 0 : i32
    %256 = arith.cmpi ne, %255, %c0_i32_108 : i32
    %c0_i32_109 = arith.constant 0 : i32
    %257 = arith.cmpi slt, %255, %c0_i32_109 : i32
    %c0_i32_110 = arith.constant 0 : i32
    %258 = arith.cmpi slt, %254, %c0_i32_110 : i32
    %259 = arith.xori %257, %258 : i1
    %260 = arith.andi %259, %256 : i1
    %261 = arith.addi %255, %254 : i32
    %262 = arith.select %260, %261, %255 : i32
    %263 = arith.index_cast %262 : i32 to index
    %c0_111 = arith.constant 0 : index
    %c0_112 = arith.constant 0 : index
    %264 = vector.load %arg13[%263, %c0_111, %c0_112] : memref<16x1x16xf32, #tpu.memory_space<vmem>>, vector<1x1x16xf32>
    %265 = vector.shape_cast %264 : vector<1x1x16xf32> to vector<1x16xf32>
    %266 = vector.shape_cast %192 : vector<1x16xf32> to vector<1x1x16xf32>
    tpu.vector_store %arg13[%263, %c0_111, %c0_112], %266 {strides = array<i32>} : memref<16x1x16xf32, #tpu.memory_space<vmem>>, vector<1x1x16xf32>,
    %267 = arith.index_cast %262 : i32 to index
    %c0_113 = arith.constant 0 : index
    %c0_114 = arith.constant 0 : index
    %268 = vector.load %arg14[%267, %c0_113, %c0_114] : memref<16x1x32xf32, #tpu.memory_space<vmem>>, vector<1x1x32xf32>
    %269 = vector.shape_cast %268 : vector<1x1x32xf32> to vector<1x32xf32>
    %270 = vector.shape_cast %249 : vector<1x32xf32> to vector<1x1x32xf32>
    tpu.vector_store %arg14[%267, %c0_113, %c0_114], %270 {strides = array<i32>} : memref<16x1x32xf32, #tpu.memory_space<vmem>>, vector<1x1x32xf32>,
    %cst_115 = arith.constant dense<0.000000e+00> : vector<1x5xf32>
    %271 = tpu.matmul %251, %9, %cst_115 {dimension_numbers = #tpu.dot_dimension_numbers<[1], [0], [0], [1], [0, 0, 1, 1], [], []>} : vector<1x32xf32>, vector<32x5xf32>, vector<1x5xf32> -> vector<1x5xf32>
    %272 = arith.addf %271, %10 : vector<1x5xf32>
    %cst_116 = arith.constant 0.000000e+00 : f32
    %273 = vector.broadcast %cst_116 : f32 to vector<1x27xf32>
    %274 = tpu.concatenate %272, %273 in 1 : vector<1x5xf32>, vector<1x27xf32> -> vector<1x32xf32>
    %275 = tpu.concatenate %251, %249, %203, %204, %205, %206, %247, %274 in 1 : vector<1x32xf32>, vector<1x32xf32>, vector<1x32xf32>, vector<1x32xf32>, vector<1x32xf32>, vector<1x32xf32>, vector<1x32xf32>, vector<1x32xf32> -> vector<1x256xf32>
    %276 = arith.index_cast %c2_i32 : i32 to index
    %c0_117 = arith.constant 0 : index
    %c0_118 = arith.constant 0 : index
    %277 = vector.load %arg12[%276, %c0_117, %c0_118] : memref<8x1x256xf32, #tpu.memory_space<vmem>>, vector<1x1x256xf32>
    %278 = vector.shape_cast %277 : vector<1x1x256xf32> to vector<1x256xf32>
    %279 = vector.shape_cast %275 : vector<1x256xf32> to vector<1x1x256xf32>
    tpu.vector_store %arg12[%276, %c0_117, %c0_118], %279 {strides = array<i32>} : memref<8x1x256xf32, #tpu.memory_space<vmem>>, vector<1x1x256xf32>,
    %c3_i32 = arith.constant 3 : i32
    %280 = arith.index_cast %c3_i32 : i32 to index
    %c0_119 = arith.constant 0 : index
    %281 = vector.load %arg2[%280, %c0_119] : memref<8x16xf32, #tpu.memory_space<vmem>>, vector<1x16xf32>
    %cst_120 = arith.constant dense<0.000000e+00> : vector<1x160xf32>
    %282 = tpu.matmul %281, %6, %cst_120 {dimension_numbers = #tpu.dot_dimension_numbers<[1], [0], [0], [1], [0, 0, 1, 1], [], []>} : vector<1x16xf32>, vector<16x160xf32>, vector<1x160xf32> -> vector<1x160xf32>
    %cst_121 = arith.constant dense<0.000000e+00> : vector<1x160xf32>
    %283 = tpu.matmul %251, %7, %cst_121 {dimension_numbers = #tpu.dot_dimension_numbers<[1], [0], [0], [1], [0, 0, 1, 1], [], []>} : vector<1x32xf32>, vector<32x160xf32>, vector<1x160xf32> -> vector<1x160xf32>
    %284 = arith.addf %282, %283 : vector<1x160xf32>
    %285 = arith.addf %284, %8 : vector<1x160xf32>
    %286 = vector.extract_strided_slice %285 {offsets = [0, 0], sizes = [1, 128], strides = [1, 1]} : vector<1x160xf32> to vector<1x128xf32>
    %287 = arith.negf %286 : vector<1x128xf32>
    %288 = math.exp %287 : vector<1x128xf32>
    %cst_122 = arith.constant 1.000000e+00 : f32
    %289 = vector.broadcast %cst_122 : f32 to vector<1x128xf32>
    %290 = arith.addf %289, %288 : vector<1x128xf32>
    %291 = arith.divf %289, %290 : vector<1x128xf32>
    %292 = vector.extract_strided_slice %291 {offsets = [0, 0], sizes = [1, 32], strides = [1, 1]} : vector<1x128xf32> to vector<1x32xf32>
    %293 = vector.extract_strided_slice %291 {offsets = [0, 32], sizes = [1, 32], strides = [1, 1]} : vector<1x128xf32> to vector<1x32xf32>
    %294 = vector.extract_strided_slice %291 {offsets = [0, 64], sizes = [1, 32], strides = [1, 1]} : vector<1x128xf32> to vector<1x32xf32>
    %295 = vector.extract_strided_slice %291 {offsets = [0, 96], sizes = [1, 32], strides = [1, 1]} : vector<1x128xf32> to vector<1x32xf32>
    %296 = vector.extract_strided_slice %285 {offsets = [0, 128], sizes = [1, 32], strides = [1, 1]} : vector<1x160xf32> to vector<1x32xf32>
    %297 = math.tanh %296 : vector<1x32xf32>
    %298 = arith.mulf %292, %249 : vector<1x32xf32>
    %299 = arith.mulf %293, %297 : vector<1x32xf32>
    %300 = arith.addf %298, %299 : vector<1x32xf32>
    %301 = arith.addi %4, %c3_i32 : i32
    %c16_i32_123 = arith.constant 16 : i32
    %302 = arith.minsi %301, %c16_i32_123 : i32
    %c0_124 = arith.constant 0 : index
    %c0_125 = arith.constant 0 : index
    %c0_126 = arith.constant 0 : index
    %303 = vector.load %arg13[%c0_124, %c0_125, %c0_126] : memref<16x1x16xf32, #tpu.memory_space<vmem>>, vector<16x1x16xf32>
    %304 = vector.shape_cast %303 : vector<16x1x16xf32> to vector<16x16xf32>
    %305 = vector.broadcast %281 : vector<1x16xf32> to vector<16x16xf32>
    %306 = arith.subf %304, %305 : vector<16x16xf32>
    %307 = arith.mulf %306, %306 : vector<16x16xf32>
    %cst_127 = arith.constant dense<0.000000e+00> : vector<16xf32>
    %308 = vector.multi_reduction <add>, %307, %cst_127 [1] : vector<16x16xf32> to vector<16xf32>
    %309 = vector.shape_cast %308 : vector<16xf32> to vector<16x1xf32>
    %cst_128 = arith.constant 0.000000e+00 : f32
    %310 = vector.broadcast %cst_128 : f32 to vector<16x1xf32>
    %311 = arith.subf %310, %309 : vector<16x1xf32>
    %312 = tpu.iota {dimensions = array<i32: 0>} : vector<16x1xi32>
    %313 = vector.broadcast %302 : i32 to vector<16x1xi32>
    %314 = arith.cmpi slt, %312, %313 : vector<16x1xi32>
    %cst_129 = arith.constant -1.000000e+30 : f32
    %315 = vector.broadcast %cst_129 : f32 to vector<16x1xf32>
    %316 = arith.select %314, %311, %315 : vector<16x1xi1>, vector<16x1xf32>
    %317 = vector.shape_cast %316 : vector<16x1xf32> to vector<1x16x1xf32>
    %cst_130 = arith.constant dense<0xFF800000> : vector<1xf32>
    %318 = vector.multi_reduction <maximumf>, %317, %cst_130 [1, 2] : vector<1x16x1xf32> to vector<1xf32>
    %319 = vector.shape_cast %318 : vector<1xf32> to vector<1x1x1xf32>
    %320 = vector.extract %319[0, 0, 0] : f32 from vector<1x1x1xf32>
    %321 = vector.broadcast %320 : f32 to vector<16x1xf32>
    %322 = arith.cmpf oeq, %316, %321 : vector<16x1xf32>
    %323 = arith.andi %322, %314 : vector<16x1xi1>
    %c15_i32_131 = arith.constant 15 : i32
    %324 = vector.broadcast %c15_i32_131 : i32 to vector<16x1xi32>
    %325 = arith.select %323, %312, %324 : vector<16x1xi1>, vector<16x1xi32>
    %326 = vector.shape_cast %325 : vector<16x1xi32> to vector<1x16x1xi32>
    %cst_132 = arith.constant dense<2147483647> : vector<1xi32>
    %327 = vector.multi_reduction <minsi>, %326, %cst_132 [1, 2] : vector<1x16x1xi32> to vector<1xi32>
    %328 = vector.shape_cast %327 : vector<1xi32> to vector<1x1x1xi32>
    %329 = vector.extract %328[0, 0, 0] : i32 from vector<1x1x1xi32>
    %330 = arith.index_cast %329 : i32 to index
    %c0_133 = arith.constant 0 : index
    %c0_134 = arith.constant 0 : index
    %331 = vector.load %arg14[%330, %c0_133, %c0_134] : memref<16x1x32xf32, #tpu.memory_space<vmem>>, vector<1x1x32xf32>
    %332 = vector.shape_cast %331 : vector<1x1x32xf32> to vector<1x32xf32>
    %c0_i32_135 = arith.constant 0 : i32
    %333 = arith.cmpi sgt, %302, %c0_i32_135 : i32
    %334 = math.tanh %332 : vector<1x32xf32>
    %cst_136 = arith.constant 0.000000e+00 : f32
    %335 = vector.broadcast %cst_136 : f32 to vector<1x32xf32>
    %336 = arith.select %333, %334, %335 : vector<1x32xf32>
    %337 = arith.mulf %295, %336 : vector<1x32xf32>
    %338 = arith.addf %300, %337 : vector<1x32xf32>
    %339 = math.tanh %338 : vector<1x32xf32>
    %340 = arith.mulf %294, %339 : vector<1x32xf32>
    %341 = arith.addi %5, %c3_i32 : i32
    %c16_i32_137 = arith.constant 16 : i32
    %c0_i32_138 = arith.constant 0 : i32
    %342 = arith.cmpi eq, %c16_i32_137, %c0_i32_138 : i32
    %c1_i32_139 = arith.constant 1 : i32
    %343 = arith.select %342, %c1_i32_139, %c16_i32_137 : i32
    %344 = arith.remsi %341, %343 : i32
    %c0_i32_140 = arith.constant 0 : i32
    %345 = arith.cmpi ne, %344, %c0_i32_140 : i32
    %c0_i32_141 = arith.constant 0 : i32
    %346 = arith.cmpi slt, %344, %c0_i32_141 : i32
    %c0_i32_142 = arith.constant 0 : i32
    %347 = arith.cmpi slt, %343, %c0_i32_142 : i32
    %348 = arith.xori %346, %347 : i1
    %349 = arith.andi %348, %345 : i1
    %350 = arith.addi %344, %343 : i32
    %351 = arith.select %349, %350, %344 : i32
    %352 = arith.index_cast %351 : i32 to index
    %c0_143 = arith.constant 0 : index
    %c0_144 = arith.constant 0 : index
    %353 = vector.load %arg13[%352, %c0_143, %c0_144] : memref<16x1x16xf32, #tpu.memory_space<vmem>>, vector<1x1x16xf32>
    %354 = vector.shape_cast %353 : vector<1x1x16xf32> to vector<1x16xf32>
    %355 = vector.shape_cast %281 : vector<1x16xf32> to vector<1x1x16xf32>
    tpu.vector_store %arg13[%352, %c0_143, %c0_144], %355 {strides = array<i32>} : memref<16x1x16xf32, #tpu.memory_space<vmem>>, vector<1x1x16xf32>,
    %356 = arith.index_cast %351 : i32 to index
    %c0_145 = arith.constant 0 : index
    %c0_146 = arith.constant 0 : index
    %357 = vector.load %arg14[%356, %c0_145, %c0_146] : memref<16x1x32xf32, #tpu.memory_space<vmem>>, vector<1x1x32xf32>
    %358 = vector.shape_cast %357 : vector<1x1x32xf32> to vector<1x32xf32>
    %359 = vector.shape_cast %338 : vector<1x32xf32> to vector<1x1x32xf32>
    tpu.vector_store %arg14[%356, %c0_145, %c0_146], %359 {strides = array<i32>} : memref<16x1x32xf32, #tpu.memory_space<vmem>>, vector<1x1x32xf32>,
    %cst_147 = arith.constant dense<0.000000e+00> : vector<1x5xf32>
    %360 = tpu.matmul %340, %9, %cst_147 {dimension_numbers = #tpu.dot_dimension_numbers<[1], [0], [0], [1], [0, 0, 1, 1], [], []>} : vector<1x32xf32>, vector<32x5xf32>, vector<1x5xf32> -> vector<1x5xf32>
    %361 = arith.addf %360, %10 : vector<1x5xf32>
    %cst_148 = arith.constant 0.000000e+00 : f32
    %362 = vector.broadcast %cst_148 : f32 to vector<1x27xf32>
    %363 = tpu.concatenate %361, %362 in 1 : vector<1x5xf32>, vector<1x27xf32> -> vector<1x32xf32>
    %364 = tpu.concatenate %340, %338, %292, %293, %294, %295, %336, %363 in 1 : vector<1x32xf32>, vector<1x32xf32>, vector<1x32xf32>, vector<1x32xf32>, vector<1x32xf32>, vector<1x32xf32>, vector<1x32xf32>, vector<1x32xf32> -> vector<1x256xf32>
    %365 = arith.index_cast %c3_i32 : i32 to index
    %c0_149 = arith.constant 0 : index
    %c0_150 = arith.constant 0 : index
    %366 = vector.load %arg12[%365, %c0_149, %c0_150] : memref<8x1x256xf32, #tpu.memory_space<vmem>>, vector<1x1x256xf32>
    %367 = vector.shape_cast %366 : vector<1x1x256xf32> to vector<1x256xf32>
    %368 = vector.shape_cast %364 : vector<1x256xf32> to vector<1x1x256xf32>
    tpu.vector_store %arg12[%365, %c0_149, %c0_150], %368 {strides = array<i32>} : memref<8x1x256xf32, #tpu.memory_space<vmem>>, vector<1x1x256xf32>,
    %c4_i32 = arith.constant 4 : i32
    %369 = arith.index_cast %c4_i32 : i32 to index
    %c0_151 = arith.constant 0 : index
    %370 = vector.load %arg2[%369, %c0_151] : memref<8x16xf32, #tpu.memory_space<vmem>>, vector<1x16xf32>
    %cst_152 = arith.constant dense<0.000000e+00> : vector<1x160xf32>
    %371 = tpu.matmul %370, %6, %cst_152 {dimension_numbers = #tpu.dot_dimension_numbers<[1], [0], [0], [1], [0, 0, 1, 1], [], []>} : vector<1x16xf32>, vector<16x160xf32>, vector<1x160xf32> -> vector<1x160xf32>
    %cst_153 = arith.constant dense<0.000000e+00> : vector<1x160xf32>
    %372 = tpu.matmul %340, %7, %cst_153 {dimension_numbers = #tpu.dot_dimension_numbers<[1], [0], [0], [1], [0, 0, 1, 1], [], []>} : vector<1x32xf32>, vector<32x160xf32>, vector<1x160xf32> -> vector<1x160xf32>
    %373 = arith.addf %371, %372 : vector<1x160xf32>
    %374 = arith.addf %373, %8 : vector<1x160xf32>
    %375 = vector.extract_strided_slice %374 {offsets = [0, 0], sizes = [1, 128], strides = [1, 1]} : vector<1x160xf32> to vector<1x128xf32>
    %376 = arith.negf %375 : vector<1x128xf32>
    %377 = math.exp %376 : vector<1x128xf32>
    %cst_154 = arith.constant 1.000000e+00 : f32
    %378 = vector.broadcast %cst_154 : f32 to vector<1x128xf32>
    %379 = arith.addf %378, %377 : vector<1x128xf32>
    %380 = arith.divf %378, %379 : vector<1x128xf32>
    %381 = vector.extract_strided_slice %380 {offsets = [0, 0], sizes = [1, 32], strides = [1, 1]} : vector<1x128xf32> to vector<1x32xf32>
    %382 = vector.extract_strided_slice %380 {offsets = [0, 32], sizes = [1, 32], strides = [1, 1]} : vector<1x128xf32> to vector<1x32xf32>
    %383 = vector.extract_strided_slice %380 {offsets = [0, 64], sizes = [1, 32], strides = [1, 1]} : vector<1x128xf32> to vector<1x32xf32>
    %384 = vector.extract_strided_slice %380 {offsets = [0, 96], sizes = [1, 32], strides = [1, 1]} : vector<1x128xf32> to vector<1x32xf32>
    %385 = vector.extract_strided_slice %374 {offsets = [0, 128], sizes = [1, 32], strides = [1, 1]} : vector<1x160xf32> to vector<1x32xf32>
    %386 = math.tanh %385 : vector<1x32xf32>
    %387 = arith.mulf %381, %338 : vector<1x32xf32>
    %388 = arith.mulf %382, %386 : vector<1x32xf32>
    %389 = arith.addf %387, %388 : vector<1x32xf32>
    %390 = arith.addi %4, %c4_i32 : i32
    %c16_i32_155 = arith.constant 16 : i32
    %391 = arith.minsi %390, %c16_i32_155 : i32
    %c0_156 = arith.constant 0 : index
    %c0_157 = arith.constant 0 : index
    %c0_158 = arith.constant 0 : index
    %392 = vector.load %arg13[%c0_156, %c0_157, %c0_158] : memref<16x1x16xf32, #tpu.memory_space<vmem>>, vector<16x1x16xf32>
    %393 = vector.shape_cast %392 : vector<16x1x16xf32> to vector<16x16xf32>
    %394 = vector.broadcast %370 : vector<1x16xf32> to vector<16x16xf32>
    %395 = arith.subf %393, %394 : vector<16x16xf32>
    %396 = arith.mulf %395, %395 : vector<16x16xf32>
    %cst_159 = arith.constant dense<0.000000e+00> : vector<16xf32>
    %397 = vector.multi_reduction <add>, %396, %cst_159 [1] : vector<16x16xf32> to vector<16xf32>
    %398 = vector.shape_cast %397 : vector<16xf32> to vector<16x1xf32>
    %cst_160 = arith.constant 0.000000e+00 : f32
    %399 = vector.broadcast %cst_160 : f32 to vector<16x1xf32>
    %400 = arith.subf %399, %398 : vector<16x1xf32>
    %401 = tpu.iota {dimensions = array<i32: 0>} : vector<16x1xi32>
    %402 = vector.broadcast %391 : i32 to vector<16x1xi32>
    %403 = arith.cmpi slt, %401, %402 : vector<16x1xi32>
    %cst_161 = arith.constant -1.000000e+30 : f32
    %404 = vector.broadcast %cst_161 : f32 to vector<16x1xf32>
    %405 = arith.select %403, %400, %404 : vector<16x1xi1>, vector<16x1xf32>
    %406 = vector.shape_cast %405 : vector<16x1xf32> to vector<1x16x1xf32>
    %cst_162 = arith.constant dense<0xFF800000> : vector<1xf32>
    %407 = vector.multi_reduction <maximumf>, %406, %cst_162 [1, 2] : vector<1x16x1xf32> to vector<1xf32>
    %408 = vector.shape_cast %407 : vector<1xf32> to vector<1x1x1xf32>
    %409 = vector.extract %408[0, 0, 0] : f32 from vector<1x1x1xf32>
    %410 = vector.broadcast %409 : f32 to vector<16x1xf32>
    %411 = arith.cmpf oeq, %405, %410 : vector<16x1xf32>
    %412 = arith.andi %411, %403 : vector<16x1xi1>
    %c15_i32_163 = arith.constant 15 : i32
    %413 = vector.broadcast %c15_i32_163 : i32 to vector<16x1xi32>
    %414 = arith.select %412, %401, %413 : vector<16x1xi1>, vector<16x1xi32>
    %415 = vector.shape_cast %414 : vector<16x1xi32> to vector<1x16x1xi32>
    %cst_164 = arith.constant dense<2147483647> : vector<1xi32>
    %416 = vector.multi_reduction <minsi>, %415, %cst_164 [1, 2] : vector<1x16x1xi32> to vector<1xi32>
    %417 = vector.shape_cast %416 : vector<1xi32> to vector<1x1x1xi32>
    %418 = vector.extract %417[0, 0, 0] : i32 from vector<1x1x1xi32>
    %419 = arith.index_cast %418 : i32 to index
    %c0_165 = arith.constant 0 : index
    %c0_166 = arith.constant 0 : index
    %420 = vector.load %arg14[%419, %c0_165, %c0_166] : memref<16x1x32xf32, #tpu.memory_space<vmem>>, vector<1x1x32xf32>
    %421 = vector.shape_cast %420 : vector<1x1x32xf32> to vector<1x32xf32>
    %c0_i32_167 = arith.constant 0 : i32
    %422 = arith.cmpi sgt, %391, %c0_i32_167 : i32
    %423 = math.tanh %421 : vector<1x32xf32>
    %cst_168 = arith.constant 0.000000e+00 : f32
    %424 = vector.broadcast %cst_168 : f32 to vector<1x32xf32>
    %425 = arith.select %422, %423, %424 : vector<1x32xf32>
    %426 = arith.mulf %384, %425 : vector<1x32xf32>
    %427 = arith.addf %389, %426 : vector<1x32xf32>
    %428 = math.tanh %427 : vector<1x32xf32>
    %429 = arith.mulf %383, %428 : vector<1x32xf32>
    %430 = arith.addi %5, %c4_i32 : i32
    %c16_i32_169 = arith.constant 16 : i32
    %c0_i32_170 = arith.constant 0 : i32
    %431 = arith.cmpi eq, %c16_i32_169, %c0_i32_170 : i32
    %c1_i32_171 = arith.constant 1 : i32
    %432 = arith.select %431, %c1_i32_171, %c16_i32_169 : i32
    %433 = arith.remsi %430, %432 : i32
    %c0_i32_172 = arith.constant 0 : i32
    %434 = arith.cmpi ne, %433, %c0_i32_172 : i32
    %c0_i32_173 = arith.constant 0 : i32
    %435 = arith.cmpi slt, %433, %c0_i32_173 : i32
    %c0_i32_174 = arith.constant 0 : i32
    %436 = arith.cmpi slt, %432, %c0_i32_174 : i32
    %437 = arith.xori %435, %436 : i1
    %438 = arith.andi %437, %434 : i1
    %439 = arith.addi %433, %432 : i32
    %440 = arith.select %438, %439, %433 : i32
    %441 = arith.index_cast %440 : i32 to index
    %c0_175 = arith.constant 0 : index
    %c0_176 = arith.constant 0 : index
    %442 = vector.load %arg13[%441, %c0_175, %c0_176] : memref<16x1x16xf32, #tpu.memory_space<vmem>>, vector<1x1x16xf32>
    %443 = vector.shape_cast %442 : vector<1x1x16xf32> to vector<1x16xf32>
    %444 = vector.shape_cast %370 : vector<1x16xf32> to vector<1x1x16xf32>
    tpu.vector_store %arg13[%441, %c0_175, %c0_176], %444 {strides = array<i32>} : memref<16x1x16xf32, #tpu.memory_space<vmem>>, vector<1x1x16xf32>,
    %445 = arith.index_cast %440 : i32 to index
    %c0_177 = arith.constant 0 : index
    %c0_178 = arith.constant 0 : index
    %446 = vector.load %arg14[%445, %c0_177, %c0_178] : memref<16x1x32xf32, #tpu.memory_space<vmem>>, vector<1x1x32xf32>
    %447 = vector.shape_cast %446 : vector<1x1x32xf32> to vector<1x32xf32>
    %448 = vector.shape_cast %427 : vector<1x32xf32> to vector<1x1x32xf32>
    tpu.vector_store %arg14[%445, %c0_177, %c0_178], %448 {strides = array<i32>} : memref<16x1x32xf32, #tpu.memory_space<vmem>>, vector<1x1x32xf32>,
    %cst_179 = arith.constant dense<0.000000e+00> : vector<1x5xf32>
    %449 = tpu.matmul %429, %9, %cst_179 {dimension_numbers = #tpu.dot_dimension_numbers<[1], [0], [0], [1], [0, 0, 1, 1], [], []>} : vector<1x32xf32>, vector<32x5xf32>, vector<1x5xf32> -> vector<1x5xf32>
    %450 = arith.addf %449, %10 : vector<1x5xf32>
    %cst_180 = arith.constant 0.000000e+00 : f32
    %451 = vector.broadcast %cst_180 : f32 to vector<1x27xf32>
    %452 = tpu.concatenate %450, %451 in 1 : vector<1x5xf32>, vector<1x27xf32> -> vector<1x32xf32>
    %453 = tpu.concatenate %429, %427, %381, %382, %383, %384, %425, %452 in 1 : vector<1x32xf32>, vector<1x32xf32>, vector<1x32xf32>, vector<1x32xf32>, vector<1x32xf32>, vector<1x32xf32>, vector<1x32xf32>, vector<1x32xf32> -> vector<1x256xf32>
    %454 = arith.index_cast %c4_i32 : i32 to index
    %c0_181 = arith.constant 0 : index
    %c0_182 = arith.constant 0 : index
    %455 = vector.load %arg12[%454, %c0_181, %c0_182] : memref<8x1x256xf32, #tpu.memory_space<vmem>>, vector<1x1x256xf32>
    %456 = vector.shape_cast %455 : vector<1x1x256xf32> to vector<1x256xf32>
    %457 = vector.shape_cast %453 : vector<1x256xf32> to vector<1x1x256xf32>
    tpu.vector_store %arg12[%454, %c0_181, %c0_182], %457 {strides = array<i32>} : memref<8x1x256xf32, #tpu.memory_space<vmem>>, vector<1x1x256xf32>,
    %c5_i32 = arith.constant 5 : i32
    %458 = arith.index_cast %c5_i32 : i32 to index
    %c0_183 = arith.constant 0 : index
    %459 = vector.load %arg2[%458, %c0_183] : memref<8x16xf32, #tpu.memory_space<vmem>>, vector<1x16xf32>
    %cst_184 = arith.constant dense<0.000000e+00> : vector<1x160xf32>
    %460 = tpu.matmul %459, %6, %cst_184 {dimension_numbers = #tpu.dot_dimension_numbers<[1], [0], [0], [1], [0, 0, 1, 1], [], []>} : vector<1x16xf32>, vector<16x160xf32>, vector<1x160xf32> -> vector<1x160xf32>
    %cst_185 = arith.constant dense<0.000000e+00> : vector<1x160xf32>
    %461 = tpu.matmul %429, %7, %cst_185 {dimension_numbers = #tpu.dot_dimension_numbers<[1], [0], [0], [1], [0, 0, 1, 1], [], []>} : vector<1x32xf32>, vector<32x160xf32>, vector<1x160xf32> -> vector<1x160xf32>
    %462 = arith.addf %460, %461 : vector<1x160xf32>
    %463 = arith.addf %462, %8 : vector<1x160xf32>
    %464 = vector.extract_strided_slice %463 {offsets = [0, 0], sizes = [1, 128], strides = [1, 1]} : vector<1x160xf32> to vector<1x128xf32>
    %465 = arith.negf %464 : vector<1x128xf32>
    %466 = math.exp %465 : vector<1x128xf32>
    %cst_186 = arith.constant 1.000000e+00 : f32
    %467 = vector.broadcast %cst_186 : f32 to vector<1x128xf32>
    %468 = arith.addf %467, %466 : vector<1x128xf32>
    %469 = arith.divf %467, %468 : vector<1x128xf32>
    %470 = vector.extract_strided_slice %469 {offsets = [0, 0], sizes = [1, 32], strides = [1, 1]} : vector<1x128xf32> to vector<1x32xf32>
    %471 = vector.extract_strided_slice %469 {offsets = [0, 32], sizes = [1, 32], strides = [1, 1]} : vector<1x128xf32> to vector<1x32xf32>
    %472 = vector.extract_strided_slice %469 {offsets = [0, 64], sizes = [1, 32], strides = [1, 1]} : vector<1x128xf32> to vector<1x32xf32>
    %473 = vector.extract_strided_slice %469 {offsets = [0, 96], sizes = [1, 32], strides = [1, 1]} : vector<1x128xf32> to vector<1x32xf32>
    %474 = vector.extract_strided_slice %463 {offsets = [0, 128], sizes = [1, 32], strides = [1, 1]} : vector<1x160xf32> to vector<1x32xf32>
    %475 = math.tanh %474 : vector<1x32xf32>
    %476 = arith.mulf %470, %427 : vector<1x32xf32>
    %477 = arith.mulf %471, %475 : vector<1x32xf32>
    %478 = arith.addf %476, %477 : vector<1x32xf32>
    %479 = arith.addi %4, %c5_i32 : i32
    %c16_i32_187 = arith.constant 16 : i32
    %480 = arith.minsi %479, %c16_i32_187 : i32
    %c0_188 = arith.constant 0 : index
    %c0_189 = arith.constant 0 : index
    %c0_190 = arith.constant 0 : index
    %481 = vector.load %arg13[%c0_188, %c0_189, %c0_190] : memref<16x1x16xf32, #tpu.memory_space<vmem>>, vector<16x1x16xf32>
    %482 = vector.shape_cast %481 : vector<16x1x16xf32> to vector<16x16xf32>
    %483 = vector.broadcast %459 : vector<1x16xf32> to vector<16x16xf32>
    %484 = arith.subf %482, %483 : vector<16x16xf32>
    %485 = arith.mulf %484, %484 : vector<16x16xf32>
    %cst_191 = arith.constant dense<0.000000e+00> : vector<16xf32>
    %486 = vector.multi_reduction <add>, %485, %cst_191 [1] : vector<16x16xf32> to vector<16xf32>
    %487 = vector.shape_cast %486 : vector<16xf32> to vector<16x1xf32>
    %cst_192 = arith.constant 0.000000e+00 : f32
    %488 = vector.broadcast %cst_192 : f32 to vector<16x1xf32>
    %489 = arith.subf %488, %487 : vector<16x1xf32>
    %490 = tpu.iota {dimensions = array<i32: 0>} : vector<16x1xi32>
    %491 = vector.broadcast %480 : i32 to vector<16x1xi32>
    %492 = arith.cmpi slt, %490, %491 : vector<16x1xi32>
    %cst_193 = arith.constant -1.000000e+30 : f32
    %493 = vector.broadcast %cst_193 : f32 to vector<16x1xf32>
    %494 = arith.select %492, %489, %493 : vector<16x1xi1>, vector<16x1xf32>
    %495 = vector.shape_cast %494 : vector<16x1xf32> to vector<1x16x1xf32>
    %cst_194 = arith.constant dense<0xFF800000> : vector<1xf32>
    %496 = vector.multi_reduction <maximumf>, %495, %cst_194 [1, 2] : vector<1x16x1xf32> to vector<1xf32>
    %497 = vector.shape_cast %496 : vector<1xf32> to vector<1x1x1xf32>
    %498 = vector.extract %497[0, 0, 0] : f32 from vector<1x1x1xf32>
    %499 = vector.broadcast %498 : f32 to vector<16x1xf32>
    %500 = arith.cmpf oeq, %494, %499 : vector<16x1xf32>
    %501 = arith.andi %500, %492 : vector<16x1xi1>
    %c15_i32_195 = arith.constant 15 : i32
    %502 = vector.broadcast %c15_i32_195 : i32 to vector<16x1xi32>
    %503 = arith.select %501, %490, %502 : vector<16x1xi1>, vector<16x1xi32>
    %504 = vector.shape_cast %503 : vector<16x1xi32> to vector<1x16x1xi32>
    %cst_196 = arith.constant dense<2147483647> : vector<1xi32>
    %505 = vector.multi_reduction <minsi>, %504, %cst_196 [1, 2] : vector<1x16x1xi32> to vector<1xi32>
    %506 = vector.shape_cast %505 : vector<1xi32> to vector<1x1x1xi32>
    %507 = vector.extract %506[0, 0, 0] : i32 from vector<1x1x1xi32>
    %508 = arith.index_cast %507 : i32 to index
    %c0_197 = arith.constant 0 : index
    %c0_198 = arith.constant 0 : index
    %509 = vector.load %arg14[%508, %c0_197, %c0_198] : memref<16x1x32xf32, #tpu.memory_space<vmem>>, vector<1x1x32xf32>
    %510 = vector.shape_cast %509 : vector<1x1x32xf32> to vector<1x32xf32>
    %c0_i32_199 = arith.constant 0 : i32
    %511 = arith.cmpi sgt, %480, %c0_i32_199 : i32
    %512 = math.tanh %510 : vector<1x32xf32>
    %cst_200 = arith.constant 0.000000e+00 : f32
    %513 = vector.broadcast %cst_200 : f32 to vector<1x32xf32>
    %514 = arith.select %511, %512, %513 : vector<1x32xf32>
    %515 = arith.mulf %473, %514 : vector<1x32xf32>
    %516 = arith.addf %478, %515 : vector<1x32xf32>
    %517 = math.tanh %516 : vector<1x32xf32>
    %518 = arith.mulf %472, %517 : vector<1x32xf32>
    %519 = arith.addi %5, %c5_i32 : i32
    %c16_i32_201 = arith.constant 16 : i32
    %c0_i32_202 = arith.constant 0 : i32
    %520 = arith.cmpi eq, %c16_i32_201, %c0_i32_202 : i32
    %c1_i32_203 = arith.constant 1 : i32
    %521 = arith.select %520, %c1_i32_203, %c16_i32_201 : i32
    %522 = arith.remsi %519, %521 : i32
    %c0_i32_204 = arith.constant 0 : i32
    %523 = arith.cmpi ne, %522, %c0_i32_204 : i32
    %c0_i32_205 = arith.constant 0 : i32
    %524 = arith.cmpi slt, %522, %c0_i32_205 : i32
    %c0_i32_206 = arith.constant 0 : i32
    %525 = arith.cmpi slt, %521, %c0_i32_206 : i32
    %526 = arith.xori %524, %525 : i1
    %527 = arith.andi %526, %523 : i1
    %528 = arith.addi %522, %521 : i32
    %529 = arith.select %527, %528, %522 : i32
    %530 = arith.index_cast %529 : i32 to index
    %c0_207 = arith.constant 0 : index
    %c0_208 = arith.constant 0 : index
    %531 = vector.load %arg13[%530, %c0_207, %c0_208] : memref<16x1x16xf32, #tpu.memory_space<vmem>>, vector<1x1x16xf32>
    %532 = vector.shape_cast %531 : vector<1x1x16xf32> to vector<1x16xf32>
    %533 = vector.shape_cast %459 : vector<1x16xf32> to vector<1x1x16xf32>
    tpu.vector_store %arg13[%530, %c0_207, %c0_208], %533 {strides = array<i32>} : memref<16x1x16xf32, #tpu.memory_space<vmem>>, vector<1x1x16xf32>,
    %534 = arith.index_cast %529 : i32 to index
    %c0_209 = arith.constant 0 : index
    %c0_210 = arith.constant 0 : index
    %535 = vector.load %arg14[%534, %c0_209, %c0_210] : memref<16x1x32xf32, #tpu.memory_space<vmem>>, vector<1x1x32xf32>
    %536 = vector.shape_cast %535 : vector<1x1x32xf32> to vector<1x32xf32>
    %537 = vector.shape_cast %516 : vector<1x32xf32> to vector<1x1x32xf32>
    tpu.vector_store %arg14[%534, %c0_209, %c0_210], %537 {strides = array<i32>} : memref<16x1x32xf32, #tpu.memory_space<vmem>>, vector<1x1x32xf32>,
    %cst_211 = arith.constant dense<0.000000e+00> : vector<1x5xf32>
    %538 = tpu.matmul %518, %9, %cst_211 {dimension_numbers = #tpu.dot_dimension_numbers<[1], [0], [0], [1], [0, 0, 1, 1], [], []>} : vector<1x32xf32>, vector<32x5xf32>, vector<1x5xf32> -> vector<1x5xf32>
    %539 = arith.addf %538, %10 : vector<1x5xf32>
    %cst_212 = arith.constant 0.000000e+00 : f32
    %540 = vector.broadcast %cst_212 : f32 to vector<1x27xf32>
    %541 = tpu.concatenate %539, %540 in 1 : vector<1x5xf32>, vector<1x27xf32> -> vector<1x32xf32>
    %542 = tpu.concatenate %518, %516, %470, %471, %472, %473, %514, %541 in 1 : vector<1x32xf32>, vector<1x32xf32>, vector<1x32xf32>, vector<1x32xf32>, vector<1x32xf32>, vector<1x32xf32>, vector<1x32xf32>, vector<1x32xf32> -> vector<1x256xf32>
    %543 = arith.index_cast %c5_i32 : i32 to index
    %c0_213 = arith.constant 0 : index
    %c0_214 = arith.constant 0 : index
    %544 = vector.load %arg12[%543, %c0_213, %c0_214] : memref<8x1x256xf32, #tpu.memory_space<vmem>>, vector<1x1x256xf32>
    %545 = vector.shape_cast %544 : vector<1x1x256xf32> to vector<1x256xf32>
    %546 = vector.shape_cast %542 : vector<1x256xf32> to vector<1x1x256xf32>
    tpu.vector_store %arg12[%543, %c0_213, %c0_214], %546 {strides = array<i32>} : memref<8x1x256xf32, #tpu.memory_space<vmem>>, vector<1x1x256xf32>,
    %c6_i32 = arith.constant 6 : i32
    %547 = arith.index_cast %c6_i32 : i32 to index
    %c0_215 = arith.constant 0 : index
    %548 = vector.load %arg2[%547, %c0_215] : memref<8x16xf32, #tpu.memory_space<vmem>>, vector<1x16xf32>
    %cst_216 = arith.constant dense<0.000000e+00> : vector<1x160xf32>
    %549 = tpu.matmul %548, %6, %cst_216 {dimension_numbers = #tpu.dot_dimension_numbers<[1], [0], [0], [1], [0, 0, 1, 1], [], []>} : vector<1x16xf32>, vector<16x160xf32>, vector<1x160xf32> -> vector<1x160xf32>
    %cst_217 = arith.constant dense<0.000000e+00> : vector<1x160xf32>
    %550 = tpu.matmul %518, %7, %cst_217 {dimension_numbers = #tpu.dot_dimension_numbers<[1], [0], [0], [1], [0, 0, 1, 1], [], []>} : vector<1x32xf32>, vector<32x160xf32>, vector<1x160xf32> -> vector<1x160xf32>
    %551 = arith.addf %549, %550 : vector<1x160xf32>
    %552 = arith.addf %551, %8 : vector<1x160xf32>
    %553 = vector.extract_strided_slice %552 {offsets = [0, 0], sizes = [1, 128], strides = [1, 1]} : vector<1x160xf32> to vector<1x128xf32>
    %554 = arith.negf %553 : vector<1x128xf32>
    %555 = math.exp %554 : vector<1x128xf32>
    %cst_218 = arith.constant 1.000000e+00 : f32
    %556 = vector.broadcast %cst_218 : f32 to vector<1x128xf32>
    %557 = arith.addf %556, %555 : vector<1x128xf32>
    %558 = arith.divf %556, %557 : vector<1x128xf32>
    %559 = vector.extract_strided_slice %558 {offsets = [0, 0], sizes = [1, 32], strides = [1, 1]} : vector<1x128xf32> to vector<1x32xf32>
    %560 = vector.extract_strided_slice %558 {offsets = [0, 32], sizes = [1, 32], strides = [1, 1]} : vector<1x128xf32> to vector<1x32xf32>
    %561 = vector.extract_strided_slice %558 {offsets = [0, 64], sizes = [1, 32], strides = [1, 1]} : vector<1x128xf32> to vector<1x32xf32>
    %562 = vector.extract_strided_slice %558 {offsets = [0, 96], sizes = [1, 32], strides = [1, 1]} : vector<1x128xf32> to vector<1x32xf32>
    %563 = vector.extract_strided_slice %552 {offsets = [0, 128], sizes = [1, 32], strides = [1, 1]} : vector<1x160xf32> to vector<1x32xf32>
    %564 = math.tanh %563 : vector<1x32xf32>
    %565 = arith.mulf %559, %516 : vector<1x32xf32>
    %566 = arith.mulf %560, %564 : vector<1x32xf32>
    %567 = arith.addf %565, %566 : vector<1x32xf32>
    %568 = arith.addi %4, %c6_i32 : i32
    %c16_i32_219 = arith.constant 16 : i32
    %569 = arith.minsi %568, %c16_i32_219 : i32
    %c0_220 = arith.constant 0 : index
    %c0_221 = arith.constant 0 : index
    %c0_222 = arith.constant 0 : index
    %570 = vector.load %arg13[%c0_220, %c0_221, %c0_222] : memref<16x1x16xf32, #tpu.memory_space<vmem>>, vector<16x1x16xf32>
    %571 = vector.shape_cast %570 : vector<16x1x16xf32> to vector<16x16xf32>
    %572 = vector.broadcast %548 : vector<1x16xf32> to vector<16x16xf32>
    %573 = arith.subf %571, %572 : vector<16x16xf32>
    %574 = arith.mulf %573, %573 : vector<16x16xf32>
    %cst_223 = arith.constant dense<0.000000e+00> : vector<16xf32>
    %575 = vector.multi_reduction <add>, %574, %cst_223 [1] : vector<16x16xf32> to vector<16xf32>
    %576 = vector.shape_cast %575 : vector<16xf32> to vector<16x1xf32>
    %cst_224 = arith.constant 0.000000e+00 : f32
    %577 = vector.broadcast %cst_224 : f32 to vector<16x1xf32>
    %578 = arith.subf %577, %576 : vector<16x1xf32>
    %579 = tpu.iota {dimensions = array<i32: 0>} : vector<16x1xi32>
    %580 = vector.broadcast %569 : i32 to vector<16x1xi32>
    %581 = arith.cmpi slt, %579, %580 : vector<16x1xi32>
    %cst_225 = arith.constant -1.000000e+30 : f32
    %582 = vector.broadcast %cst_225 : f32 to vector<16x1xf32>
    %583 = arith.select %581, %578, %582 : vector<16x1xi1>, vector<16x1xf32>
    %584 = vector.shape_cast %583 : vector<16x1xf32> to vector<1x16x1xf32>
    %cst_226 = arith.constant dense<0xFF800000> : vector<1xf32>
    %585 = vector.multi_reduction <maximumf>, %584, %cst_226 [1, 2] : vector<1x16x1xf32> to vector<1xf32>
    %586 = vector.shape_cast %585 : vector<1xf32> to vector<1x1x1xf32>
    %587 = vector.extract %586[0, 0, 0] : f32 from vector<1x1x1xf32>
    %588 = vector.broadcast %587 : f32 to vector<16x1xf32>
    %589 = arith.cmpf oeq, %583, %588 : vector<16x1xf32>
    %590 = arith.andi %589, %581 : vector<16x1xi1>
    %c15_i32_227 = arith.constant 15 : i32
    %591 = vector.broadcast %c15_i32_227 : i32 to vector<16x1xi32>
    %592 = arith.select %590, %579, %591 : vector<16x1xi1>, vector<16x1xi32>
    %593 = vector.shape_cast %592 : vector<16x1xi32> to vector<1x16x1xi32>
    %cst_228 = arith.constant dense<2147483647> : vector<1xi32>
    %594 = vector.multi_reduction <minsi>, %593, %cst_228 [1, 2] : vector<1x16x1xi32> to vector<1xi32>
    %595 = vector.shape_cast %594 : vector<1xi32> to vector<1x1x1xi32>
    %596 = vector.extract %595[0, 0, 0] : i32 from vector<1x1x1xi32>
    %597 = arith.index_cast %596 : i32 to index
    %c0_229 = arith.constant 0 : index
    %c0_230 = arith.constant 0 : index
    %598 = vector.load %arg14[%597, %c0_229, %c0_230] : memref<16x1x32xf32, #tpu.memory_space<vmem>>, vector<1x1x32xf32>
    %599 = vector.shape_cast %598 : vector<1x1x32xf32> to vector<1x32xf32>
    %c0_i32_231 = arith.constant 0 : i32
    %600 = arith.cmpi sgt, %569, %c0_i32_231 : i32
    %601 = math.tanh %599 : vector<1x32xf32>
    %cst_232 = arith.constant 0.000000e+00 : f32
    %602 = vector.broadcast %cst_232 : f32 to vector<1x32xf32>
    %603 = arith.select %600, %601, %602 : vector<1x32xf32>
    %604 = arith.mulf %562, %603 : vector<1x32xf32>
    %605 = arith.addf %567, %604 : vector<1x32xf32>
    %606 = math.tanh %605 : vector<1x32xf32>
    %607 = arith.mulf %561, %606 : vector<1x32xf32>
    %608 = arith.addi %5, %c6_i32 : i32
    %c16_i32_233 = arith.constant 16 : i32
    %c0_i32_234 = arith.constant 0 : i32
    %609 = arith.cmpi eq, %c16_i32_233, %c0_i32_234 : i32
    %c1_i32_235 = arith.constant 1 : i32
    %610 = arith.select %609, %c1_i32_235, %c16_i32_233 : i32
    %611 = arith.remsi %608, %610 : i32
    %c0_i32_236 = arith.constant 0 : i32
    %612 = arith.cmpi ne, %611, %c0_i32_236 : i32
    %c0_i32_237 = arith.constant 0 : i32
    %613 = arith.cmpi slt, %611, %c0_i32_237 : i32
    %c0_i32_238 = arith.constant 0 : i32
    %614 = arith.cmpi slt, %610, %c0_i32_238 : i32
    %615 = arith.xori %613, %614 : i1
    %616 = arith.andi %615, %612 : i1
    %617 = arith.addi %611, %610 : i32
    %618 = arith.select %616, %617, %611 : i32
    %619 = arith.index_cast %618 : i32 to index
    %c0_239 = arith.constant 0 : index
    %c0_240 = arith.constant 0 : index
    %620 = vector.load %arg13[%619, %c0_239, %c0_240] : memref<16x1x16xf32, #tpu.memory_space<vmem>>, vector<1x1x16xf32>
    %621 = vector.shape_cast %620 : vector<1x1x16xf32> to vector<1x16xf32>
    %622 = vector.shape_cast %548 : vector<1x16xf32> to vector<1x1x16xf32>
    tpu.vector_store %arg13[%619, %c0_239, %c0_240], %622 {strides = array<i32>} : memref<16x1x16xf32, #tpu.memory_space<vmem>>, vector<1x1x16xf32>,
    %623 = arith.index_cast %618 : i32 to index
    %c0_241 = arith.constant 0 : index
    %c0_242 = arith.constant 0 : index
    %624 = vector.load %arg14[%623, %c0_241, %c0_242] : memref<16x1x32xf32, #tpu.memory_space<vmem>>, vector<1x1x32xf32>
    %625 = vector.shape_cast %624 : vector<1x1x32xf32> to vector<1x32xf32>
    %626 = vector.shape_cast %605 : vector<1x32xf32> to vector<1x1x32xf32>
    tpu.vector_store %arg14[%623, %c0_241, %c0_242], %626 {strides = array<i32>} : memref<16x1x32xf32, #tpu.memory_space<vmem>>, vector<1x1x32xf32>,
    %cst_243 = arith.constant dense<0.000000e+00> : vector<1x5xf32>
    %627 = tpu.matmul %607, %9, %cst_243 {dimension_numbers = #tpu.dot_dimension_numbers<[1], [0], [0], [1], [0, 0, 1, 1], [], []>} : vector<1x32xf32>, vector<32x5xf32>, vector<1x5xf32> -> vector<1x5xf32>
    %628 = arith.addf %627, %10 : vector<1x5xf32>
    %cst_244 = arith.constant 0.000000e+00 : f32
    %629 = vector.broadcast %cst_244 : f32 to vector<1x27xf32>
    %630 = tpu.concatenate %628, %629 in 1 : vector<1x5xf32>, vector<1x27xf32> -> vector<1x32xf32>
    %631 = tpu.concatenate %607, %605, %559, %560, %561, %562, %603, %630 in 1 : vector<1x32xf32>, vector<1x32xf32>, vector<1x32xf32>, vector<1x32xf32>, vector<1x32xf32>, vector<1x32xf32>, vector<1x32xf32>, vector<1x32xf32> -> vector<1x256xf32>
    %632 = arith.index_cast %c6_i32 : i32 to index
    %c0_245 = arith.constant 0 : index
    %c0_246 = arith.constant 0 : index
    %633 = vector.load %arg12[%632, %c0_245, %c0_246] : memref<8x1x256xf32, #tpu.memory_space<vmem>>, vector<1x1x256xf32>
    %634 = vector.shape_cast %633 : vector<1x1x256xf32> to vector<1x256xf32>
    %635 = vector.shape_cast %631 : vector<1x256xf32> to vector<1x1x256xf32>
    tpu.vector_store %arg12[%632, %c0_245, %c0_246], %635 {strides = array<i32>} : memref<8x1x256xf32, #tpu.memory_space<vmem>>, vector<1x1x256xf32>,
    %c7_i32 = arith.constant 7 : i32
    %636 = arith.index_cast %c7_i32 : i32 to index
    %c0_247 = arith.constant 0 : index
    %637 = vector.load %arg2[%636, %c0_247] : memref<8x16xf32, #tpu.memory_space<vmem>>, vector<1x16xf32>
    %cst_248 = arith.constant dense<0.000000e+00> : vector<1x160xf32>
    %638 = tpu.matmul %637, %6, %cst_248 {dimension_numbers = #tpu.dot_dimension_numbers<[1], [0], [0], [1], [0, 0, 1, 1], [], []>} : vector<1x16xf32>, vector<16x160xf32>, vector<1x160xf32> -> vector<1x160xf32>
    %cst_249 = arith.constant dense<0.000000e+00> : vector<1x160xf32>
    %639 = tpu.matmul %607, %7, %cst_249 {dimension_numbers = #tpu.dot_dimension_numbers<[1], [0], [0], [1], [0, 0, 1, 1], [], []>} : vector<1x32xf32>, vector<32x160xf32>, vector<1x160xf32> -> vector<1x160xf32>
    %640 = arith.addf %638, %639 : vector<1x160xf32>
    %641 = arith.addf %640, %8 : vector<1x160xf32>
    %642 = vector.extract_strided_slice %641 {offsets = [0, 0], sizes = [1, 128], strides = [1, 1]} : vector<1x160xf32> to vector<1x128xf32>
    %643 = arith.negf %642 : vector<1x128xf32>
    %644 = math.exp %643 : vector<1x128xf32>
    %cst_250 = arith.constant 1.000000e+00 : f32
    %645 = vector.broadcast %cst_250 : f32 to vector<1x128xf32>
    %646 = arith.addf %645, %644 : vector<1x128xf32>
    %647 = arith.divf %645, %646 : vector<1x128xf32>
    %648 = vector.extract_strided_slice %647 {offsets = [0, 0], sizes = [1, 32], strides = [1, 1]} : vector<1x128xf32> to vector<1x32xf32>
    %649 = vector.extract_strided_slice %647 {offsets = [0, 32], sizes = [1, 32], strides = [1, 1]} : vector<1x128xf32> to vector<1x32xf32>
    %650 = vector.extract_strided_slice %647 {offsets = [0, 64], sizes = [1, 32], strides = [1, 1]} : vector<1x128xf32> to vector<1x32xf32>
    %651 = vector.extract_strided_slice %647 {offsets = [0, 96], sizes = [1, 32], strides = [1, 1]} : vector<1x128xf32> to vector<1x32xf32>
    %652 = vector.extract_strided_slice %641 {offsets = [0, 128], sizes = [1, 32], strides = [1, 1]} : vector<1x160xf32> to vector<1x32xf32>
    %653 = math.tanh %652 : vector<1x32xf32>
    %654 = arith.mulf %648, %605 : vector<1x32xf32>
    %655 = arith.mulf %649, %653 : vector<1x32xf32>
    %656 = arith.addf %654, %655 : vector<1x32xf32>
    %657 = arith.addi %4, %c7_i32 : i32
    %c16_i32_251 = arith.constant 16 : i32
    %658 = arith.minsi %657, %c16_i32_251 : i32
    %c0_252 = arith.constant 0 : index
    %c0_253 = arith.constant 0 : index
    %c0_254 = arith.constant 0 : index
    %659 = vector.load %arg13[%c0_252, %c0_253, %c0_254] : memref<16x1x16xf32, #tpu.memory_space<vmem>>, vector<16x1x16xf32>
    %660 = vector.shape_cast %659 : vector<16x1x16xf32> to vector<16x16xf32>
    %661 = vector.broadcast %637 : vector<1x16xf32> to vector<16x16xf32>
    %662 = arith.subf %660, %661 : vector<16x16xf32>
    %663 = arith.mulf %662, %662 : vector<16x16xf32>
    %cst_255 = arith.constant dense<0.000000e+00> : vector<16xf32>
    %664 = vector.multi_reduction <add>, %663, %cst_255 [1] : vector<16x16xf32> to vector<16xf32>
    %665 = vector.shape_cast %664 : vector<16xf32> to vector<16x1xf32>
    %cst_256 = arith.constant 0.000000e+00 : f32
    %666 = vector.broadcast %cst_256 : f32 to vector<16x1xf32>
    %667 = arith.subf %666, %665 : vector<16x1xf32>
    %668 = tpu.iota {dimensions = array<i32: 0>} : vector<16x1xi32>
    %669 = vector.broadcast %658 : i32 to vector<16x1xi32>
    %670 = arith.cmpi slt, %668, %669 : vector<16x1xi32>
    %cst_257 = arith.constant -1.000000e+30 : f32
    %671 = vector.broadcast %cst_257 : f32 to vector<16x1xf32>
    %672 = arith.select %670, %667, %671 : vector<16x1xi1>, vector<16x1xf32>
    %673 = vector.shape_cast %672 : vector<16x1xf32> to vector<1x16x1xf32>
    %cst_258 = arith.constant dense<0xFF800000> : vector<1xf32>
    %674 = vector.multi_reduction <maximumf>, %673, %cst_258 [1, 2] : vector<1x16x1xf32> to vector<1xf32>
    %675 = vector.shape_cast %674 : vector<1xf32> to vector<1x1x1xf32>
    %676 = vector.extract %675[0, 0, 0] : f32 from vector<1x1x1xf32>
    %677 = vector.broadcast %676 : f32 to vector<16x1xf32>
    %678 = arith.cmpf oeq, %672, %677 : vector<16x1xf32>
    %679 = arith.andi %678, %670 : vector<16x1xi1>
    %c15_i32_259 = arith.constant 15 : i32
    %680 = vector.broadcast %c15_i32_259 : i32 to vector<16x1xi32>
    %681 = arith.select %679, %668, %680 : vector<16x1xi1>, vector<16x1xi32>
    %682 = vector.shape_cast %681 : vector<16x1xi32> to vector<1x16x1xi32>
    %cst_260 = arith.constant dense<2147483647> : vector<1xi32>
    %683 = vector.multi_reduction <minsi>, %682, %cst_260 [1, 2] : vector<1x16x1xi32> to vector<1xi32>
    %684 = vector.shape_cast %683 : vector<1xi32> to vector<1x1x1xi32>
    %685 = vector.extract %684[0, 0, 0] : i32 from vector<1x1x1xi32>
    %686 = arith.index_cast %685 : i32 to index
    %c0_261 = arith.constant 0 : index
    %c0_262 = arith.constant 0 : index
    %687 = vector.load %arg14[%686, %c0_261, %c0_262] : memref<16x1x32xf32, #tpu.memory_space<vmem>>, vector<1x1x32xf32>
    %688 = vector.shape_cast %687 : vector<1x1x32xf32> to vector<1x32xf32>
    %c0_i32_263 = arith.constant 0 : i32
    %689 = arith.cmpi sgt, %658, %c0_i32_263 : i32
    %690 = math.tanh %688 : vector<1x32xf32>
    %cst_264 = arith.constant 0.000000e+00 : f32
    %691 = vector.broadcast %cst_264 : f32 to vector<1x32xf32>
    %692 = arith.select %689, %690, %691 : vector<1x32xf32>
    %693 = arith.mulf %651, %692 : vector<1x32xf32>
    %694 = arith.addf %656, %693 : vector<1x32xf32>
    %695 = math.tanh %694 : vector<1x32xf32>
    %696 = arith.mulf %650, %695 : vector<1x32xf32>
    %697 = arith.addi %5, %c7_i32 : i32
    %c16_i32_265 = arith.constant 16 : i32
    %c0_i32_266 = arith.constant 0 : i32
    %698 = arith.cmpi eq, %c16_i32_265, %c0_i32_266 : i32
    %c1_i32_267 = arith.constant 1 : i32
    %699 = arith.select %698, %c1_i32_267, %c16_i32_265 : i32
    %700 = arith.remsi %697, %699 : i32
    %c0_i32_268 = arith.constant 0 : i32
    %701 = arith.cmpi ne, %700, %c0_i32_268 : i32
    %c0_i32_269 = arith.constant 0 : i32
    %702 = arith.cmpi slt, %700, %c0_i32_269 : i32
    %c0_i32_270 = arith.constant 0 : i32
    %703 = arith.cmpi slt, %699, %c0_i32_270 : i32
    %704 = arith.xori %702, %703 : i1
    %705 = arith.andi %704, %701 : i1
    %706 = arith.addi %700, %699 : i32
    %707 = arith.select %705, %706, %700 : i32
    %708 = arith.index_cast %707 : i32 to index
    %c0_271 = arith.constant 0 : index
    %c0_272 = arith.constant 0 : index
    %709 = vector.load %arg13[%708, %c0_271, %c0_272] : memref<16x1x16xf32, #tpu.memory_space<vmem>>, vector<1x1x16xf32>
    %710 = vector.shape_cast %709 : vector<1x1x16xf32> to vector<1x16xf32>
    %711 = vector.shape_cast %637 : vector<1x16xf32> to vector<1x1x16xf32>
    tpu.vector_store %arg13[%708, %c0_271, %c0_272], %711 {strides = array<i32>} : memref<16x1x16xf32, #tpu.memory_space<vmem>>, vector<1x1x16xf32>,
    %712 = arith.index_cast %707 : i32 to index
    %c0_273 = arith.constant 0 : index
    %c0_274 = arith.constant 0 : index
    %713 = vector.load %arg14[%712, %c0_273, %c0_274] : memref<16x1x32xf32, #tpu.memory_space<vmem>>, vector<1x1x32xf32>
    %714 = vector.shape_cast %713 : vector<1x1x32xf32> to vector<1x32xf32>
    %715 = vector.shape_cast %694 : vector<1x32xf32> to vector<1x1x32xf32>
    tpu.vector_store %arg14[%712, %c0_273, %c0_274], %715 {strides = array<i32>} : memref<16x1x32xf32, #tpu.memory_space<vmem>>, vector<1x1x32xf32>,
    %cst_275 = arith.constant dense<0.000000e+00> : vector<1x5xf32>
    %716 = tpu.matmul %696, %9, %cst_275 {dimension_numbers = #tpu.dot_dimension_numbers<[1], [0], [0], [1], [0, 0, 1, 1], [], []>} : vector<1x32xf32>, vector<32x5xf32>, vector<1x5xf32> -> vector<1x5xf32>
    %717 = arith.addf %716, %10 : vector<1x5xf32>
    %cst_276 = arith.constant 0.000000e+00 : f32
    %718 = vector.broadcast %cst_276 : f32 to vector<1x27xf32>
    %719 = tpu.concatenate %717, %718 in 1 : vector<1x5xf32>, vector<1x27xf32> -> vector<1x32xf32>
    %720 = tpu.concatenate %696, %694, %648, %649, %650, %651, %692, %719 in 1 : vector<1x32xf32>, vector<1x32xf32>, vector<1x32xf32>, vector<1x32xf32>, vector<1x32xf32>, vector<1x32xf32>, vector<1x32xf32>, vector<1x32xf32> -> vector<1x256xf32>
    %721 = arith.index_cast %c7_i32 : i32 to index
    %c0_277 = arith.constant 0 : index
    %c0_278 = arith.constant 0 : index
    %722 = vector.load %arg12[%721, %c0_277, %c0_278] : memref<8x1x256xf32, #tpu.memory_space<vmem>>, vector<1x1x256xf32>
    %723 = vector.shape_cast %722 : vector<1x1x256xf32> to vector<1x256xf32>
    %724 = vector.shape_cast %720 : vector<1x256xf32> to vector<1x1x256xf32>
    tpu.vector_store %arg12[%721, %c0_277, %c0_278], %724 {strides = array<i32>} : memref<8x1x256xf32, #tpu.memory_space<vmem>>, vector<1x1x256xf32>,
    %c8_i32 = arith.constant 8 : i32
    return
  }
  func.func @transform_0(%arg0: i32, %arg1: memref<2xi32, #tpu.memory_space<smem>>) -> (i32, i32) {
    %c0_i32 = arith.constant 0 : i32
    %c0_i32_0 = arith.constant 0 : i32
    %c0_i32_1 = arith.constant 0 : i32
    return %c0_i32, %c0_i32_0 : i32, i32
  }
  func.func @transform_1(%arg0: i32, %arg1: memref<2xi32, #tpu.memory_space<smem>>) -> (i32, i32) {
    %c0_i32 = arith.constant 0 : i32
    %c0_i32_0 = arith.constant 0 : i32
    %c0_i32_1 = arith.constant 0 : i32
    return %c0_i32, %c0_i32_0 : i32, i32
  }
  func.func @transform_2(%arg0: i32, %arg1: memref<2xi32, #tpu.memory_space<smem>>) -> (i32, i32) {
    %c0_i32 = arith.constant 0 : i32
    %c0_i32_0 = arith.constant 0 : i32
    %c0_i32_1 = arith.constant 0 : i32
    return %c0_i32, %c0_i32_0 : i32, i32
  }
  func.func @transform_3(%arg0: i32, %arg1: memref<2xi32, #tpu.memory_space<smem>>) -> (i32, i32) {
    %c0_i32 = arith.constant 0 : i32
    %c0_i32_0 = arith.constant 0 : i32
    %c0_i32_1 = arith.constant 0 : i32
    return %c0_i32, %c0_i32_0 : i32, i32
  }
  func.func @transform_4(%arg0: i32, %arg1: memref<2xi32, #tpu.memory_space<smem>>) -> (i32, i32) {
    %c0_i32 = arith.constant 0 : i32
    %c0_i32_0 = arith.constant 0 : i32
    %c0_i32_1 = arith.constant 0 : i32
    return %c0_i32, %c0_i32_0 : i32, i32
  }
  func.func @transform_5(%arg0: i32, %arg1: memref<2xi32, #tpu.memory_space<smem>>) -> (i32, i32) {
    %c0_i32 = arith.constant 0 : i32
    %c0_i32_0 = arith.constant 0 : i32
    %c0_i32_1 = arith.constant 0 : i32
    return %c0_i32, %c0_i32_0 : i32, i32
  }
  func.func @transform_6(%arg0: i32, %arg1: memref<2xi32, #tpu.memory_space<smem>>) -> (i32, i32, i32) {
    %c0_i32 = arith.constant 0 : i32
    %c0_i32_0 = arith.constant 0 : i32
    %c0_i32_1 = arith.constant 0 : i32
    %c0_i32_2 = arith.constant 0 : i32
    return %c0_i32, %c0_i32_0, %c0_i32_1 : i32, i32, i32
  }
  func.func @transform_7(%arg0: i32, %arg1: memref<2xi32, #tpu.memory_space<smem>>) -> (i32, i32, i32) {
    %c0_i32 = arith.constant 0 : i32
    %c0_i32_0 = arith.constant 0 : i32
    %c0_i32_1 = arith.constant 0 : i32
    %c0_i32_2 = arith.constant 0 : i32
    return %c0_i32, %c0_i32_0, %c0_i32_1 : i32, i32, i32
  }
  func.func @transform_8(%arg0: i32, %arg1: memref<2xi32, #tpu.memory_space<smem>>) -> (i32, i32) {
    %c0_i32 = arith.constant 0 : i32
    %c0_i32_0 = arith.constant 0 : i32
    %c0_i32_1 = arith.constant 0 : i32
    return %c0_i32, %c0_i32_0 : i32, i32
  }
  func.func @transform_9(%arg0: i32, %arg1: memref<2xi32, #tpu.memory_space<smem>>) -> (i32, i32) {
    %c0_i32 = arith.constant 0 : i32
    %c0_i32_0 = arith.constant 0 : i32
    %c0_i32_1 = arith.constant 0 : i32
    return %c0_i32, %c0_i32_0 : i32, i32
  }
  func.func @transform_10(%arg0: i32, %arg1: memref<2xi32, #tpu.memory_space<smem>>) -> (i32, i32, i32) {
    %c0_i32 = arith.constant 0 : i32
    %c0_i32_0 = arith.constant 0 : i32
    %c0_i32_1 = arith.constant 0 : i32
    %c0_i32_2 = arith.constant 0 : i32
    return %c0_i32, %c0_i32_0, %c0_i32_1 : i32, i32, i32
  }
  func.func @transform_11(%arg0: i32, %arg1: memref<2xi32, #tpu.memory_space<smem>>) -> (i32, i32, i32) {
    %c0_i32 = arith.constant 0 : i32
    %c0_i32_0 = arith.constant 0 : i32
    %c0_i32_1 = arith.constant 0 : i32
    %c0_i32_2 = arith.constant 0 : i32
    return %c0_i32, %c0_i32_0, %c0_i32_1 : i32, i32, i32
  }
  func.func @transform_12(%arg0: i32, %arg1: memref<2xi32, #tpu.memory_space<smem>>) -> (i32, i32, i32) {
    %c0_i32 = arith.constant 0 : i32
    %c0_i32_0 = arith.constant 0 : i32
    %c0_i32_1 = arith.constant 0 : i32
    %c0_i32_2 = arith.constant 0 : i32
    return %c0_i32, %c0_i32_0, %c0_i32_1 : i32, i32, i32
  }
}

</mosaic_0001>

<bundles_post_ra>
// kernel: dndlstm_forward_scan.1
= control target key start
LH: loop header
LB: loop body
LE: loop exit
PB: predicated region body
PF: predicated region fallthrough
CT: control target
= control target key end

     0   :  { %s7404_s0 = inlined_call_operand.vmem [shape: s32[2], index: 0, kind: input, shape index: {}]   ;;  %s7405_s1 = inlined_call_operand.vmem [shape: f32[8,16], index: 1, kind: input, shape index: {}]   ;;  %s7406_s2 = inlined_call_operand.vmem [shape: f32[1,32], index: 2, kind: input, shape index: {}]   ;;  %s7407_s3 = inlined_call_operand.vmem [shape: f32[1,32], index: 3, kind: input, shape index: {}]   ;;  %s7408_s4 = inlined_call_operand.vmem [shape: f32[16,160], index: 4, kind: input, shape index: {}]   ;;  %s7409_s5 = inlined_call_operand.vmem [shape: f32[32,160], index: 5, kind: input, shape index: {}]   ;;  %s7410_s6 = inlined_call_operand.vmem [shape: f32[1,160], index: 6, kind: input, shape index: {}]   ;;  %s7411_s7 = inlined_call_operand.vmem [shape: f32[16,1,16], index: 7, kind: input, shape index: {}, may-alias: {7,12}]   ;;  %s7412_s8 = inlined_call_operand.vmem [shape: f32[16,1,32], index: 8, kind: input, shape index: {}, may-alias: {8,13}]   ;;  %s7413_s9 = inlined_call_operand.vmem [shape: f32[32,5], index: 9, kind: input, shape index: {}]   ;;  %s7414_s10 = inlined_call_operand.vmem [shape: f32[1,5], index: 10, kind: input, shape index: {}]   ;;  %s7415_s11 = inlined_call_operand.vmem [shape: f32[8,1,256], index: 11, kind: output, shape index: {0}]   ;;  %s7416_s12 = inlined_call_operand.vmem [shape: f32[16,1,16], index: 12, kind: output, shape index: {1}, may-alias: {7,12}]   ;;  %s7417_s13 = inlined_call_operand.vmem [shape: f32[16,1,32], index: 13, kind: output, shape index: {2}, may-alias: {8,13}]  }
   0x1   :  { %s19_s27 = sshll.u32 %s7404_s0, 4  ;;  %s20_s27 = int_to_ptr.vmem [resolvable:$true] %s19_s27 }
   0x2   :  { %s5496_s28 = scalar_lea.vmem %s20_s27, 16  ;;  %p5501_p1 = scmp.lt.s32.totalorder %s20_s27, %s20_s27 }
   0x3   :  { %p5497_p0 = scmp.ne.s32.totalorder %s20_s27, %s5496_s28  ;;  %p5502_p2 = scmp.lt.s32.totalorder %s5496_s28, %s5496_s28 }
   0x5   :  { %p5503_p3 = por %p5502_p2, %p5501_p1 }
   0x7   :  { %p5504_p4 = pnand %p5503_p3, %p5497_p0 }
   0x9   :  { %5507 = shalt.err (!%p5504_p4)  }
   0xa   :  { %s5510_s29 = smov [#allocation3]  }
   0xb   :  { %22 = dma.vmem_to_smem %s20_s27, 16, %s5510_s29, [#allocation2] }
   0xc   :  { %5508 = dma.done.wait [#allocation2], 16 }
   0xd   :  { %5509 = vsyncadd [#allocation2], 4294967280 }
   0xe   :  { %24 = sfence }
   0xf   :  { %v118_v0 = vld [vmem:[%s7409_s5 + $0x8] sm:$0xff]  ;;  %v120_v1 = vld [vmem:[%s7409_s5 + $0x18] sm:$0xff]  ;;  %v117_v2 = vld [vmem:[%s7409_s5] sm:$0xff]  ;;  %v7418_v3 = vlaneseq  ;;  %v7421_v8 = vmov 0.0   ;;  %vm61_vm0 = vcmask 122880   ;;  %vm134_vm1 = vcmask 261120  }
  0x10   :  { %v5600_v4 = vpack.c.bf16 %v120_v1, %v118_v0  ;;  %v119_v5 = vld [vmem:[%s7409_s5 + $0x10] sm:$0xff]  ;;  %v122_v6 = vld [vmem:[%s7409_s5 + $0x28] sm:$0xff]  ;;  %v124_v7 = vld [vmem:[%s7409_s5 + $0x38] sm:$0xff]  ;;  %202 = vmatprep.mubr.f32.mxu0 %v7421_v8  ;;  %v5512_v14 = vmov 1966171168   ;;  %vm209_vm2 = vcmask 130048  }
  0x11   :  { %v5612_v9 = vpack.c.bf16 %v119_v5, %v117_v2  ;;  %v5614_v10 = vpack.c.bf16 %v124_v7, %v122_v6  ;;  %v121_v11 = vld [vmem:[%s7409_s5 + $0x20] sm:$0xff]  ;;  %v123_v12 = vld [vmem:[%s7409_s5 + $0x30] sm:$0xff]  ;;  %v5623_v13 = vshrl.u32 %v7418_v3, 7  ;;  %v340_v15 = vunpack.c.l.s4 %v5512_v14  ;;  %v114_v16 = vld [vmem:[%s7408_s4 + $0x8] sm:$0xff]  ;;  %s5849_s30 = sld [smem:[#allocation3]]  ;;  %s5513_s16 = smov 32  }
  0x12   :  { %5217 = vmatprep.subr.bf16.mxu0 %v5600_v4  ;;  %v116_v17 = vld [vmem:[%s7408_s4 + $0x18] sm:$0xff]  ;;  %v113_v18 = vld [vmem:[%s7408_s4] sm:$0xff]  ;;  %v5636_v19 = vpack.c.bf16 %v123_v12, %v121_v11  ;;  %v115_v20 = vld [vmem:[%s7408_s4 + $0x10] sm:$0xff]  ;;  %vm94_vm5 = vcmask 253952   ;;  %s5514_s18 = smov 96   ;;  %s6015_s19 = sld [smem:[#allocation3 + $0x1]] }
  0x13   :  { %5219 = vmatpush1.bf16.msra.mxu0 %v5612_v9  ;;  %v5644_v21 = vld [vmem:[%s7405_s1] sm:$0x1]  ;;  %v5647_v22 = vsub.s32 0, %v5623_v13  ;;  %v341_v23 = vunpack.c.0.s8 %v340_v15  ;;  %v5653_v25 = vpack.c.bf16 %v116_v17, %v114_v16  ;;  %v46_v26 = vld [vmem:[%s7411_s7 + $0x1] sm:$0x1]  ;;  %v5719_v38 = vpack.c.bf16 %v115_v20, %v113_v18 }
  0x14   :  { %v45_v24 = vld [vmem:[%s7411_s7] sm:$0x1]  ;;  %5221 = vmatprep.subr.bf16.mxu0 %v5614_v10  ;;  %v47_v27 = vld [vmem:[%s7411_s7 + $0x2] sm:$0x1]  ;;  %v48_v28 = vld [vmem:[%s7411_s7 + $0x3] sm:$0x1] }
  0x15   :  { %62 = vst.msk [vmem:[%s7416_s12] sm:$0x1] %vm61_vm0, %v45_v24  ;;  %v131_v29 = vld [vmem:[%s7406_s2] sm:$0x1]  ;;  %v336_v30 = vrot.slane %v5644_v21, %v5647_v22  ;;  %v5674_v31 = vsub.s32 %v341_v23, %v5623_v13  ;;  %vm5517_vm15 = vmmov 0  }
  0x16   :  { %5136 = vmatprep.mubr.msk.f32.mxu1 %vm5517_vm15, %v7421_v8 }
  0x17   :  { %5223 = vmatpush1.bf16.msra.mxu0 %v5636_v19  ;;  %v338_v39 = vcombine.high %v336_v30, %v336_v30  ;;  %v345_v40 = vrot.slane %v336_v30, %v5674_v31  ;;  %p315_p5 = scmp.lt.s32.totalorder %s5849_s30, 16  ;;  %p4972_p6 = scmp.gt.s32.totalorder %s5849_s30, 0 }
  0x18   :  { %5225 = vmatprep.subr.bf16.mxu0 %v5653_v25  ;;  %s615_s20 = ssub.s32 0, %s6015_s19  ;;  %p614_p7 = scmp.lt.s32.totalorder %s6015_s19, 0 }
  0x19   :  { %v352_v47 = vrot.slane %v338_v39, %v5674_v31  ;;  %v353_v48 = vcombine.high %v345_v40, %v345_v40  ;;  %v361_v49 = vrot.slane %v345_v40, %v5674_v31  ;;  %s316_s14 = scalar_select %p315_p5, %s5849_s30, 16 }
  0x1a   :  { %4969 = vmatmul.mubr.msk.f32.vlgmr.msra.gmra.mrb[0].mxu0 %vm134_vm1, %v131_v29  ;;  %s5073_s17 = scalar_select %p4972_p6, 1, 0 }
  0x1b   :  { %5227 = vmatpush1.bf16.msra.mxu0 %v5719_v38  ;;  %277 = vmatprep.mubr.f32.mxu0 %v7421_v8  ;;  %v354_v50 = vcombine.high %v352_v47, %v352_v47  ;;  %v368_v51 = vrot.slane %v352_v47, %v5674_v31  ;;  %v375_v52 = vrot.slane %v353_v48, %v5674_v31  ;;  %s4977_s21 = smin.u32 %s6015_s19, %s615_s20 }
  0x1c   :  { %v49_v32 = vld [vmem:[%s7411_s7 + $0x4] sm:$0x1]  ;;  %v50_v33 = vld [vmem:[%s7411_s7 + $0x5] sm:$0x1]  ;;  %v51_v34 = vld [vmem:[%s7411_s7 + $0x6] sm:$0x1]  ;;  %v383_v57 = vcombine.high %v361_v49, %v361_v49 }
  0x1d   :  { %63 = vst.msk [vmem:[%s7416_s12 + $0x1] sm:$0x1] %vm61_vm0, %v46_v26  ;;  %64 = vst.msk [vmem:[%s7416_s12 + $0x2] sm:$0x1] %vm61_vm0, %v47_v27  ;;  %v317_v53 = vld [vmem:[%s7416_s12] sm:$0x1]  ;;  %v382_v59 = vrot.slane %v354_v50, %v5674_v31  ;;  %v384_v63 = vcombine.high %v368_v51, %v368_v51  ;;  %v385_v0 = vcombine.high %v375_v52, %v375_v52 }
  0x1e   :  { %65 = vst.msk [vmem:[%s7416_s12 + $0x3] sm:$0x1] %vm61_vm0, %v48_v28  ;;  %v395_v58 = vsub.f32 %v317_v53, %v361_v49  ;;  %s617_s22 = sand.u32 15, %s4977_s21  }
  0x1f   :  { %v386_v12 = vcombine.high %v382_v59, %v382_v59  ;;  %s618_s4 = ssub.s32 0, %s617_s22 }
  0x20   :  { %v411_v7 = vmul.f32 %v395_v58, %v395_v58  ;;  %s7531_s4 = smov (!%p614_p7, %s618_s4), %s617_s22 }
  0x21   :  { %p4979_p8 = scmp.lt.s32.totalorder %s7531_s4, 0  ;;  %s624_s23 = sadd.s32 16, %s7531_s4 }
  0x22   :  { %4970 = vmatmul.mubr.msk.f32.vlgmr.msra.gmra.mrb[0].mxu0 %vm209_vm2, %v5644_v21 }
  0x23   :  { %s7533_s23 = smov (!%p4979_p8, %s624_s23), %s7531_s4  ;;  %5147 = vmatprep.mubr.msk.f32.mxu0 %vm5517_vm15, %v7421_v8 }
  0x24   :  { %v318_v54 = vld [vmem:[%s7416_s12 + $0x1] sm:$0x1]  ;;  %v319_v55 = vld [vmem:[%s7416_s12 + $0x2] sm:$0x1]  ;;  %s628_s28 = scalar_lea.vmem %s7417_s13, %s7533_s23 }
  0x25   :  { %v52_v35 = vld [vmem:[%s7411_s7 + $0x7] sm:$0x1]  ;;  %v320_v56 = vld [vmem:[%s7416_s12 + $0x3] sm:$0x1]  ;;  %v396_v1 = vsub.f32 %v318_v54, %v375_v52  ;;  %v397_v5 = vsub.f32 %v319_v55, %v383_v57 }
  0x26   :  { %66 = vst.msk [vmem:[%s7416_s12 + $0x4] sm:$0x1] %vm61_vm0, %v49_v32  ;;  %67 = vst.msk [vmem:[%s7416_s12 + $0x5] sm:$0x1] %vm61_vm0, %v50_v33  ;;  %v398_v14 = vsub.f32 %v320_v56, %v385_v0 }
  0x27   :  { %68 = vst.msk [vmem:[%s7416_s12 + $0x6] sm:$0x1] %vm61_vm0, %v51_v34  ;;  %v412_v23 = vmul.f32 %v396_v1, %v396_v1  ;;  %v413_v24 = vmul.f32 %v397_v5, %v397_v5 }
  0x28   :  { %v414_v30 = vmul.f32 %v398_v14, %v398_v14 }
  0x2d   :  { %v321_v60 = vld [vmem:[%s7416_s12 + $0x4] sm:$0x1]  ;;  %v322_v61 = vld [vmem:[%s7416_s12 + $0x5] sm:$0x1] }
  0x2e   :  { %v53_v36 = vld [vmem:[%s7411_s7 + $0x8] sm:$0x1]  ;;  %v54_v37 = vld [vmem:[%s7411_s7 + $0x9] sm:$0x1]  ;;  %v323_v62 = vld [vmem:[%s7416_s12 + $0x6] sm:$0x1]  ;;  %v399_v6 = vsub.f32 %v321_v60, %v368_v51  ;;  %v400_v15 = vsub.f32 %v322_v61, %v382_v59 }
  0x2f   :  { %69 = vst.msk [vmem:[%s7416_s12 + $0x7] sm:$0x1] %vm61_vm0, %v52_v35  ;;  %v401_v16 = vsub.f32 %v323_v62, %v384_v63 }
  0x30   :  { %v415_v26 = vmul.f32 %v399_v6, %v399_v6  ;;  %v416_v32 = vmul.f32 %v400_v15, %v400_v15 }
  0x31   :  { %v417_v33 = vmul.f32 %v401_v16, %v401_v16 }
  0x36   :  { %v55_v41 = vld [vmem:[%s7411_s7 + $0xa] sm:$0x1]  ;;  %v56_v42 = vld [vmem:[%s7411_s7 + $0xb] sm:$0x1]  ;;  %v57_v43 = vld [vmem:[%s7411_s7 + $0xc] sm:$0x1] }
  0x37   :  { %70 = vst.msk [vmem:[%s7416_s12 + $0x8] sm:$0x1] %vm61_vm0, %v53_v36  ;;  %71 = vst.msk [vmem:[%s7416_s12 + $0x9] sm:$0x1] %vm61_vm0, %v54_v37  ;;  %v324_v2 = vld [vmem:[%s7416_s12 + $0x7] sm:$0x1]  ;;  %v443_v37 = vcombine.low %v411_v7, %v412_v23 }
  0x38   :  { %v402_v29 = vsub.f32 %v324_v2, %v386_v12 }
  0x3e   :  { %v58_v44 = vld [vmem:[%s7411_s7 + $0xd] sm:$0x1]  ;;  %v59_v45 = vld [vmem:[%s7411_s7 + $0xe] sm:$0x1]  ;;  %v60_v46 = vld [vmem:[%s7411_s7 + $0xf] sm:$0x1] }
  0x3f   :  { %72 = vst.msk [vmem:[%s7416_s12 + $0xa] sm:$0x1] %vm61_vm0, %v55_v41  ;;  %73 = vst.msk [vmem:[%s7416_s12 + $0xb] sm:$0x1] %vm61_vm0, %v56_v42  ;;  %v325_v11 = vld [vmem:[%s7416_s12 + $0x8] sm:$0x1]  ;;  %v418_v42 = vmul.f32 %v402_v29, %v402_v29 }
  0x40   :  { %74 = vst.msk [vmem:[%s7416_s12 + $0xc] sm:$0x1] %vm61_vm0, %v57_v43  ;;  %75 = vst.msk [vmem:[%s7416_s12 + $0xd] sm:$0x1] %vm61_vm0, %v58_v44  ;;  %v326_v17 = vld [vmem:[%s7416_s12 + $0x9] sm:$0x1]  ;;  %v403_v28 = vsub.f32 %v325_v11, %v361_v49  ;;  %v444_v43 = vcombine.low %v413_v24, %v414_v30  ;;  %v445_v44 = vcombine.low %v415_v26, %v416_v32 }
  0x41   :  { %76 = vst.msk [vmem:[%s7416_s12 + $0xe] sm:$0x1] %vm61_vm0, %v59_v45  ;;  %77 = vst.msk [vmem:[%s7416_s12 + $0xf] sm:$0x1] %vm61_vm0, %v60_v46  ;;  %v404_v39 = vsub.f32 %v326_v17, %v375_v52  ;;  %v453_v46 = vrot.slane %v443_v37, %v5674_v31  ;;  %v446_v50 = vcombine.low %v417_v33, %v418_v42  ;;  %v5854_v30 = vadd.s32 8, %v5623_v13 }
  0x42   :  { %v460_v53 = vrot.slane %v444_v43, %v5674_v31  ;;  %v467_v54 = vrot.slane %v445_v44, %v5674_v31  ;;  %v419_v55 = vmul.f32 %v403_v28, %v403_v28  ;;  %v554_v28 = vstv %s316_s14  ;;  %v81_v43 = vld [vmem:[%s7412_s8 + $0x3] sm:$0x1]  ;;  %v82_v44 = vld [vmem:[%s7412_s8 + $0x4] sm:$0x1]  ;;  %s626_s14 = scalar_lea.vmem %s7416_s12, %s7533_s23 }
  0x43   :  { %v420_v56 = vmul.f32 %v404_v39, %v404_v39  ;;  %v474_v60 = vrot.slane %v446_v50, %v5674_v31  ;;  %vm5857_vm3 = vcmp.lt.s32.totalorder %v5623_v13, %v554_v28  ;;  %vm5862_vm4 = vcmp.lt.s32.totalorder %v5854_v30, %v554_v28  ;;  %v78_v39 = vld [vmem:[%s7412_s8] sm:$0x1]  ;;  %v87_v50 = vld [vmem:[%s7412_s8 + $0x9] sm:$0x1] }
  0x44   :  { %v475_v61 = vcombine.low %v453_v46, %v460_v53  ;;  %v83_v46 = vld [vmem:[%s7412_s8 + $0x5] sm:$0x1]  ;;  %v88_v53 = vld [vmem:[%s7412_s8 + $0xa] sm:$0x1]  ;;  %v591_v28 = vstv %s5073_s17 }
  0x45   :  { %v492_v1 = vcombine.low %v419_v55, %v420_v56  ;;  %v89_v55 = vld [vmem:[%s7412_s8 + $0xb] sm:$0x1]  ;;  %v90_v56 = vld [vmem:[%s7412_s8 + $0xc] sm:$0x1]  ;;  %vm592_vm14 = vcmp.eq.s32.totalorder %v591_v28, 1 }
  0x46   :  { %v327_v18 = vld [vmem:[%s7416_s12 + $0xa] sm:$0x1]  ;;  %v328_v20 = vld [vmem:[%s7416_s12 + $0xb] sm:$0x1]  ;;  %v483_v2 = vrot.slane %v475_v61, %v5674_v31 }
  0x47   :  { %v329_v27 = vld [vmem:[%s7416_s12 + $0xc] sm:$0x1]  ;;  %v330_v34 = vld [vmem:[%s7416_s12 + $0xd] sm:$0x1]  ;;  %v405_v40 = vsub.f32 %v327_v18, %v383_v57  ;;  %v406_v41 = vsub.f32 %v328_v20, %v385_v0  ;;  %v502_v7 = vrot.slane %v492_v1, %v5674_v31  ;;  %v291_v1 = vsub.s32 1, %v5623_v13 }
  0x48   :  { %v331_v35 = vld [vmem:[%s7416_s12 + $0xe] sm:$0x1]  ;;  %v332_v36 = vld [vmem:[%s7416_s12 + $0xf] sm:$0x1]  ;;  %v407_v45 = vsub.f32 %v329_v27, %v368_v51  ;;  %v408_v47 = vsub.f32 %v330_v34, %v382_v59 }
  0x49   :  { %v409_v48 = vsub.f32 %v331_v35, %v384_v63  ;;  %v410_v49 = vsub.f32 %v332_v36, %v386_v12  ;;  %v421_v58 = vmul.f32 %v405_v40, %v405_v40  ;;  %v422_v52 = vmul.f32 %v406_v41, %v406_v41  ;;  %v79_v40 = vld [vmem:[%s7412_s8 + $0x1] sm:$0x1]  ;;  %v80_v41 = vld [vmem:[%s7412_s8 + $0x2] sm:$0x1]  ;;  %627 = vst.msk [vmem:[%s626_s14] sm:$0x1] %vm61_vm0, %v5644_v21 }
  0x4a   :  { %v423_v57 = vmul.f32 %v407_v45, %v407_v45  ;;  %v424_v62 = vmul.f32 %v408_v47, %v408_v47  ;;  %v476_v63 = vcombine.low %v467_v54, %v474_v60  ;;  %v84_v47 = vld [vmem:[%s7412_s8 + $0x6] sm:$0x1]  ;;  %s1813_s14 = sadd.s32 2, %s6015_s19 }
  0x4b   :  { %v425_v51 = vmul.f32 %v409_v48, %v409_v48  ;;  %v426_v0 = vmul.f32 %v410_v49, %v410_v49  ;;  %v493_v59 = vcombine.low %v421_v58, %v422_v52  ;;  %v85_v48 = vld [vmem:[%s7412_s8 + $0x7] sm:$0x1]  ;;  %v86_v49 = vld [vmem:[%s7412_s8 + $0x8] sm:$0x1]  ;;  %v91_v58 = vld [vmem:[%s7412_s8 + $0xd] sm:$0x1] }
  0x4c   :  { %v494_v5 = vcombine.low %v423_v57, %v424_v62  ;;  %v490_v12 = vrot.slane %v476_v63, %v5674_v31  ;;  %v92_v52 = vld [vmem:[%s7412_s8 + $0xe] sm:$0x1]  ;;  %v93_v57 = vld [vmem:[%s7412_s8 + $0xf] sm:$0x1]  ;;  %s1815_s15 = ssub.s32 0, %s1813_s14  ;;  %p1814_p13 = scmp.lt.s32.totalorder %s1813_s14, 0 }
  0x4d   :  { %v495_v6 = vcombine.low %v425_v51, %v426_v0  ;;  %v509_v11 = vrot.slane %v493_v59, %v5674_v31  ;;  %95 = vst.msk [vmem:[%s7417_s13] sm:$0x1] %vm94_vm5, %v78_v39  ;;  %96 = vst.msk [vmem:[%s7417_s13 + $0x1] sm:$0x1] %vm94_vm5, %v79_v40  ;;  %v125_v59 = vld [vmem:[%s7410_s6] sm:$0x3] }
  0x4e   :  { %v516_v14 = vrot.slane %v494_v5, %v5674_v31  ;;  %v491_v17 = vcombine.low %v483_v2, %v490_v12  ;;  %97 = vst.msk [vmem:[%s7417_s13 + $0x2] sm:$0x1] %vm94_vm5, %v80_v41  ;;  %98 = vst.msk [vmem:[%s7417_s13 + $0x3] sm:$0x1] %vm94_vm5, %v81_v43  ;;  %v5986_v63 = vrot.slane %v125_v59, %v291_v1 }
  0x4f   :  { %v523_v15 = vrot.slane %v495_v6, %v5674_v31  ;;  %v524_v16 = vcombine.low %v502_v7, %v509_v11  ;;  %99 = vst.msk [vmem:[%s7417_s13 + $0x4] sm:$0x1] %vm94_vm5, %v82_v44  ;;  %100 = vst.msk [vmem:[%s7417_s13 + $0x5] sm:$0x1] %vm94_vm5, %v83_v46  ;;  %v132_v44 = vld [vmem:[%s7407_s3] sm:$0x1]  ;;  %s5002_s3 = smin.u32 %s1815_s15, %s1813_s14 }
  0x50   :  { %v543_v23 = vsel %vm209_vm2, %v491_v17, 0.0  ;;  %101 = vst.msk [vmem:[%s7417_s13 + $0x6] sm:$0x1] %vm94_vm5, %v84_v47  ;;  %102 = vst.msk [vmem:[%s7417_s13 + $0x7] sm:$0x1] %vm94_vm5, %v85_v48 }
  0x51   :  { %v525_v18 = vcombine.low %v516_v14, %v523_v15  ;;  %v532_v20 = vrot.slane %v524_v16, %v5674_v31  ;;  %544 = vadd.xlane.f32.xlu0 %v543_v23  ;;  %103 = vst.msk [vmem:[%s7417_s13 + $0x8] sm:$0x1] %vm94_vm5, %v86_v49  ;;  %104 = vst.msk [vmem:[%s7417_s13 + $0x9] sm:$0x1] %vm94_vm5, %v87_v50  ;;  %v6036_v50 = vld [vmem:[%s7405_s1 + $0x1] sm:$0x1] }
  0x52   :  { %105 = vst.msk [vmem:[%s7417_s13 + $0xa] sm:$0x1] %vm94_vm5, %v88_v53  ;;  %106 = vst.msk [vmem:[%s7417_s13 + $0xb] sm:$0x1] %vm94_vm5, %v89_v55  ;;  %v941_v53 = vrot.slane %v6036_v50, %v5647_v22  ;;  %v933_v1 = vld [vmem:[%s7416_s12 + $0xb] sm:$0x1] }
  0x53   :  { %v539_v24 = vrot.slane %v525_v18, %v5674_v31  ;;  %107 = vst.msk [vmem:[%s7417_s13 + $0xc] sm:$0x1] %vm94_vm5, %v90_v56  ;;  %108 = vst.msk [vmem:[%s7417_s13 + $0xd] sm:$0x1] %vm94_vm5, %v91_v58  ;;  %v922_v28 = vld [vmem:[%s7416_s12] sm:$0x1] }
  0x54   :  { %109 = vst.msk [vmem:[%s7417_s13 + $0xe] sm:$0x1] %vm94_vm5, %v92_v52  ;;  %110 = vst.msk [vmem:[%s7417_s13 + $0xf] sm:$0x1] %vm94_vm5, %v93_v57  ;;  %v950_v55 = vrot.slane %v941_v53, %v5674_v31 }
  0x55   :  { %v540_v26 = vcombine.low %v532_v20, %v539_v24 }
  0x56   :  { %v958_v58 = vcombine.high %v950_v55, %v950_v55  ;;  %v966_v52 = vrot.slane %v950_v55, %v5674_v31 }
  0x57   :  { %v546_v27 = vsel %vm209_vm2, %v540_v26, 0.0 }
  0x58   :  { %547 = vadd.xlane.f32.xlu0 %v546_v27  ;;  %v6001_v27 = vrot.slane %v125_v59, %v5647_v22  ;;  %v934_v59 = vld [vmem:[%s7416_s12 + $0xc] sm:$0x1] }
  0xde   :  { %v545_v29 = vpop.xlane.xlu0 %544 }
  0xdf   :  { %v549_v32 = vsub.f32 0.0, %v545_v29 }
  0xe1   :  { %v557_v36 = vsel %vm5857_vm3, %v549_v32, -1e+30 }
  0xe5   :  { %v548_v35 = vpop.xlane.xlu0 %547 }
  0xe6   :  { %v550_v37 = vsub.f32 0.0, %v548_v35 }
  0xe8   :  { %v558_v42 = vsel %vm5862_vm4, %v550_v37, -1e+30 }
  0xe9   :  { %v559_v45 = vmax.f32 %v557_v36, %v558_v42 }
  0xeb   :  { %v560_v54 = vrot.slane %v559_v45, 4 }
  0xed   :  { %v561_v60 = vmax.f32 %v559_v45, %v560_v54  ;;  %v943_v54 = vcombine.high %v941_v53, %v941_v53  ;;  %v929_v53 = vld [vmem:[%s7416_s12 + $0x7] sm:$0x1] }
  0xef   :  { %v562_v61 = vrot.slane %v561_v60, 2  ;;  %v957_v56 = vrot.slane %v943_v54, %v5674_v31  ;;  %v1000_v54 = vsub.f32 %v922_v28, %v966_v52 }
  0xf1   :  { %v563_v62 = vmax.f32 %v561_v60, %v562_v61  ;;  %v959_v57 = vcombine.high %v957_v56, %v957_v56  ;;  %v973_v21 = vrot.slane %v957_v56, %v5674_v31  ;;  %v980_v60 = vrot.slane %v958_v58, %v5674_v31 }
  0xf2   :  { %v988_v61 = vcombine.high %v966_v52, %v966_v52 }
  0xf3   :  { %v564_v51 = vrot.slane %v563_v62, 1 }
  0xf5   :  { %v565_v0 = vmax.f32 %v563_v62, %v564_v51  ;;  %v279_v2 = vpop.f32.mrb[0].mxu0  ;;  %v930_v62 = vld [vmem:[%s7416_s12 + $0x8] sm:$0x1]  ;;  %v931_v51 = vld [vmem:[%s7416_s12 + $0x9] sm:$0x1] }
  0xf6   :  { %v281_v5 = vpop.f32.mrb[1].mxu0  ;;  %v295_v29 = vadd.f32 %v6001_v27, %v279_v2  ;;  %v935_v2 = vld [vmem:[%s7416_s12 + $0xd] sm:$0x1] }
  0xf7   :  { %5376 = vpush %v565_v0  ;;  %v296_v6 = vadd.f32 %v5986_v63, %v281_v5  ;;  %v932_v0 = vld [vmem:[%s7416_s12 + $0xa] sm:$0x1]  ;;  %v987_v5 = vrot.slane %v959_v57, %v5674_v31 }
  0xf8   :  { %v4971_v33 = vmul.f32 -1.442695, %v295_v29  ;;  %v923_v29 = vld [vmem:[%s7416_s12 + $0x1] sm:$0x1] }
  0xf9   :  { %5416 = vtanh.f32 %v296_v6  ;;  %v989_v6 = vcombine.high %v973_v21, %v973_v21  ;;  %v1001_v55 = vsub.f32 %v923_v29, %v980_v60 }
 0x103   :  { %v5417_v7 = vpop.eup %5416 }
 0x104   :  { %306 = vrot.lane.b32.xlu1 %v5417_v7, %s5513_s16  ;;  %v990_v7 = vcombine.high %v980_v60, %v980_v60 }
 0x128   :  { %s5377_s5 = spop %5376 }
 0x129   :  { %v567_v11 = vstv %s5377_s5  ;;  %s1216_s5 = sadd.s32 1, %s6015_s19 }
 0x12a   :  { %vm568_vm6 = vcmp.eq.f32.partialorder %v557_v36, %v567_v11  ;;  %vm569_vm7 = vcmp.eq.f32.partialorder %v558_v42, %v567_v11  ;;  %p1217_p9 = scmp.lt.s32.totalorder %s1216_s5, 0  ;;  %v1008_v11 = vsub.f32 %v930_v62, %v966_v52 }
 0x12b   :  { %vm570_vm8 = vmand %vm568_vm6, %vm5857_vm3 }
 0x12c   :  { %vm571_vm9 = vmand %vm569_vm7, %vm5862_vm4  ;;  %v572_v12 = vsel %vm570_vm8, %v5623_v13, 15 }
 0x12d   :  { %v573_v14 = vsel %vm571_vm9, %v5854_v30, 15 }
 0x12e   :  { %vm574_vm10 = vcmp.lt.s32.totalorder %v572_v12, %v573_v14 }
 0x12f   :  { %v575_v15 = vsel %vm574_vm10, %v572_v12, %v573_v14  ;;  %v936_v14 = vld [vmem:[%s7416_s12 + $0xe] sm:$0x1] }
 0x130   :  { %v576_v16 = vrot.slane %v575_v15, 4 }
 0x132   :  { %vm577_vm11 = vcmp.lt.s32.totalorder %v575_v15, %v576_v16 }
 0x133   :  { %v578_v17 = vsel %vm577_vm11, %v575_v15, %v576_v16  ;;  %v937_v15 = vld [vmem:[%s7416_s12 + $0xf] sm:$0x1]  ;;  %v1009_v16 = vsub.f32 %v931_v51, %v980_v60  ;;  %v1016_v60 = vmul.f32 %v1000_v54, %v1000_v54  ;;  %v7419_v54 = vmov 0.0|0.0  }
 0x134   :  { %v579_v18 = vrot.slane %v578_v17, 2  ;;  %5228 = vmatprep.subr.bf16.mxu1 %v7419_v54  ;;  %5246 = vmatprep.subr.bf16.mxu0 %v7419_v54 }
 0x136   :  { %vm580_vm12 = vcmp.lt.s32.totalorder %v578_v17, %v579_v18 }
 0x137   :  { %v581_v20 = vsel %vm580_vm12, %v578_v17, %v579_v18  ;;  %v1010_v17 = vsub.f32 %v932_v0, %v988_v61  ;;  %v1012_v18 = vsub.f32 %v934_v59, %v973_v21 }
 0x138   :  { %v582_v23 = vrot.slane %v581_v20, 1 }
 0x13a   :  { %vm583_vm13 = vcmp.lt.s32.totalorder %v581_v20, %v582_v23 }
 0x13b   :  { %v584_v24 = vsel %vm583_vm13, %v581_v20, %v582_v23  ;;  %v991_v20 = vcombine.high %v987_v5, %v987_v5  ;;  %v1011_v23 = vsub.f32 %v933_v1, %v990_v7 }
 0x13c   :  { %5378 = vpush %v584_v24  ;;  %v1013_v24 = vsub.f32 %v935_v2, %v987_v5 }
 0x13d   :  { %v1007_v52 = vsub.f32 %v929_v53, %v991_v20  ;;  %v128_v53 = vld [vmem:[%s7413_s9 + $0x10] sm:$0xff] }
 0x16d   :  { %s5379_s6 = spop %5378 }
 0x16e   :  { %s586_s2 = scalar_lea.vmem %s7417_s13, %s5379_s6  ;;  %s1218_s6 = ssub.s32 0, %s1216_s5 }
 0x16f   :  { %v587_v26 = vld [vmem:[%s586_s2] sm:$0x1]  ;;  %s4989_s0 = smin.u32 %s1218_s6, %s1216_s5  ;;  %s5515_s6 = smov 64  }
 0x170   :  { %5418 = vtanh.f32 %v587_v26  ;;  %s1220_s7 = sand.u32 15, %s4989_s0   ;;  %v1014_v26 = vsub.f32 %v936_v14, %v989_v6  ;;  %s1817_s5 = sand.u32 15, %s5002_s3  }
 0x171   :  { %5420 = vpow2.f32 %v4971_v33  ;;  %s1221_s2 = ssub.s32 0, %s1220_s7  ;;  %v1025_v33 = vmul.f32 %v1009_v16, %v1009_v16  ;;  %s1818_s0 = ssub.s32 0, %s1817_s5 }
 0x172   :  { %s7535_s2 = smov (!%p1217_p9, %s1221_s2), %s1220_s7  ;;  %s7539_s0 = smov (!%p1814_p13, %s1818_s0), %s1817_s5 }
 0x173   :  { %p4991_p10 = scmp.lt.s32.totalorder %s7535_s2, 0  ;;  %s1227_s17 = sadd.s32 16, %s7535_s2 }
 0x174   :  { %p5004_p0 = scmp.lt.s32.totalorder %s7539_s0, 0 }
 0x175   :  { %s7537_s17 = smov (!%p4991_p10, %s1227_s17), %s7535_s2  ;;  %s1824_s2 = sadd.s32 16, %s7539_s0 }
 0x176   :  { %v307_v40 = vpop.permute.xlu1 %306  ;;  %s1229_s4 = scalar_lea.vmem %s7416_s12, %s7537_s17  ;;  %s1231_s21 = scalar_lea.vmem %s7417_s13, %s7537_s17 }
 0x177   :  { %s7541_s2 = smov (!%p5004_p0, %s1824_s2), %s7539_s0 }
 0x178   :  { %s1828_s15 = scalar_lea.vmem %s7417_s13, %s7541_s2 }
 0x17a   :  { %v5419_v32 = vpop.eup %5418 }
 0x17b   :  { %v593_v34 = vsel %vm592_vm14, %v5419_v32, 0.0  ;;  %v5421_v36 = vpop.eup %5420  ;;  %v1024_v32 = vmul.f32 %v1008_v11, %v1008_v11 }
 0x17c   :  { %v6005_v35 = vrot.slane %v593_v34, %v5647_v22  ;;  %v300_v37 = vadd.f32 1.0, %v5421_v36  ;;  %v1026_v34 = vmul.f32 %v1010_v17, %v1010_v17  ;;  %v1028_v36 = vmul.f32 %v1012_v18, %v1012_v18 }
 0x17e   :  { %7447 = vst [vmem:[#allocation5_spill] sm:$0xff] %v6005_v35  ;;  %599 = vrot.lane.b32.xlu1 %v6005_v35, %s5514_s18  ;;  %5422 = vrcp.f32 %v300_v37  ;;  %v924_v37 = vld [vmem:[%s7416_s12 + $0x2] sm:$0x1] }
 0x17f   :  { %v1002_v56 = vsub.f32 %v924_v37, %v988_v61  ;;  %v1017_v61 = vmul.f32 %v1001_v55, %v1001_v55 }
 0x188   :  { %v6009_v39 = vpop.eup %5422 }
 0x189   :  { %7448 = vst [vmem:[#allocation6_spill] sm:$0xff] %v6009_v39  ;;  %v309_v41 = vmul.f32 %v6009_v39, %v307_v40  ;;  %v304_v46 = vmul.f32 %v6009_v39, %v132_v44  ;;  %v925_v40 = vld [vmem:[%s7416_s12 + $0x3] sm:$0x1]  ;;  %v1030_v44 = vmul.f32 %v1014_v26, %v1014_v26  ;;  %v1023_v26 = vmul.f32 %v1007_v52, %v1007_v52 }
 0x18a   :  { %v1003_v51 = vsub.f32 %v925_v40, %v990_v7 }
 0x18b   :  { %311 = vrot.lane.b32.xlu0 %v309_v41, %s5514_s18  ;;  %v1015_v41 = vsub.f32 %v937_v15, %v991_v20  ;;  %v1018_v15 = vmul.f32 %v1002_v56, %v1002_v56  ;;  %v129_v56 = vld [vmem:[%s7413_s9 + $0x18] sm:$0xff] }
 0x18c   :  { %v1019_v16 = vmul.f32 %v1003_v51, %v1003_v51 }
 0x18d   :  { %v1031_v58 = vmul.f32 %v1015_v41, %v1015_v41 }
 0x18f   :  { %v1100_v11 = vcombine.low %v1030_v44, %v1031_v58  ;;  %v6143_v58 = vpack.c.bf16 %v129_v56, %v128_v53 }
 0x191   :  { %v1128_v7 = vrot.slane %v1100_v11, %v5674_v31 }
 0x1f0   :  { %v600_v42 = vpop.permute.xlu1 %599 }
 0x1f1   :  { %v602_v43 = vmul.f32 %v6009_v39, %v600_v42  ;;  %v1027_v42 = vmul.f32 %v1011_v23, %v1011_v23 }
 0x1f3   :  { %604 = vrot.lane.b32.xlu1 %v602_v43, %s5513_s16  ;;  %v1029_v43 = vmul.f32 %v1013_v24, %v1013_v24  ;;  %v1098_v57 = vcombine.low %v1026_v34, %v1027_v42 }
 0x1f5   :  { %v1099_v62 = vcombine.low %v1028_v36, %v1029_v43 }
 0x1f7   :  { %v1121_v14 = vrot.slane %v1099_v62, %v5674_v31 }
 0x1fd   :  { %v312_v45 = vpop.permute.xlu0 %311 }
 0x1fe   :  { %v314_v47 = vadd.f32 %v312_v45, %v304_v46  ;;  %v926_v45 = vld [vmem:[%s7416_s12 + $0x4] sm:$0x1]  ;;  %v927_v46 = vld [vmem:[%s7416_s12 + $0x5] sm:$0x1] }
 0x1ff   :  { %v1004_v1 = vsub.f32 %v926_v45, %v973_v21  ;;  %v1005_v59 = vsub.f32 %v927_v46, %v987_v5  ;;  %v1048_v21 = vcombine.low %v1016_v60, %v1017_v61  ;;  %v1049_v5 = vcombine.low %v1018_v15, %v1019_v16 }
 0x201   :  { %v1020_v18 = vmul.f32 %v1004_v1, %v1004_v1  ;;  %v1021_v23 = vmul.f32 %v1005_v59, %v1005_v59  ;;  %v1058_v20 = vrot.slane %v1048_v21, %v5674_v31 }
 0x203   :  { %v1050_v29 = vcombine.low %v1020_v18, %v1021_v23 }
 0x205   :  { %v1072_v36 = vrot.slane %v1050_v29, %v5674_v31 }
 0x265   :  { %v605_v48 = vpop.permute.xlu1 %604 }
 0x266   :  { %v6027_v49 = vadd.f32 %v605_v48, %v314_v47  ;;  %v928_v47 = vld [vmem:[%s7416_s12 + $0x6] sm:$0x1]  ;;  %v1097_v48 = vcombine.low %v1024_v32, %v1025_v33  ;;  %v1065_v33 = vrot.slane %v1049_v5, %v5674_v31 }
 0x267   :  { %1230 = vst.msk [vmem:[%s1229_s4] sm:$0x1] %vm61_vm0, %v6036_v50  ;;  %v1006_v2 = vsub.f32 %v928_v47, %v989_v6  ;;  %v1130_v6 = vcombine.low %v1121_v14, %v1128_v7  ;;  %v126_v47 = vld [vmem:[%s7413_s9] sm:$0xff] }
 0x268   :  { %5424 = vtanh.f32 %v6027_v49  ;;  %629 = vst.msk [vmem:[%s628_s28] sm:$0x1] %vm94_vm5, %v6027_v49  ;;  %v1107_v0 = vrot.slane %v1097_v48, %v5674_v31  ;;  %v1080_v40 = vcombine.low %v1058_v20, %v1065_v33  ;;  %v127_v48 = vld [vmem:[%s7413_s9 + $0x8] sm:$0xff]  ;;  %s6178_s9 = sadd.s32 1, %s5849_s30 }
 0x269   :  { %v1022_v24 = vmul.f32 %v1006_v2, %v1006_v2  ;;  %v1144_v34 = vrot.slane %v1130_v6, %v5674_v31  ;;  %v6132_v55 = vpack.c.bf16 %v127_v48, %v126_v47  ;;  %p920_p11 = scmp.lt.s32.totalorder %s6178_s9, 16  ;;  %p4984_p12 = scmp.gt.s32.totalorder %s6178_s9, 0 }
 0x26a   :  { %v1088_v43 = vrot.slane %v1080_v40, %v5674_v31 }
 0x26b   :  { %v1051_v32 = vcombine.low %v1022_v24, %v1023_v26  ;;  %5230 = vmatpush3.bf16.msra.mxu1 %v6132_v55  ;;  %5248 = vmatpush3.bf16.msra.mxu0 %v6132_v55  ;;  %s921_s24 = scalar_select %p920_p11, %s6178_s9, 16 }
 0x26c   :  { %5231 = vmatprep.subr.bf16.mxu1 %v7419_v54  ;;  %5249 = vmatprep.subr.bf16.mxu0 %v7419_v54  ;;  %s5075_s29 = scalar_select %p4984_p12, 1, 0 }
 0x26d   :  { %v1079_v37 = vrot.slane %v1051_v32, %v5674_v31  ;;  %v1156_v59 = vstv %s921_s24  ;;  %s1826_s9 = scalar_lea.vmem %s7416_s12, %s7541_s2 }
 0x26e   :  { %vm6183_vm3 = vcmp.lt.s32.totalorder %v5854_v30, %v1156_v59  ;;  %vm6188_vm4 = vcmp.lt.s32.totalorder %v5623_v13, %v1156_v59 }
 0x26f   :  { %v1081_v42 = vcombine.low %v1072_v36, %v1079_v37  ;;  %5233 = vmatpush3.bf16.msra.mxu1 %v6143_v58  ;;  %5251 = vmatpush3.bf16.msra.mxu0 %v6143_v58  ;;  %v1193_v36 = vstv %s5075_s29 }
 0x270   :  { %5235 = vmatprep.subr.bf16.mxu1 %v5600_v4  ;;  %5253 = vmatprep.subr.bf16.mxu0 %v5600_v4  ;;  %vm1194_vm14 = vcmp.eq.s32.totalorder %v1193_v36, 1 }
 0x271   :  { %v1095_v45 = vrot.slane %v1081_v42, %v5674_v31 }
 0x272   :  { %v5425_v12 = vpop.eup %5424 }
 0x273   :  { %610 = vrot.lane.b32.xlu1 %v5425_v12, %s5515_s6  ;;  %v1114_v12 = vrot.slane %v1098_v57, %v5674_v31  ;;  %v1096_v46 = vcombine.low %v1088_v43, %v1095_v45 }
 0x275   :  { %v1129_v17 = vcombine.low %v1107_v0, %v1114_v12  ;;  %v1148_v51 = vsel %vm209_vm2, %v1096_v46, 0.0 }
 0x277   :  { %v1137_v28 = vrot.slane %v1129_v17, %v5674_v31 }
 0x279   :  { %v1145_v41 = vcombine.low %v1137_v28, %v1144_v34 }
 0x27b   :  { %v1151_v44 = vsel %vm209_vm2, %v1145_v41, 0.0 }
 0x27c   :  { %1152 = vadd.xlane.f32.xlu0 %v1151_v44 }
 0x2e5   :  { %v611_v57 = vpop.permute.xlu1 %610 }
 0x2e6   :  { %v613_v62 = vmul.f32 %v6009_v39, %v611_v57 }
 0x2e8   :  { %631 = vrot.lane.b32.xlu1 %v613_v62, %s5515_s6 }
 0x309   :  { %v1153_v1 = vpop.xlane.xlu0 %1152 }
 0x30c   :  { %1149 = vadd.xlane.f32.xlu1 %v1148_v51 }
 0x35a   :  { %v6155_v0 = vpop.permute.xlu1 %631 }
 0x35b   :  { %7449 = vst [vmem:[#allocation7_spill] sm:$0xff] %v6155_v0  ;;  %5137 = vmatmul.mubr.msk.f32.vlgmr.msra.gmra.mrb[0].mxu1 %vm134_vm1, %v6155_v0 }
 0x35c   :  { %5237 = vmatpush1.bf16.msra.mxu1 %v5612_v9  ;;  %818 = vmatprep.mubr.f32.mxu1 %v7421_v8 }
 0x35d   :  { %5239 = vmatprep.subr.bf16.mxu1 %v5614_v10 }
 0x360   :  { %5241 = vmatpush1.bf16.msra.mxu1 %v5636_v19 }
 0x361   :  { %5243 = vmatprep.subr.bf16.mxu1 %v5653_v25 }
 0x363   :  { %4981 = vmatmul.mubr.msk.f32.vlgmr.msra.gmra.mrb[2].mxu1 %vm134_vm1, %v6155_v0 }
 0x364   :  { %5245 = vmatpush1.bf16.msra.mxu1 %v5719_v38  ;;  %892 = vmatprep.mubr.f32.mxu1 %v7421_v8 }
 0x365   :  { %5264 = vmatprep.subr.bf16.mxu1 %v7419_v54 }
 0x36b   :  { %4982 = vmatmul.mubr.msk.f32.vlgmr.msra.gmra.mrb[2].mxu1 %vm209_vm2, %v6036_v50  ;;  %v1155_v50 = vsub.f32 0.0, %v1153_v1 }
 0x36c   :  { %5266 = vmatpush3.bf16.msra.mxu1 %v6132_v55  ;;  %5158 = vmatprep.mubr.msk.f32.mxu1 %vm5517_vm15, %v7421_v8 }
 0x36d   :  { %5267 = vmatprep.subr.bf16.mxu1 %v7419_v54  ;;  %v1160_v52 = vsel %vm6183_vm3, %v1155_v50, -1e+30 }
 0x370   :  { %5269 = vmatpush3.bf16.msra.mxu1 %v6143_v58 }
 0x371   :  { %5271 = vmatprep.subr.bf16.mxu1 %v5600_v4 }
 0x399   :  { %v1150_v12 = vpop.xlane.xlu1 %1149 }
 0x39a   :  { %v1154_v14 = vsub.f32 0.0, %v1150_v12 }
 0x39c   :  { %v1159_v60 = vsel %vm6188_vm4, %v1154_v14, -1e+30 }
 0x39d   :  { %v1161_v61 = vmax.f32 %v1159_v60, %v1160_v52 }
 0x39f   :  { %v1162_v15 = vrot.slane %v1161_v61, 4 }
 0x3a1   :  { %v1163_v16 = vmax.f32 %v1161_v61, %v1162_v15  ;;  %v1519_v15 = vld [vmem:[%s7416_s12] sm:$0x1] }
 0x3a3   :  { %v1164_v7 = vrot.slane %v1163_v16, 2 }
 0x3a5   :  { %v1165_v17 = vmax.f32 %v1163_v16, %v1164_v7  ;;  %v1520_v16 = vld [vmem:[%s7416_s12 + $0x1] sm:$0x1]  ;;  %v1521_v7 = vld [vmem:[%s7416_s12 + $0x2] sm:$0x1] }
 0x3a7   :  { %v1166_v18 = vrot.slane %v1165_v17, 1 }
 0x3a9   :  { %v1167_v23 = vmax.f32 %v1165_v17, %v1166_v18  ;;  %v1522_v17 = vld [vmem:[%s7416_s12 + $0x3] sm:$0x1]  ;;  %v1523_v18 = vld [vmem:[%s7416_s12 + $0x4] sm:$0x1] }
 0x3ab   :  { %5380 = vpush %v1167_v23  ;;  %v1524_v23 = vld [vmem:[%s7416_s12 + $0x5] sm:$0x1] }
 0x3dc   :  { %s5381_s25 = spop %5380 }
 0x3dd   :  { %v1169_v24 = vstv %s5381_s25  ;;  %s2410_s25 = sadd.s32 3, %s6015_s19 }
 0x3de   :  { %vm1170_vm6 = vcmp.eq.f32.partialorder %v1159_v60, %v1169_v24  ;;  %vm1171_vm7 = vcmp.eq.f32.partialorder %v1160_v52, %v1169_v24  ;;  %v6235_v60 = vld [vmem:[%s7405_s1 + $0x2] sm:$0x1]  ;;  %v1525_v24 = vld [vmem:[%s7416_s12 + $0x6] sm:$0x1]  ;;  %p2411_p3 = scmp.lt.s32.totalorder %s2410_s25, 0 }
 0x3df   :  { %vm1172_vm8 = vmand %vm1170_vm6, %vm6188_vm4  ;;  %v1538_v61 = vrot.slane %v6235_v60, %v5647_v22 }
 0x3e0   :  { %vm1173_vm9 = vmand %vm1171_vm7, %vm6183_vm3  ;;  %v1174_v26 = vsel %vm1172_vm8, %v5623_v13, 15 }
 0x3e1   :  { %v1175_v21 = vsel %vm1173_vm9, %v5854_v30, 15 }
 0x3e2   :  { %vm1176_vm10 = vcmp.lt.s32.totalorder %v1174_v26, %v1175_v21 }
 0x3e3   :  { %v1177_v5 = vsel %vm1176_vm10, %v1174_v26, %v1175_v21  ;;  %v1526_v26 = vld [vmem:[%s7416_s12 + $0x7] sm:$0x1]  ;;  %v1540_v21 = vcombine.high %v1538_v61, %v1538_v61 }
 0x3e4   :  { %v1178_v6 = vrot.slane %v1177_v5, 4 }
 0x3e6   :  { %vm1179_vm11 = vcmp.lt.s32.totalorder %v1177_v5, %v1178_v6 }
 0x3e7   :  { %v1180_v28 = vsel %vm1179_vm11, %v1177_v5, %v1178_v6  ;;  %v1547_v5 = vrot.slane %v1538_v61, %v5674_v31  ;;  %v1527_v6 = vld [vmem:[%s7416_s12 + $0x8] sm:$0x1] }
 0x3e8   :  { %v1181_v29 = vrot.slane %v1180_v28, 2 }
 0x3e9   :  { %v1563_v36 = vrot.slane %v1547_v5, %v5674_v31 }
 0x3ea   :  { %vm1182_vm12 = vcmp.lt.s32.totalorder %v1180_v28, %v1181_v29 }
 0x3eb   :  { %v1183_v32 = vsel %vm1182_vm12, %v1180_v28, %v1181_v29  ;;  %v1528_v28 = vld [vmem:[%s7416_s12 + $0x9] sm:$0x1]  ;;  %v1529_v29 = vld [vmem:[%s7416_s12 + $0xa] sm:$0x1] }
 0x3ec   :  { %v1184_v20 = vrot.slane %v1183_v32, 1 }
 0x3ee   :  { %vm1185_vm13 = vcmp.lt.s32.totalorder %v1183_v32, %v1184_v20 }
 0x3ef   :  { %v1186_v33 = vsel %vm1185_vm13, %v1183_v32, %v1184_v20  ;;  %v1530_v32 = vld [vmem:[%s7416_s12 + $0xb] sm:$0x1]  ;;  %v1531_v20 = vld [vmem:[%s7416_s12 + $0xc] sm:$0x1] }
 0x3f0   :  { %5382 = vpush %v1186_v33  ;;  %v1554_v33 = vrot.slane %v1540_v21, %v5674_v31 }
 0x421   :  { %s5383_s26 = spop %5382 }
 0x422   :  { %s1188_s8 = scalar_lea.vmem %s7417_s13, %s5383_s26  ;;  %s2412_s26 = ssub.s32 0, %s2410_s25 }
 0x423   :  { %v1189_v34 = vld [vmem:[%s1188_s8] sm:$0x1]  ;;  %s5015_s27 = smin.u32 %s2412_s26, %s2410_s25 }
 0x424   :  { %5426 = vtanh.f32 %v1189_v34  ;;  %v1555_v34 = vcombine.high %v1547_v5, %v1547_v5  ;;  %s2414_s28 = sand.u32 15, %s5015_s27  }
 0x425   :  { %s2415_s8 = ssub.s32 0, %s2414_s28 }
 0x426   :  { %s7543_s8 = smov (!%p2411_p3, %s2415_s8), %s2414_s28 }
 0x427   :  { %p5017_p4 = scmp.lt.s32.totalorder %s7543_s8, 0  ;;  %s2421_s3 = sadd.s32 16, %s7543_s8 }
 0x429   :  { %s7545_s3 = smov (!%p5017_p4, %s2421_s3), %s7543_s8 }
 0x42a   :  { %s2425_s26 = scalar_lea.vmem %s7417_s13, %s7545_s3 }
 0x42e   :  { %v5427_v37 = vpop.eup %5426  ;;  %v6206_v40 = vpop.f32.mrb[0].mxu1 }
 0x42f   :  { %7454 = vst [vmem:[#allocation8_spill] sm:$0xff] %v6206_v40  ;;  %v5138_v41 = vpop.f32.mrb[1].mxu1  ;;  %v1195_v42 = vsel %vm1194_vm14, %v5427_v37, 0.0  ;;  %v1532_v37 = vld [vmem:[%s7416_s12 + $0xd] sm:$0x1] }
 0x430   :  { %v6209_v43 = vrot.slane %v1195_v42, %v5647_v22  ;;  %v1533_v41 = vld [vmem:[%s7416_s12 + $0xe] sm:$0x1]  ;;  %v1534_v42 = vld [vmem:[%s7416_s12 + $0xf] sm:$0x1] }
 0x431   :  { %1827 = vst.msk [vmem:[%s1826_s9] sm:$0x1] %vm61_vm0, %v6235_v60  ;;  %s6343_s9 = sadd.s32 2, %s5849_s30 }
 0x432   :  { %7455 = vst [vmem:[#allocation9_spill] sm:$0xff] %v6209_v43  ;;  %1201 = vrot.lane.b32.xlu0 %v6209_v43, %s5514_s18  ;;  %p1517_p1 = scmp.lt.s32.totalorder %s6343_s9, 16  ;;  %p4997_p2 = scmp.gt.s32.totalorder %s6343_s9, 0 }
 0x434   :  { %s1518_s20 = scalar_select %p1517_p1, %s6343_s9, 16 }
 0x435   :  { %s5077_s24 = scalar_select %p4997_p2, 1, 0 }
 0x436   :  { %s2423_s9 = scalar_lea.vmem %s7416_s12, %s7545_s3 }
 0x43e   :  { %v894_v44 = vpop.f32.mrb[2].mxu1 }
 0x43f   :  { %v896_v45 = vpop.f32.mrb[3].mxu1  ;;  %v899_v48 = vadd.f32 %v894_v44, %v6001_v27  ;;  %v1556_v44 = vcombine.high %v1554_v33, %v1554_v33 }
 0x440   :  { %v900_v46 = vadd.f32 %v896_v45, %v5986_v63  ;;  %v1570_v45 = vrot.slane %v1554_v33, %v5674_v31 }
 0x441   :  { %v4983_v53 = vmul.f32 -1.442695, %v899_v48  ;;  %v1585_v48 = vcombine.high %v1563_v36, %v1563_v36 }
 0x442   :  { %5428 = vtanh.f32 %v900_v46  ;;  %v1577_v46 = vrot.slane %v1555_v34, %v5674_v31  ;;  %v1609_v5 = vsub.f32 %v1531_v20, %v1570_v45 }
 0x443   :  { %5430 = vpow2.f32 %v4983_v53 }
 0x44c   :  { %v5429_v47 = vpop.eup %5428 }
 0x44d   :  { %910 = vrot.lane.b32.xlu1 %v5429_v47, %s5513_s16  ;;  %v5431_v56 = vpop.eup %5430  ;;  %v1584_v47 = vrot.slane %v1556_v44, %v5674_v31 }
 0x44e   :  { %v904_v57 = vadd.f32 1.0, %v5431_v56  ;;  %v1587_v56 = vcombine.high %v1577_v46, %v1577_v46 }
 0x44f   :  { %v1610_v33 = vsub.f32 %v1532_v37, %v1584_v47  ;;  %v1602_v44 = vsub.f32 %v1524_v23, %v1584_v47 }
 0x450   :  { %5432 = vrcp.f32 %v904_v57  ;;  %v1597_v57 = vsub.f32 %v1519_v15, %v1563_v36  ;;  %v1608_v21 = vsub.f32 %v1530_v32, %v1587_v56  ;;  %v1600_v34 = vsub.f32 %v1522_v17, %v1587_v56 }
 0x451   :  { %v1618_v32 = vmul.f32 %v1602_v44, %v1602_v44 }
 0x452   :  { %v1613_v61 = vmul.f32 %v1597_v57, %v1597_v57 }
 0x45a   :  { %v6216_v62 = vpop.eup %5432 }
 0x45b   :  { %7456 = vst [vmem:[#allocation10_spill] sm:$0xff] %v6216_v62  ;;  %v908_v11 = vmul.f32 %v6216_v62, %v6027_v49 }
 0x4a4   :  { %v1202_v59 = vpop.permute.xlu0 %1201 }
 0x4a5   :  { %v1204_v50 = vmul.f32 %v6216_v62, %v1202_v59  ;;  %v1605_v59 = vsub.f32 %v1527_v6, %v1563_v36  ;;  %v1616_v36 = vmul.f32 %v1600_v34, %v1600_v34 }
 0x4a7   :  { %v1621_v0 = vmul.f32 %v1605_v59, %v1605_v59 }
 0x4bf   :  { %v911_v51 = vpop.permute.xlu1 %910 }
 0x4c0   :  { %v913_v1 = vmul.f32 %v6216_v62, %v911_v51  ;;  %v1586_v51 = vcombine.high %v1570_v45, %v1570_v45 }
 0x4c2   :  { %915 = vrot.lane.b32.xlu1 %v913_v1, %s5514_s18  ;;  %v1588_v1 = vcombine.high %v1584_v47, %v1584_v47  ;;  %v1603_v3 = vsub.f32 %v1525_v24, %v1586_v51  ;;  %v1611_v54 = vsub.f32 %v1533_v41, %v1586_v51 }
 0x4c4   :  { %v1604_v8 = vsub.f32 %v1526_v26, %v1588_v1  ;;  %v1612_v15 = vsub.f32 %v1534_v42, %v1588_v1  ;;  %v1619_v17 = vmul.f32 %v1603_v3, %v1603_v3 }
 0x4c6   :  { %1206 = vrot.lane.b32.xlu1 %v1204_v50, %s5513_s16  ;;  %v1606_v50 = vsub.f32 %v1528_v28, %v1577_v46  ;;  %v1628_v20 = vmul.f32 %v1612_v15, %v1612_v15  ;;  %v1620_v23 = vmul.f32 %v1604_v8, %v1604_v8  ;;  %v7459_v15 = vmov 0.0  }
 0x4c8   :  { %v1648_v57 = vcombine.low %v1619_v17, %v1620_v23 }
 0x534   :  { %v916_v2 = vpop.permute.xlu1 %915 }
 0x535   :  { %v918_v12 = vadd.f32 %v916_v2, %v908_v11  ;;  %v1598_v2 = vsub.f32 %v1520_v16, %v1577_v46  ;;  %v1599_v11 = vsub.f32 %v1521_v7, %v1585_v48  ;;  %v1624_v16 = vmul.f32 %v1608_v21, %v1608_v21 }
 0x536   :  { %v1625_v7 = vmul.f32 %v1609_v5, %v1609_v5 }
 0x537   :  { %v1614_v39 = vmul.f32 %v1598_v2, %v1598_v2  ;;  %v1615_v40 = vmul.f32 %v1599_v11, %v1599_v11  ;;  %v1676_v2 = vrot.slane %v1648_v57, %v5674_v31 }
 0x538   :  { %v1207_v14 = vpop.permute.xlu1 %1206 }
 0x539   :  { %v6229_v52 = vadd.f32 %v1207_v14, %v918_v12  ;;  %v1601_v12 = vsub.f32 %v1523_v18, %v1570_v45  ;;  %v1607_v14 = vsub.f32 %v1529_v29, %v1585_v48  ;;  %v1626_v18 = vmul.f32 %v1610_v33, %v1610_v33 }
 0x53a   :  { %v1627_v29 = vmul.f32 %v1611_v54, %v1611_v54  ;;  %v1645_v47 = vcombine.low %v1613_v61, %v1614_v39  ;;  %v1646_v56 = vcombine.low %v1615_v40, %v1616_v36 }
 0x53b   :  { %7457 = vst [vmem:[#allocation11_spill] sm:$0xff] %v6229_v52  ;;  %5434 = vtanh.f32 %v6229_v52  ;;  %1232 = vst.msk [vmem:[%s1231_s21] sm:$0x1] %vm94_vm5, %v6229_v52  ;;  %v1617_v6 = vmul.f32 %v1601_v12, %v1601_v12  ;;  %v1623_v28 = vmul.f32 %v1607_v14, %v1607_v14  ;;  %v1696_v41 = vcombine.low %v1625_v7, %v1626_v18 }
 0x53c   :  { %v1697_v26 = vcombine.low %v1627_v29, %v1628_v20  ;;  %v1662_v59 = vrot.slane %v1646_v56, %v5674_v31 }
 0x53d   :  { %v1695_v24 = vcombine.low %v1623_v28, %v1624_v16  ;;  %v1718_v46 = vrot.slane %v1696_v41, %v5674_v31  ;;  %v1647_v54 = vcombine.low %v1617_v6, %v1618_v32  ;;  %v1753_v28 = vstv %s1518_s20 }
 0x53e   :  { %v1725_v48 = vrot.slane %v1697_v26, %v5674_v31  ;;  %vm6348_vm3 = vcmp.lt.s32.totalorder %v5623_v13, %v1753_v28  ;;  %vm6353_vm4 = vcmp.lt.s32.totalorder %v5854_v30, %v1753_v28 }
 0x53f   :  { %v1711_v45 = vrot.slane %v1695_v24, %v5674_v31 }
 0x540   :  { %v1727_v1 = vcombine.low %v1718_v46, %v1725_v48 }
 0x542   :  { %v1741_v8 = vrot.slane %v1727_v1, %v5674_v31 }
 0x545   :  { %v5435_v53 = vpop.eup %5434 }
 0x546   :  { %1212 = vrot.lane.b32.xlu1 %v5435_v53, %s5515_s6  ;;  %v1622_v53 = vmul.f32 %v1606_v50, %v1606_v50  ;;  %v1669_v50 = vrot.slane %v1647_v54, %v5674_v31 }
 0x548   :  { %v1694_v37 = vcombine.low %v1621_v0, %v1622_v53  ;;  %v1655_v0 = vrot.slane %v1645_v47, %v5674_v31  ;;  %v1678_v12 = vcombine.low %v1669_v50, %v1676_v2  ;;  %v7460_v53 = vmov 0.0|0.0  }
 0x54a   :  { %v1704_v42 = vrot.slane %v1694_v37, %v5674_v31  ;;  %v1677_v11 = vcombine.low %v1655_v0, %v1662_v59  ;;  %v1692_v14 = vrot.slane %v1678_v12, %v5674_v31 }
 0x54c   :  { %v1726_v51 = vcombine.low %v1704_v42, %v1711_v45  ;;  %v1685_v40 = vrot.slane %v1677_v11, %v5674_v31 }
 0x54e   :  { %v1734_v3 = vrot.slane %v1726_v51, %v5674_v31  ;;  %v1693_v61 = vcombine.low %v1685_v40, %v1692_v14 }
 0x550   :  { %v1742_v39 = vcombine.low %v1734_v3, %v1741_v8  ;;  %v1745_v21 = vsel %vm209_vm2, %v1693_v61, 0.0  ;;  %v1790_v8 = vstv %s5077_s24 }
 0x551   :  { %vm1791_vm14 = vcmp.eq.s32.totalorder %v1790_v8, 1 }
 0x552   :  { %v1748_v34 = vsel %vm209_vm2, %v1742_v39, 0.0 }
 0x56a   :  { %1746 = vadd.xlane.f32.xlu1 %v1745_v21 }
 0x5b8   :  { %v1213_v5 = vpop.permute.xlu1 %1212 }
 0x5b9   :  { %v1215_v33 = vmul.f32 %v6216_v62, %v1213_v5 }
 0x5bb   :  { %1234 = vrot.lane.b32.xlu0 %v1215_v33, %s5515_s6 }
 0x5da   :  { %1749 = vadd.xlane.f32.xlu0 %v1748_v34 }
 0x5f7   :  { %v1747_v6 = vpop.xlane.xlu1 %1746 }
 0x62d   :  { %v6320_v44 = vpop.permute.xlu0 %1234 }
 0x62e   :  { %7458 = vst [vmem:[#allocation12_spill] sm:$0xff] %v6320_v44  ;;  %5148 = vmatmul.mubr.msk.f32.vlgmr.msra.gmra.mrb[2].mxu0 %vm134_vm1, %v6320_v44 }
 0x62f   :  { %5255 = vmatpush1.bf16.msra.mxu0 %v5612_v9  ;;  %1415 = vmatprep.mubr.f32.mxu0 %v7459_v15 }
 0x630   :  { %5257 = vmatprep.subr.bf16.mxu0 %v5614_v10 }
 0x633   :  { %5259 = vmatpush1.bf16.msra.mxu0 %v5636_v19 }
 0x634   :  { %5261 = vmatprep.subr.bf16.mxu0 %v5653_v25 }
 0x636   :  { %4994 = vmatmul.mubr.msk.f32.vlgmr.msra.gmra.mrb[4].mxu0 %vm134_vm1, %v6320_v44 }
 0x637   :  { %5263 = vmatpush1.bf16.msra.mxu0 %v5719_v38  ;;  %1489 = vmatprep.mubr.f32.mxu0 %v7459_v15 }
 0x638   :  { %5282 = vmatprep.subr.bf16.mxu0 %v7460_v53 }
 0x63e   :  { %4995 = vmatmul.mubr.msk.f32.vlgmr.msra.gmra.mrb[4].mxu0 %vm209_vm2, %v6235_v60  ;;  %v1751_v60 = vsub.f32 0.0, %v1747_v6 }
 0x63f   :  { %5284 = vmatpush3.bf16.msra.mxu0 %v6132_v55  ;;  %5169 = vmatprep.mubr.msk.f32.mxu0 %vm5517_vm15, %v7459_v15 }
 0x640   :  { %5285 = vmatprep.subr.bf16.mxu0 %v7460_v53  ;;  %v1756_v36 = vsel %vm6348_vm3, %v1751_v60, -1e+30 }
 0x643   :  { %5287 = vmatpush3.bf16.msra.mxu0 %v6143_v58 }
 0x644   :  { %5289 = vmatprep.subr.bf16.mxu0 %v5600_v4 }
 0x667   :  { %v1750_v18 = vpop.xlane.xlu0 %1749 }
 0x668   :  { %v1752_v29 = vsub.f32 0.0, %v1750_v18 }
 0x66a   :  { %v1757_v32 = vsel %vm6353_vm4, %v1752_v29, -1e+30 }
 0x66b   :  { %v1758_v20 = vmax.f32 %v1756_v36, %v1757_v32 }
 0x66d   :  { %v1759_v37 = vrot.slane %v1758_v20, 4 }
 0x66f   :  { %v1760_v17 = vmax.f32 %v1758_v20, %v1759_v37  ;;  %v6400_v20 = vld [vmem:[%s7405_s1 + $0x3] sm:$0x1] }
 0x670   :  { %v2135_v37 = vrot.slane %v6400_v20, %v5647_v22 }
 0x671   :  { %v1761_v23 = vrot.slane %v1760_v17, 2 }
 0x673   :  { %v1762_v24 = vmax.f32 %v1760_v17, %v1761_v23  ;;  %v2116_v17 = vld [vmem:[%s7416_s12] sm:$0x1]  ;;  %v2117_v23 = vld [vmem:[%s7416_s12 + $0x1] sm:$0x1] }
 0x675   :  { %v1763_v41 = vrot.slane %v1762_v24, 1 }
 0x677   :  { %v1764_v26 = vmax.f32 %v1762_v24, %v1763_v41  ;;  %v2118_v24 = vld [vmem:[%s7416_s12 + $0x2] sm:$0x1]  ;;  %v2119_v41 = vld [vmem:[%s7416_s12 + $0x3] sm:$0x1] }
 0x679   :  { %5384 = vpush %v1764_v26  ;;  %v2120_v26 = vld [vmem:[%s7416_s12 + $0x4] sm:$0x1] }
 0x6aa   :  { %s5385_s21 = spop %5384 }
 0x6ab   :  { %v1766_v42 = vstv %s5385_s21  ;;  %s3007_s21 = sadd.s32 4, %s6015_s19 }
 0x6ac   :  { %vm1767_vm6 = vcmp.eq.f32.partialorder %v1756_v36, %v1766_v42  ;;  %vm1768_vm7 = vcmp.eq.f32.partialorder %v1757_v32, %v1766_v42  ;;  %v2121_v42 = vld [vmem:[%s7416_s12 + $0x5] sm:$0x1]  ;;  %p3008_p7 = scmp.lt.s32.totalorder %s3007_s21, 0 }
 0x6ad   :  { %vm1769_vm8 = vmand %vm1767_vm6, %vm6348_vm3 }
 0x6ae   :  { %vm1770_vm9 = vmand %vm1768_vm7, %vm6353_vm4  ;;  %v1771_v45 = vsel %vm1769_vm8, %v5623_v13, 15 }
 0x6af   :  { %v1772_v46 = vsel %vm1770_vm9, %v5854_v30, 15 }
 0x6b0   :  { %vm1773_vm10 = vcmp.lt.s32.totalorder %v1771_v45, %v1772_v46 }
 0x6b1   :  { %v1774_v47 = vsel %vm1773_vm10, %v1771_v45, %v1772_v46  ;;  %v2122_v45 = vld [vmem:[%s7416_s12 + $0x6] sm:$0x1]  ;;  %v2123_v46 = vld [vmem:[%s7416_s12 + $0x7] sm:$0x1] }
 0x6b2   :  { %v1775_v48 = vrot.slane %v1774_v47, 4 }
 0x6b4   :  { %vm1776_vm11 = vcmp.lt.s32.totalorder %v1774_v47, %v1775_v48 }
 0x6b5   :  { %v1777_v56 = vsel %vm1776_vm11, %v1774_v47, %v1775_v48  ;;  %v2137_v47 = vcombine.high %v2135_v37, %v2135_v37  ;;  %v2144_v48 = vrot.slane %v2135_v37, %v5674_v31 }
 0x6b6   :  { %v1778_v54 = vrot.slane %v1777_v56, 2 }
 0x6b7   :  { %v2152_v8 = vcombine.high %v2144_v48, %v2144_v48 }
 0x6b8   :  { %vm1779_vm12 = vcmp.lt.s32.totalorder %v1777_v56, %v1778_v54 }
 0x6b9   :  { %v1780_v57 = vsel %vm1779_vm12, %v1777_v56, %v1778_v54  ;;  %v2124_v56 = vld [vmem:[%s7416_s12 + $0x8] sm:$0x1]  ;;  %v2125_v54 = vld [vmem:[%s7416_s12 + $0x9] sm:$0x1] }
 0x6ba   :  { %v1781_v51 = vrot.slane %v1780_v57, 1 }
 0x6bc   :  { %vm1782_vm13 = vcmp.lt.s32.totalorder %v1780_v57, %v1781_v51 }
 0x6bd   :  { %v1783_v1 = vsel %vm1782_vm13, %v1780_v57, %v1781_v51  ;;  %v2126_v57 = vld [vmem:[%s7416_s12 + $0xa] sm:$0x1]  ;;  %v2127_v51 = vld [vmem:[%s7416_s12 + $0xb] sm:$0x1] }
 0x6be   :  { %5386 = vpush %v1783_v1  ;;  %v2128_v1 = vld [vmem:[%s7416_s12 + $0xc] sm:$0x1] }
 0x6ef   :  { %s5387_s22 = spop %5386 }
 0x6f0   :  { %s1785_s23 = scalar_lea.vmem %s7417_s13, %s5387_s22  ;;  %s3009_s22 = ssub.s32 0, %s3007_s21 }
 0x6f1   :  { %v1786_v3 = vld [vmem:[%s1785_s23] sm:$0x1]  ;;  %s5028_s4 = smin.u32 %s3009_s22, %s3007_s21 }
 0x6f2   :  { %5436 = vtanh.f32 %v1786_v3  ;;  %v2151_v3 = vrot.slane %v2137_v47, %v5674_v31  ;;  %s3011_s17 = sand.u32 15, %s5028_s4  }
 0x6f3   :  { %s3012_s23 = ssub.s32 0, %s3011_s17 }
 0x6f4   :  { %s7547_s23 = smov (!%p3008_p7, %s3012_s23), %s3011_s17 }
 0x6f5   :  { %p5030_p8 = scmp.lt.s32.totalorder %s7547_s23, 0  ;;  %s3018_s27 = sadd.s32 16, %s7547_s23 }
 0x6f7   :  { %s7549_s27 = smov (!%p5030_p8, %s3018_s27), %s7547_s23 }
 0x6f8   :  { %s3022_s22 = scalar_lea.vmem %s7417_s13, %s7549_s27 }
 0x6fc   :  { %v5437_v0 = vpop.eup %5436 }
 0x6fd   :  { %v1792_v59 = vsel %vm1791_vm14, %v5437_v0, 0.0  ;;  %v2160_v0 = vrot.slane %v2144_v48, %v5674_v31 }
 0x6fe   :  { %v6372_v50 = vrot.slane %v1792_v59, %v5647_v22  ;;  %v2129_v59 = vld [vmem:[%s7416_s12 + $0xd] sm:$0x1] }
 0x700   :  { %7465 = vst [vmem:[#allocation13_spill] sm:$0xff] %v6372_v50  ;;  %1798 = vrot.lane.b32.xlu1 %v6372_v50, %s5514_s18 }
 0x701   :  { %v6376_v2 = vpop.f32.mrb[2].mxu0 }
 0x702   :  { %7466 = vst [vmem:[#allocation14_spill] sm:$0xff] %v6376_v2  ;;  %v5149_v39 = vpop.f32.mrb[3].mxu0 }
 0x703   :  { %v2130_v39 = vld [vmem:[%s7416_s12 + $0xe] sm:$0x1] }
 0x711   :  { %v1491_v11 = vpop.f32.mrb[4].mxu0 }
 0x712   :  { %v1493_v12 = vpop.f32.mrb[5].mxu0  ;;  %v1496_v61 = vadd.f32 %v1491_v11, %v6001_v27  ;;  %v2131_v11 = vld [vmem:[%s7416_s12 + $0xf] sm:$0x1] }
 0x713   :  { %v1497_v40 = vadd.f32 %v1493_v12, %v5986_v63  ;;  %2424 = vst.msk [vmem:[%s2423_s9] sm:$0x1] %vm61_vm0, %v6400_v20  ;;  %v2153_v12 = vcombine.high %v2151_v3, %v2151_v3  ;;  %s6508_s9 = sadd.s32 3, %s5849_s30 }
 0x714   :  { %v4996_v21 = vmul.f32 -1.442695, %v1496_v61  ;;  %p2114_p5 = scmp.lt.s32.totalorder %s6508_s9, 16  ;;  %p5010_p6 = scmp.gt.s32.totalorder %s6508_s9, 0 }
 0x715   :  { %5438 = vtanh.f32 %v1497_v40  ;;  %v2167_v40 = vrot.slane %v2151_v3, %v5674_v31  ;;  %v2181_v61 = vrot.slane %v2153_v12, %v5674_v31 }
 0x716   :  { %5440 = vpow2.f32 %v4996_v21  ;;  %v2182_v21 = vcombine.high %v2160_v0, %v2160_v0  ;;  %s2115_s14 = scalar_select %p2114_p5, %s6508_s9, 16 }
 0x717   :  { %v2206_v3 = vsub.f32 %v2128_v1, %v2167_v40  ;;  %v2199_v12 = vsub.f32 %v2121_v42, %v2181_v61  ;;  %s5079_s20 = scalar_select %p5010_p6, 1, 0 }
 0x718   :  { %v2204_v37 = vsub.f32 %v2126_v57, %v2182_v21  ;;  %s3020_s9 = scalar_lea.vmem %s7416_s12, %s7549_s27 }
 0x71f   :  { %v5439_v14 = vpop.eup %5438 }
 0x720   :  { %1507 = vrot.lane.b32.xlu0 %v5439_v14, %s5513_s16  ;;  %v5441_v5 = vpop.eup %5440  ;;  %v2174_v14 = vrot.slane %v2152_v8, %v5674_v31  ;;  %v2207_v8 = vsub.f32 %v2129_v59, %v2181_v61 }
 0x721   :  { %v1501_v33 = vadd.f32 1.0, %v5441_v5 }
 0x723   :  { %5442 = vrcp.f32 %v1501_v33  ;;  %v2184_v33 = vcombine.high %v2174_v14, %v2174_v14 }
 0x725   :  { %v2205_v48 = vsub.f32 %v2127_v51, %v2184_v33  ;;  %v2197_v44 = vsub.f32 %v2119_v41, %v2184_v33  ;;  %v2215_v51 = vmul.f32 %v2199_v12, %v2199_v12 }
 0x72d   :  { %v6381_v34 = vpop.eup %5442 }
 0x72e   :  { %7467 = vst [vmem:[#allocation15_spill] sm:$0xff] %v6381_v34  ;;  %v1505_v7 = vmul.f32 %v6381_v34, %v6229_v52 }
 0x772   :  { %v1799_v6 = vpop.permute.xlu1 %1798 }
 0x773   :  { %v1801_v28 = vmul.f32 %v6381_v34, %v1799_v6  ;;  %v2194_v6 = vsub.f32 %v2116_v17, %v2160_v0 }
 0x775   :  { %1803 = vrot.lane.b32.xlu0 %v1801_v28, %s5513_s16  ;;  %v2183_v28 = vcombine.high %v2167_v40, %v2167_v40  ;;  %v2210_v47 = vmul.f32 %v2194_v6, %v2194_v6 }
 0x777   :  { %v2200_v2 = vsub.f32 %v2122_v45, %v2183_v28  ;;  %v2208_v62 = vsub.f32 %v2130_v39, %v2183_v28 }
 0x779   :  { %v2224_v57 = vmul.f32 %v2208_v62, %v2208_v62  ;;  %v2216_v41 = vmul.f32 %v2200_v2, %v2200_v2 }
 0x792   :  { %v1508_v60 = vpop.permute.xlu0 %1507 }
 0x793   :  { %v1510_v16 = vmul.f32 %v6381_v34, %v1508_v60  ;;  %v2185_v60 = vcombine.high %v2181_v61, %v2181_v61 }
 0x795   :  { %1512 = vrot.lane.b32.xlu1 %v1510_v16, %s5514_s18  ;;  %v2202_v16 = vsub.f32 %v2124_v56, %v2160_v0  ;;  %v2201_v50 = vsub.f32 %v2123_v46, %v2185_v60  ;;  %v2209_v17 = vsub.f32 %v2131_v11, %v2185_v60  ;;  %v2213_v0 = vmul.f32 %v2197_v44, %v2197_v44 }
 0x797   :  { %v2218_v43 = vmul.f32 %v2202_v16, %v2202_v16  ;;  %v2225_v1 = vmul.f32 %v2209_v17, %v2209_v17  ;;  %v2217_v42 = vmul.f32 %v2201_v50, %v2201_v50 }
 0x799   :  { %v2294_v46 = vcombine.low %v2224_v57, %v2225_v1  ;;  %v2245_v44 = vcombine.low %v2216_v41, %v2217_v42 }
 0x7e7   :  { %v1804_v36 = vpop.permute.xlu0 %1803 }
 0x807   :  { %v1513_v18 = vpop.permute.xlu1 %1512 }
 0x808   :  { %v1515_v29 = vadd.f32 %v1513_v18, %v1505_v7  ;;  %v2203_v7 = vsub.f32 %v2125_v54, %v2174_v14  ;;  %v2195_v18 = vsub.f32 %v2117_v23, %v2174_v14  ;;  %v2220_v54 = vmul.f32 %v2204_v37, %v2204_v37 }
 0x809   :  { %v2221_v23 = vmul.f32 %v2205_v48, %v2205_v48 }
 0x80a   :  { %v6394_v32 = vadd.f32 %v1804_v36, %v1515_v29  ;;  %v2196_v29 = vsub.f32 %v2118_v24, %v2182_v21  ;;  %v2198_v36 = vsub.f32 %v2120_v26, %v2167_v40  ;;  %v2211_v52 = vmul.f32 %v2195_v18, %v2195_v18 }
 0x80b   :  { %v2222_v24 = vmul.f32 %v2206_v3, %v2206_v3  ;;  %v2223_v26 = vmul.f32 %v2207_v8, %v2207_v8  ;;  %v2292_v45 = vcombine.low %v2220_v54, %v2221_v23  ;;  %v2322_v21 = vrot.slane %v2294_v46, %v5674_v31 }
 0x80c   :  { %7468 = vst [vmem:[#allocation16_spill] sm:$0xff] %v6394_v32  ;;  %5444 = vtanh.f32 %v6394_v32  ;;  %1829 = vst.msk [vmem:[%s1828_s15] sm:$0x1] %vm94_vm5, %v6394_v32  ;;  %v2212_v35 = vmul.f32 %v2196_v29, %v2196_v29  ;;  %v2214_v56 = vmul.f32 %v2198_v36, %v2198_v36  ;;  %v2242_v61 = vcombine.low %v2210_v47, %v2211_v52 }
 0x80d   :  { %v2293_v39 = vcombine.low %v2222_v24, %v2223_v26  ;;  %v2308_v40 = vrot.slane %v2292_v45, %v5674_v31 }
 0x80e   :  { %v2243_v33 = vcombine.low %v2212_v35, %v2213_v0  ;;  %v2244_v62 = vcombine.low %v2214_v56, %v2215_v51  ;;  %v2252_v2 = vrot.slane %v2242_v61, %v5674_v31 }
 0x80f   :  { %v2315_v14 = vrot.slane %v2293_v39, %v5674_v31 }
 0x810   :  { %v2259_v60 = vrot.slane %v2243_v33, %v5674_v31  ;;  %v2266_v16 = vrot.slane %v2244_v62, %v5674_v31 }
 0x811   :  { %v2324_v28 = vcombine.low %v2315_v14, %v2322_v21 }
 0x812   :  { %v2274_v18 = vcombine.low %v2252_v2, %v2259_v60 }
 0x813   :  { %v2338_v50 = vrot.slane %v2324_v28, %v5674_v31  ;;  %v2387_v28 = vstv %s5079_s20 }
 0x814   :  { %v2282_v35 = vrot.slane %v2274_v18, %v5674_v31  ;;  %vm2388_vm14 = vcmp.eq.s32.totalorder %v2387_v28, 1  ;;  %v2726_v28 = vld [vmem:[%s7416_s12 + $0xd] sm:$0x1] }
 0x816   :  { %v5445_v5 = vpop.eup %5444 }
 0x817   :  { %1809 = vrot.lane.b32.xlu1 %v5445_v5, %s5515_s6  ;;  %v2219_v5 = vmul.f32 %v2203_v7, %v2203_v7  ;;  %v2273_v7 = vrot.slane %v2245_v44, %v5674_v31 }
 0x819   :  { %v2291_v59 = vcombine.low %v2218_v43, %v2219_v5  ;;  %v2275_v29 = vcombine.low %v2266_v16, %v2273_v7  ;;  %v2350_v5 = vstv %s2115_s14 }
 0x81a   :  { %vm6513_vm3 = vcmp.lt.s32.totalorder %v5623_v13, %v2350_v5  ;;  %vm6518_vm4 = vcmp.lt.s32.totalorder %v5854_v30, %v2350_v5 }
 0x81b   :  { %v2301_v11 = vrot.slane %v2291_v59, %v5674_v31  ;;  %v2289_v36 = vrot.slane %v2275_v29, %v5674_v31 }
 0x81d   :  { %v2323_v6 = vcombine.low %v2301_v11, %v2308_v40  ;;  %v2290_v37 = vcombine.low %v2282_v35, %v2289_v36 }
 0x81f   :  { %v2331_v43 = vrot.slane %v2323_v6, %v5674_v31  ;;  %v2342_v47 = vsel %vm209_vm2, %v2290_v37, 0.0 }
 0x821   :  { %v2339_v52 = vcombine.low %v2331_v43, %v2338_v50 }
 0x823   :  { %v2345_v8 = vsel %vm209_vm2, %v2339_v52, 0.0 }
 0x83b   :  { %2343 = vadd.xlane.f32.xlu1 %v2342_v47 }
 0x889   :  { %v1810_v48 = vpop.permute.xlu1 %1809 }
 0x88a   :  { %v1812_v3 = vmul.f32 %v6381_v34, %v1810_v48 }
 0x88c   :  { %1831 = vrot.lane.b32.xlu0 %v1812_v3, %s5515_s6 }
 0x8ab   :  { %2346 = vadd.xlane.f32.xlu0 %v2345_v8 }
 0x8c8   :  { %v2344_v17 = vpop.xlane.xlu1 %2343 }
 0x8fe   :  { %v6485_v12 = vpop.permute.xlu0 %1831 }
 0x8ff   :  { %7469 = vst [vmem:[#allocation17_spill] sm:$0xff] %v6485_v12  ;;  %5159 = vmatmul.mubr.msk.f32.vlgmr.msra.gmra.mrb[4].mxu1 %vm134_vm1, %v6485_v12 }
 0x900   :  { %5273 = vmatpush1.bf16.msra.mxu1 %v5612_v9  ;;  %2012 = vmatprep.mubr.f32.mxu1 %v7459_v15 }
 0x901   :  { %5275 = vmatprep.subr.bf16.mxu1 %v5614_v10 }
 0x904   :  { %5277 = vmatpush1.bf16.msra.mxu1 %v5636_v19 }
 0x905   :  { %5279 = vmatprep.subr.bf16.mxu1 %v5653_v25 }
 0x907   :  { %5007 = vmatmul.mubr.msk.f32.vlgmr.msra.gmra.mrb[6].mxu1 %vm134_vm1, %v6485_v12 }
 0x908   :  { %5281 = vmatpush1.bf16.msra.mxu1 %v5719_v38  ;;  %2086 = vmatprep.mubr.f32.mxu1 %v7459_v15 }
 0x909   :  { %5300 = vmatprep.subr.bf16.mxu1 %v7460_v53 }
 0x90f   :  { %5008 = vmatmul.mubr.msk.f32.vlgmr.msra.gmra.mrb[6].mxu1 %vm209_vm2, %v6400_v20  ;;  %v2348_v20 = vsub.f32 0.0, %v2344_v17 }
 0x910   :  { %5302 = vmatpush3.bf16.msra.mxu1 %v6132_v55  ;;  %5180 = vmatprep.mubr.msk.f32.mxu1 %vm5517_vm15, %v7459_v15 }
 0x911   :  { %5303 = vmatprep.subr.bf16.mxu1 %v7460_v53  ;;  %v2353_v26 = vsel %vm6513_vm3, %v2348_v20, -1e+30 }
 0x914   :  { %5305 = vmatpush3.bf16.msra.mxu1 %v6143_v58 }
 0x915   :  { %5307 = vmatprep.subr.bf16.mxu1 %v5600_v4 }
 0x938   :  { %v2347_v23 = vpop.xlane.xlu0 %2346 }
 0x939   :  { %v2349_v24 = vsub.f32 0.0, %v2347_v23 }
 0x93b   :  { %v2354_v57 = vsel %vm6518_vm4, %v2349_v24, -1e+30 }
 0x93c   :  { %v2355_v0 = vmax.f32 %v2353_v26, %v2354_v57 }
 0x93e   :  { %v2356_v51 = vrot.slane %v2355_v0, 4 }
 0x940   :  { %v2357_v1 = vmax.f32 %v2355_v0, %v2356_v51  ;;  %v2713_v0 = vld [vmem:[%s7416_s12] sm:$0x1]  ;;  %v2714_v51 = vld [vmem:[%s7416_s12 + $0x1] sm:$0x1] }
 0x942   :  { %v2358_v59 = vrot.slane %v2357_v1, 2 }
 0x944   :  { %v2359_v41 = vmax.f32 %v2357_v1, %v2358_v59  ;;  %v2715_v1 = vld [vmem:[%s7416_s12 + $0x2] sm:$0x1]  ;;  %v2716_v59 = vld [vmem:[%s7416_s12 + $0x3] sm:$0x1] }
 0x946   :  { %v2360_v42 = vrot.slane %v2359_v41, 1 }
 0x948   :  { %v2361_v45 = vmax.f32 %v2359_v41, %v2360_v42  ;;  %v2717_v41 = vld [vmem:[%s7416_s12 + $0x4] sm:$0x1]  ;;  %v2718_v42 = vld [vmem:[%s7416_s12 + $0x5] sm:$0x1] }
 0x94a   :  { %5388 = vpush %v2361_v45  ;;  %v2719_v45 = vld [vmem:[%s7416_s12 + $0x6] sm:$0x1] }
 0x97b   :  { %s5389_s15 = spop %5388 }
 0x97c   :  { %v2363_v39 = vstv %s5389_s15  ;;  %s3604_s15 = sadd.s32 5, %s6015_s19 }
 0x97d   :  { %vm2364_vm6 = vcmp.eq.f32.partialorder %v2353_v26, %v2363_v39  ;;  %vm2365_vm7 = vcmp.eq.f32.partialorder %v2354_v57, %v2363_v39  ;;  %v6565_v26 = vld [vmem:[%s7405_s1 + $0x4] sm:$0x1]  ;;  %v2720_v39 = vld [vmem:[%s7416_s12 + $0x7] sm:$0x1]  ;;  %p3605_p11 = scmp.lt.s32.totalorder %s3604_s15, 0 }
 0x97e   :  { %vm2366_vm8 = vmand %vm2364_vm6, %vm6513_vm3  ;;  %v2732_v57 = vrot.slane %v6565_v26, %v5647_v22 }
 0x97f   :  { %vm2367_vm9 = vmand %vm2365_vm7, %vm6518_vm4  ;;  %v2368_v46 = vsel %vm2366_vm8, %v5623_v13, 15 }
 0x980   :  { %v2369_v11 = vsel %vm2367_vm9, %v5854_v30, 15 }
 0x981   :  { %vm2370_vm10 = vcmp.lt.s32.totalorder %v2368_v46, %v2369_v11 }
 0x982   :  { %v2371_v40 = vsel %vm2370_vm10, %v2368_v46, %v2369_v11  ;;  %v2734_v46 = vcombine.high %v2732_v57, %v2732_v57  ;;  %v2741_v11 = vrot.slane %v2732_v57, %v5674_v31 }
 0x983   :  { %v2372_v14 = vrot.slane %v2371_v40, 4 }
 0x985   :  { %vm2373_vm11 = vcmp.lt.s32.totalorder %v2371_v40, %v2372_v14 }
 0x986   :  { %v2374_v61 = vsel %vm2373_vm11, %v2371_v40, %v2372_v14  ;;  %v2721_v40 = vld [vmem:[%s7416_s12 + $0x8] sm:$0x1]  ;;  %v2722_v14 = vld [vmem:[%s7416_s12 + $0x9] sm:$0x1] }
 0x987   :  { %v2375_v21 = vrot.slane %v2374_v61, 2 }
 0x989   :  { %vm2376_vm12 = vcmp.lt.s32.totalorder %v2374_v61, %v2375_v21 }
 0x98a   :  { %v2377_v33 = vsel %vm2376_vm12, %v2374_v61, %v2375_v21  ;;  %v2723_v61 = vld [vmem:[%s7416_s12 + $0xa] sm:$0x1]  ;;  %v2724_v21 = vld [vmem:[%s7416_s12 + $0xb] sm:$0x1] }
 0x98b   :  { %v2378_v62 = vrot.slane %v2377_v33, 1 }
 0x98d   :  { %vm2379_vm13 = vcmp.lt.s32.totalorder %v2377_v33, %v2378_v62 }
 0x98e   :  { %v2380_v44 = vsel %vm2379_vm13, %v2377_v33, %v2378_v62  ;;  %v2725_v33 = vld [vmem:[%s7416_s12 + $0xc] sm:$0x1]  ;;  %v2748_v62 = vrot.slane %v2734_v46, %v5674_v31 }
 0x98f   :  { %5390 = vpush %v2380_v44  ;;  %v2749_v44 = vcombine.high %v2741_v11, %v2741_v11 }
 0x9c0   :  { %s5391_s5 = spop %5390 }
 0x9c1   :  { %s2382_s7 = scalar_lea.vmem %s7417_s13, %s5391_s5  ;;  %s3606_s5 = ssub.s32 0, %s3604_s15 }
 0x9c2   :  { %v2383_v6 = vld [vmem:[%s2382_s7] sm:$0x1]  ;;  %s5041_s0 = smin.u32 %s3606_s5, %s3604_s15 }
 0x9c3   :  { %5446 = vtanh.f32 %v2383_v6  ;;  %v2757_v6 = vrot.slane %v2741_v11, %v5674_v31  ;;  %s3608_s2 = sand.u32 15, %s5041_s0  }
 0x9c4   :  { %s3609_s7 = ssub.s32 0, %s3608_s2 }
 0x9c5   :  { %s7551_s7 = smov (!%p3605_p11, %s3609_s7), %s3608_s2 }
 0x9c6   :  { %p5043_p12 = scmp.lt.s32.totalorder %s7551_s7, 0  ;;  %s3615_s4 = sadd.s32 16, %s7551_s7 }
 0x9c8   :  { %s7553_s4 = smov (!%p5043_p12, %s3615_s4), %s7551_s7 }
 0x9c9   :  { %s3619_s5 = scalar_lea.vmem %s7417_s13, %s7553_s4 }
 0x9cd   :  { %v5447_v43 = vpop.eup %5446 }
 0x9ce   :  { %v2389_v50 = vsel %vm2388_vm14, %v5447_v43, 0.0  ;;  %v2727_v43 = vld [vmem:[%s7416_s12 + $0xe] sm:$0x1] }
 0x9cf   :  { %v6537_v2 = vrot.slane %v2389_v50, %v5647_v22  ;;  %v2728_v50 = vld [vmem:[%s7416_s12 + $0xf] sm:$0x1] }
 0x9d0   :  { %3021 = vst.msk [vmem:[%s3020_s9] sm:$0x1] %vm61_vm0, %v6565_v26  ;;  %s6673_s9 = sadd.s32 4, %s5849_s30 }
 0x9d1   :  { %7474 = vst [vmem:[#allocation18_spill] sm:$0xff] %v6537_v2  ;;  %2395 = vrot.lane.b32.xlu1 %v6537_v2, %s5514_s18  ;;  %p2711_p9 = scmp.lt.s32.totalorder %s6673_s9, 16  ;;  %p5023_p10 = scmp.gt.s32.totalorder %s6673_s9, 0 }
 0x9d2   :  { %v6541_v60 = vpop.f32.mrb[4].mxu1 }
 0x9d3   :  { %7475 = vst [vmem:[#allocation19_spill] sm:$0xff] %v6541_v60  ;;  %v5160_v16 = vpop.f32.mrb[5].mxu1  ;;  %s2712_s25 = scalar_select %p2711_p9, %s6673_s9, 16 }
 0x9d4   :  { %v2750_v16 = vcombine.high %v2748_v62, %v2748_v62  ;;  %s5081_s14 = scalar_select %p5023_p10, 1, 0 }
 0x9d5   :  { %s3617_s9 = scalar_lea.vmem %s7416_s12, %s7553_s4 }
 0x9e2   :  { %v2088_v7 = vpop.f32.mrb[6].mxu1 }
 0x9e3   :  { %v2090_v52 = vpop.f32.mrb[7].mxu1  ;;  %v2093_v35 = vadd.f32 %v2088_v7, %v6001_v27  ;;  %v2764_v7 = vrot.slane %v2748_v62, %v5674_v31 }
 0x9e4   :  { %v2094_v18 = vadd.f32 %v2090_v52, %v5986_v63  ;;  %v2771_v52 = vrot.slane %v2749_v44, %v5674_v31 }
 0x9e5   :  { %v5009_v36 = vmul.f32 -1.442695, %v2093_v35  ;;  %v2803_v46 = vsub.f32 %v2725_v33, %v2764_v7 }
 0x9e6   :  { %5448 = vtanh.f32 %v2094_v18  ;;  %v2778_v18 = vrot.slane %v2750_v16, %v5674_v31 }
 0x9e7   :  { %5450 = vpow2.f32 %v5009_v36  ;;  %v2781_v36 = vcombine.high %v2771_v52, %v2771_v52 }
 0x9e8   :  { %v2804_v11 = vsub.f32 %v2726_v28, %v2778_v18  ;;  %v2796_v44 = vsub.f32 %v2718_v42, %v2778_v18 }
 0x9e9   :  { %v2802_v57 = vsub.f32 %v2724_v21, %v2781_v36  ;;  %v2794_v62 = vsub.f32 %v2716_v59, %v2781_v36 }
 0x9ea   :  { %v2812_v21 = vmul.f32 %v2796_v44, %v2796_v44 }
 0x9f0   :  { %v5449_v29 = vpop.eup %5448 }
 0x9f1   :  { %2104 = vrot.lane.b32.xlu0 %v5449_v29, %s5513_s16  ;;  %v5451_v37 = vpop.eup %5450  ;;  %v2779_v29 = vcombine.high %v2757_v6, %v2757_v6 }
 0x9f2   :  { %v2098_v47 = vadd.f32 1.0, %v5451_v37  ;;  %v2791_v37 = vsub.f32 %v2713_v0, %v2757_v6 }
 0x9f4   :  { %5452 = vrcp.f32 %v2098_v47  ;;  %v2780_v47 = vcombine.high %v2764_v7, %v2764_v7 }
 0x9f6   :  { %v2797_v16 = vsub.f32 %v2719_v45, %v2780_v47  ;;  %v2805_v12 = vsub.f32 %v2727_v43, %v2780_v47 }
 0x9f8   :  { %v2813_v59 = vmul.f32 %v2797_v16, %v2797_v16 }
 0x9fe   :  { %v6546_v48 = vpop.eup %5452 }
 0x9ff   :  { %7476 = vst [vmem:[#allocation20_spill] sm:$0xff] %v6546_v48  ;;  %v2102_v20 = vmul.f32 %v6546_v48, %v6394_v32 }
 0xa43   :  { %v2396_v3 = vpop.permute.xlu1 %2395 }
 0xa44   :  { %v2398_v8 = vmul.f32 %v6546_v48, %v2396_v3  ;;  %v2782_v3 = vcombine.high %v2778_v18, %v2778_v18 }
 0xa46   :  { %2400 = vrot.lane.b32.xlu0 %v2398_v8, %s5513_s16  ;;  %v2799_v8 = vsub.f32 %v2721_v40, %v2757_v6  ;;  %v2798_v34 = vsub.f32 %v2720_v39, %v2782_v3  ;;  %v2806_v0 = vsub.f32 %v2728_v50, %v2782_v3  ;;  %v2810_v6 = vmul.f32 %v2794_v62, %v2794_v62 }
 0xa48   :  { %v2815_v60 = vmul.f32 %v2799_v8, %v2799_v8  ;;  %v2822_v33 = vmul.f32 %v2806_v0, %v2806_v0  ;;  %v2814_v42 = vmul.f32 %v2798_v34, %v2798_v34 }
 0xa63   :  { %v2105_v17 = vpop.permute.xlu0 %2104 }
 0xa64   :  { %v2107_v5 = vmul.f32 %v6546_v48, %v2105_v17  ;;  %v2800_v17 = vsub.f32 %v2722_v14, %v2771_v52 }
 0xa66   :  { %2109 = vrot.lane.b32.xlu1 %v2107_v5, %s5514_s18  ;;  %v2792_v5 = vsub.f32 %v2714_v51, %v2771_v52  ;;  %v2818_v51 = vmul.f32 %v2802_v57, %v2802_v57 }
 0xa68   :  { %v2808_v2 = vmul.f32 %v2792_v5, %v2792_v5 }
 0xab8   :  { %v2401_v23 = vpop.permute.xlu0 %2400 }
 0xad8   :  { %v2110_v56 = vpop.permute.xlu1 %2109 }
 0xad9   :  { %v2112_v54 = vadd.f32 %v2110_v56, %v2102_v20  ;;  %v2793_v20 = vsub.f32 %v2715_v1, %v2779_v29  ;;  %v2795_v56 = vsub.f32 %v2717_v41, %v2764_v7  ;;  %v2819_v1 = vmul.f32 %v2803_v46, %v2803_v46 }
 0xada   :  { %v2820_v41 = vmul.f32 %v2804_v11, %v2804_v11 }
 0xadb   :  { %v6559_v24 = vadd.f32 %v2401_v23, %v2112_v54  ;;  %v2801_v54 = vsub.f32 %v2723_v61, %v2779_v29  ;;  %v2807_v23 = vmul.f32 %v2791_v37, %v2791_v37  ;;  %v2809_v32 = vmul.f32 %v2793_v20, %v2793_v20 }
 0xadc   :  { %v2811_v40 = vmul.f32 %v2795_v56, %v2795_v56  ;;  %v2821_v61 = vmul.f32 %v2805_v12, %v2805_v12  ;;  %v2890_v43 = vcombine.low %v2819_v1, %v2820_v41  ;;  %v2842_v37 = vcombine.low %v2813_v59, %v2814_v42 }
 0xadd   :  { %7477 = vst [vmem:[#allocation21_spill] sm:$0xff] %v6559_v24  ;;  %5454 = vtanh.f32 %v6559_v24  ;;  %2426 = vst.msk [vmem:[%s2425_s26] sm:$0x1] %vm94_vm5, %v6559_v24  ;;  %v2817_v14 = vmul.f32 %v2801_v54, %v2801_v54  ;;  %v2839_v18 = vcombine.low %v2807_v23, %v2808_v2  ;;  %v2840_v36 = vcombine.low %v2809_v32, %v2810_v6 }
 0xade   :  { %v2891_v39 = vcombine.low %v2821_v61, %v2822_v33  ;;  %v2912_v52 = vrot.slane %v2890_v43, %v5674_v31  ;;  %v2841_v12 = vcombine.low %v2811_v40, %v2812_v21  ;;  %v2870_v20 = vrot.slane %v2842_v37, %v5674_v31 }
 0xadf   :  { %v2889_v45 = vcombine.low %v2817_v14, %v2818_v51  ;;  %v2849_v8 = vrot.slane %v2839_v18, %v5674_v31 }
 0xae0   :  { %v2919_v29 = vrot.slane %v2891_v39, %v5674_v31  ;;  %v2863_v5 = vrot.slane %v2841_v12, %v5674_v31 }
 0xae1   :  { %v2905_v7 = vrot.slane %v2889_v45, %v5674_v31 }
 0xae2   :  { %v2921_v3 = vcombine.low %v2912_v52, %v2919_v29  ;;  %v2872_v54 = vcombine.low %v2863_v5, %v2870_v20 }
 0xae4   :  { %v2935_v34 = vrot.slane %v2921_v3, %v5674_v31  ;;  %v2886_v23 = vrot.slane %v2872_v54, %v5674_v31  ;;  %v2984_v3 = vstv %s5081_s14 }
 0xae5   :  { %vm2985_vm14 = vcmp.eq.s32.totalorder %v2984_v3, 1  ;;  %v3323_v3 = vld [vmem:[%s7416_s12 + $0xd] sm:$0x1] }
 0xae7   :  { %v5455_v35 = vpop.eup %5454 }
 0xae8   :  { %2406 = vrot.lane.b32.xlu1 %v5455_v35, %s5515_s6  ;;  %v2816_v35 = vmul.f32 %v2800_v17, %v2800_v17  ;;  %v2856_v17 = vrot.slane %v2840_v36, %v5674_v31 }
 0xaea   :  { %v2888_v28 = vcombine.low %v2815_v60, %v2816_v35  ;;  %v2871_v56 = vcombine.low %v2849_v8, %v2856_v17  ;;  %v2947_v35 = vstv %s2712_s25 }
 0xaeb   :  { %vm6678_vm3 = vcmp.lt.s32.totalorder %v5623_v13, %v2947_v35  ;;  %vm6683_vm4 = vcmp.lt.s32.totalorder %v5854_v30, %v2947_v35 }
 0xaec   :  { %v2898_v50 = vrot.slane %v2888_v28, %v5674_v31  ;;  %v2879_v32 = vrot.slane %v2871_v56, %v5674_v31 }
 0xaee   :  { %v2920_v47 = vcombine.low %v2898_v50, %v2905_v7  ;;  %v2887_v57 = vcombine.low %v2879_v32, %v2886_v23 }
 0xaf0   :  { %v2928_v60 = vrot.slane %v2920_v47, %v5674_v31  ;;  %v2939_v46 = vsel %vm209_vm2, %v2887_v57, 0.0 }
 0xaf2   :  { %v2936_v2 = vcombine.low %v2928_v60, %v2935_v34 }
 0xaf4   :  { %v2942_v44 = vsel %vm209_vm2, %v2936_v2, 0.0 }
 0xb0c   :  { %2940 = vadd.xlane.f32.xlu1 %v2939_v46 }
 0xb5a   :  { %v2407_v11 = vpop.permute.xlu1 %2406 }
 0xb5b   :  { %v2409_v62 = vmul.f32 %v6546_v48, %v2407_v11 }
 0xb5d   :  { %2428 = vrot.lane.b32.xlu0 %v2409_v62, %s5515_s6 }
 0xb7c   :  { %2943 = vadd.xlane.f32.xlu0 %v2942_v44 }
 0xb99   :  { %v2941_v0 = vpop.xlane.xlu1 %2940 }
 0xbcf   :  { %v6650_v16 = vpop.permute.xlu0 %2428 }
 0xbd0   :  { %7478 = vst [vmem:[#allocation22_spill] sm:$0xff] %v6650_v16  ;;  %5170 = vmatmul.mubr.msk.f32.vlgmr.msra.gmra.mrb[6].mxu0 %vm134_vm1, %v6650_v16 }
 0xbd1   :  { %5291 = vmatpush1.bf16.msra.mxu0 %v5612_v9  ;;  %2609 = vmatprep.mubr.f32.mxu0 %v7459_v15 }
 0xbd2   :  { %5293 = vmatprep.subr.bf16.mxu0 %v5614_v10 }
 0xbd5   :  { %5295 = vmatpush1.bf16.msra.mxu0 %v5636_v19 }
 0xbd6   :  { %5297 = vmatprep.subr.bf16.mxu0 %v5653_v25 }
 0xbd8   :  { %5020 = vmatmul.mubr.msk.f32.vlgmr.msra.gmra.mrb[8].mxu0 %vm134_vm1, %v6650_v16 }
 0xbd9   :  { %5299 = vmatpush1.bf16.msra.mxu0 %v5719_v38  ;;  %2683 = vmatprep.mubr.f32.mxu0 %v7459_v15 }
 0xbda   :  { %5318 = vmatprep.subr.bf16.mxu0 %v7460_v53 }
 0xbe0   :  { %5021 = vmatmul.mubr.msk.f32.vlgmr.msra.gmra.mrb[8].mxu0 %vm209_vm2, %v6565_v26  ;;  %v2945_v26 = vsub.f32 0.0, %v2941_v0 }
 0xbe1   :  { %5320 = vmatpush3.bf16.msra.mxu0 %v6132_v55  ;;  %5191 = vmatprep.mubr.msk.f32.mxu0 %vm5517_vm15, %v7459_v15 }
 0xbe2   :  { %5321 = vmatprep.subr.bf16.mxu0 %v7460_v53  ;;  %v2950_v41 = vsel %vm6678_vm3, %v2945_v26, -1e+30 }
 0xbe5   :  { %5323 = vmatpush3.bf16.msra.mxu0 %v6143_v58 }
 0xbe6   :  { %5325 = vmatprep.subr.bf16.mxu0 %v5600_v4 }
 0xc09   :  { %v2944_v51 = vpop.xlane.xlu0 %2943 }
 0xc0a   :  { %v2946_v1 = vsub.f32 0.0, %v2944_v51 }
 0xc0c   :  { %v2951_v61 = vsel %vm6683_vm4, %v2946_v1, -1e+30 }
 0xc0d   :  { %v2952_v6 = vmax.f32 %v2950_v41, %v2951_v61 }
 0xc0f   :  { %v2953_v21 = vrot.slane %v2952_v6, 4 }
 0xc11   :  { %v2954_v33 = vmax.f32 %v2952_v6, %v2953_v21  ;;  %v3310_v6 = vld [vmem:[%s7416_s12] sm:$0x1]  ;;  %v3311_v21 = vld [vmem:[%s7416_s12 + $0x1] sm:$0x1] }
 0xc13   :  { %v2955_v28 = vrot.slane %v2954_v33, 2 }
 0xc15   :  { %v2956_v59 = vmax.f32 %v2954_v33, %v2955_v28  ;;  %v3312_v33 = vld [vmem:[%s7416_s12 + $0x2] sm:$0x1]  ;;  %v3313_v28 = vld [vmem:[%s7416_s12 + $0x3] sm:$0x1] }
 0xc17   :  { %v2957_v42 = vrot.slane %v2956_v59, 1 }
 0xc19   :  { %v2958_v45 = vmax.f32 %v2956_v59, %v2957_v42  ;;  %v3314_v59 = vld [vmem:[%s7416_s12 + $0x4] sm:$0x1]  ;;  %v3315_v42 = vld [vmem:[%s7416_s12 + $0x5] sm:$0x1] }
 0xc1b   :  { %5392 = vpush %v2958_v45  ;;  %v3316_v45 = vld [vmem:[%s7416_s12 + $0x6] sm:$0x1] }
 0xc4c   :  { %s5393_s26 = spop %5392 }
 0xc4d   :  { %v2960_v43 = vstv %s5393_s26  ;;  %s4201_s26 = sadd.s32 6, %s6015_s19 }
 0xc4e   :  { %vm2961_vm6 = vcmp.eq.f32.partialorder %v2950_v41, %v2960_v43  ;;  %vm2962_vm7 = vcmp.eq.f32.partialorder %v2951_v61, %v2960_v43  ;;  %v6730_v41 = vld [vmem:[%s7405_s1 + $0x5] sm:$0x1]  ;;  %v3317_v43 = vld [vmem:[%s7416_s12 + $0x7] sm:$0x1]  ;;  %p4202_p1 = scmp.lt.s32.totalorder %s4201_s26, 0 }
 0xc4f   :  { %vm2963_vm8 = vmand %vm2961_vm6, %vm6678_vm3  ;;  %v3329_v61 = vrot.slane %v6730_v41, %v5647_v22 }
 0xc50   :  { %vm2964_vm9 = vmand %vm2962_vm7, %vm6683_vm4  ;;  %v2965_v39 = vsel %vm2963_vm8, %v5623_v13, 15 }
 0xc51   :  { %v2966_v50 = vsel %vm2964_vm9, %v5854_v30, 15 }
 0xc52   :  { %vm2967_vm10 = vcmp.lt.s32.totalorder %v2965_v39, %v2966_v50 }
 0xc53   :  { %v2968_v7 = vsel %vm2967_vm10, %v2965_v39, %v2966_v50  ;;  %v3331_v39 = vcombine.high %v3329_v61, %v3329_v61  ;;  %v3338_v50 = vrot.slane %v3329_v61, %v5674_v31 }
 0xc54   :  { %v2969_v52 = vrot.slane %v2968_v7, 4 }
 0xc56   :  { %vm2970_vm11 = vcmp.lt.s32.totalorder %v2968_v7, %v2969_v52 }
 0xc57   :  { %v2971_v18 = vsel %vm2970_vm11, %v2968_v7, %v2969_v52  ;;  %v3318_v7 = vld [vmem:[%s7416_s12 + $0x8] sm:$0x1]  ;;  %v3319_v52 = vld [vmem:[%s7416_s12 + $0x9] sm:$0x1] }
 0xc58   :  { %v2972_v29 = vrot.slane %v2971_v18, 2 }
 0xc5a   :  { %vm2973_vm12 = vcmp.lt.s32.totalorder %v2971_v18, %v2972_v29 }
 0xc5b   :  { %v2974_v36 = vsel %vm2973_vm12, %v2971_v18, %v2972_v29  ;;  %v3320_v18 = vld [vmem:[%s7416_s12 + $0xa] sm:$0x1]  ;;  %v3321_v29 = vld [vmem:[%s7416_s12 + $0xb] sm:$0x1] }
 0xc5c   :  { %v2975_v12 = vrot.slane %v2974_v36, 1 }
 0xc5e   :  { %vm2976_vm13 = vcmp.lt.s32.totalorder %v2974_v36, %v2975_v12 }
 0xc5f   :  { %v2977_v37 = vsel %vm2976_vm13, %v2974_v36, %v2975_v12  ;;  %v3322_v36 = vld [vmem:[%s7416_s12 + $0xc] sm:$0x1]  ;;  %v3345_v12 = vrot.slane %v3331_v39, %v5674_v31 }
 0xc60   :  { %5394 = vpush %v2977_v37  ;;  %v3346_v37 = vcombine.high %v3338_v50, %v3338_v50 }
 0xc91   :  { %s5395_s28 = spop %5394 }
 0xc92   :  { %s2979_s29 = scalar_lea.vmem %s7417_s13, %s5395_s28  ;;  %s4203_s28 = ssub.s32 0, %s4201_s26 }
 0xc93   :  { %v2980_v47 = vld [vmem:[%s2979_s29] sm:$0x1]  ;;  %s5054_s8 = smin.u32 %s4203_s28, %s4201_s26 }
 0xc94   :  { %5456 = vtanh.f32 %v2980_v47  ;;  %v3354_v47 = vrot.slane %v3338_v50, %v5674_v31  ;;  %s4205_s3 = sand.u32 15, %s5054_s8  }
 0xc95   :  { %s4206_s29 = ssub.s32 0, %s4205_s3 }
 0xc96   :  { %s7555_s29 = smov (!%p4202_p1, %s4206_s29), %s4205_s3 }
 0xc97   :  { %p5056_p2 = scmp.lt.s32.totalorder %s7555_s29, 0  ;;  %s4212_s0 = sadd.s32 16, %s7555_s29 }
 0xc99   :  { %s7557_s0 = smov (!%p5056_p2, %s4212_s0), %s7555_s29 }
 0xc9a   :  { %s4216_s28 = scalar_lea.vmem %s7417_s13, %s7557_s0 }
 0xc9e   :  { %v5457_v60 = vpop.eup %5456 }
 0xc9f   :  { %v2986_v34 = vsel %vm2985_vm14, %v5457_v60, 0.0  ;;  %v3324_v60 = vld [vmem:[%s7416_s12 + $0xe] sm:$0x1] }
 0xca0   :  { %v6702_v8 = vrot.slane %v2986_v34, %v5647_v22  ;;  %v3325_v34 = vld [vmem:[%s7416_s12 + $0xf] sm:$0x1] }
 0xca1   :  { %3618 = vst.msk [vmem:[%s3617_s9] sm:$0x1] %vm61_vm0, %v6730_v41  ;;  %s6838_s9 = sadd.s32 5, %s5849_s30 }
 0xca2   :  { %7483 = vst [vmem:[#allocation23_spill] sm:$0xff] %v6702_v8  ;;  %2992 = vrot.lane.b32.xlu1 %v6702_v8, %s5514_s18  ;;  %p3308_p13 = scmp.lt.s32.totalorder %s6838_s9, 16  ;;  %p5036_p0 = scmp.gt.s32.totalorder %s6838_s9, 0 }
 0xca3   :  { %v6706_v17 = vpop.f32.mrb[6].mxu0 }
 0xca4   :  { %7484 = vst [vmem:[#allocation24_spill] sm:$0xff] %v6706_v17  ;;  %v5171_v5 = vpop.f32.mrb[7].mxu0  ;;  %s3309_s21 = scalar_select %p3308_p13, %s6838_s9, 16 }
 0xca5   :  { %v3347_v5 = vcombine.high %v3345_v12, %v3345_v12  ;;  %s5083_s25 = scalar_select %p5036_p0, 1, 0 }
 0xca6   :  { %s4214_s9 = scalar_lea.vmem %s7416_s12, %s7557_s0 }
 0xcb3   :  { %v2685_v20 = vpop.f32.mrb[8].mxu0 }
 0xcb4   :  { %v2687_v2 = vpop.f32.mrb[9].mxu0  ;;  %v2690_v32 = vadd.f32 %v2685_v20, %v6001_v27  ;;  %v3361_v20 = vrot.slane %v3345_v12, %v5674_v31 }
 0xcb5   :  { %v2691_v56 = vadd.f32 %v2687_v2, %v5986_v63  ;;  %v3368_v2 = vrot.slane %v3346_v37, %v5674_v31 }
 0xcb6   :  { %v5022_v23 = vmul.f32 -1.442695, %v2690_v32  ;;  %v3400_v39 = vsub.f32 %v3322_v36, %v3361_v20 }
 0xcb7   :  { %5458 = vtanh.f32 %v2691_v56  ;;  %v3375_v56 = vrot.slane %v3347_v5, %v5674_v31 }
 0xcb8   :  { %5460 = vpow2.f32 %v5022_v23  ;;  %v3378_v23 = vcombine.high %v3368_v2, %v3368_v2 }
 0xcb9   :  { %v3401_v50 = vsub.f32 %v3323_v3, %v3375_v56  ;;  %v3393_v37 = vsub.f32 %v3315_v42, %v3375_v56 }
 0xcba   :  { %v3399_v61 = vsub.f32 %v3321_v29, %v3378_v23  ;;  %v3391_v12 = vsub.f32 %v3313_v28, %v3378_v23 }
 0xcbb   :  { %v3409_v29 = vmul.f32 %v3393_v37, %v3393_v37 }
 0xcc1   :  { %v5459_v54 = vpop.eup %5458 }
 0xcc2   :  { %2701 = vrot.lane.b32.xlu0 %v5459_v54, %s5513_s16  ;;  %v5461_v57 = vpop.eup %5460  ;;  %v3376_v54 = vcombine.high %v3354_v47, %v3354_v47 }
 0xcc3   :  { %v2695_v46 = vadd.f32 1.0, %v5461_v57  ;;  %v3388_v57 = vsub.f32 %v3310_v6, %v3354_v47 }
 0xcc5   :  { %5462 = vrcp.f32 %v2695_v46  ;;  %v3377_v46 = vcombine.high %v3361_v20, %v3361_v20 }
 0xcc7   :  { %v3394_v5 = vsub.f32 %v3316_v45, %v3377_v46  ;;  %v3402_v16 = vsub.f32 %v3324_v60, %v3377_v46 }
 0xcc9   :  { %v3410_v28 = vmul.f32 %v3394_v5, %v3394_v5 }
 0xccf   :  { %v6711_v11 = vpop.eup %5462 }
 0xcd0   :  { %7485 = vst [vmem:[#allocation25_spill] sm:$0xff] %v6711_v11  ;;  %v2699_v26 = vmul.f32 %v6711_v11, %v6559_v24 }
 0xd14   :  { %v2993_v62 = vpop.permute.xlu1 %2992 }
 0xd15   :  { %v2995_v44 = vmul.f32 %v6711_v11, %v2993_v62  ;;  %v3379_v62 = vcombine.high %v3375_v56, %v3375_v56 }
 0xd17   :  { %2997 = vrot.lane.b32.xlu0 %v2995_v44, %s5513_s16  ;;  %v3396_v44 = vsub.f32 %v3318_v7, %v3354_v47  ;;  %v3395_v17 = vsub.f32 %v3317_v43, %v3379_v62  ;;  %v3403_v6 = vsub.f32 %v3325_v34, %v3379_v62  ;;  %v3407_v47 = vmul.f32 %v3391_v12, %v3391_v12 }
 0xd19   :  { %v3412_v48 = vmul.f32 %v3396_v44, %v3396_v44  ;;  %v3419_v36 = vmul.f32 %v3403_v6, %v3403_v6  ;;  %v3411_v42 = vmul.f32 %v3395_v17, %v3395_v17 }
 0xd34   :  { %v2702_v0 = vpop.permute.xlu0 %2701 }
 0xd35   :  { %v2704_v35 = vmul.f32 %v6711_v11, %v2702_v0  ;;  %v3397_v0 = vsub.f32 %v3319_v52, %v3368_v2 }
 0xd37   :  { %2706 = vrot.lane.b32.xlu1 %v2704_v35, %s5514_s18  ;;  %v3389_v35 = vsub.f32 %v3311_v21, %v3368_v2  ;;  %v3415_v21 = vmul.f32 %v3399_v61, %v3399_v61 }
 0xd39   :  { %v3405_v24 = vmul.f32 %v3389_v35, %v3389_v35 }
 0xd89   :  { %v2998_v51 = vpop.permute.xlu0 %2997 }
 0xda9   :  { %v2707_v40 = vpop.permute.xlu1 %2706 }
 0xdaa   :  { %v2709_v14 = vadd.f32 %v2707_v40, %v2699_v26  ;;  %v3390_v26 = vsub.f32 %v3312_v33, %v3376_v54  ;;  %v3392_v40 = vsub.f32 %v3314_v59, %v3361_v20  ;;  %v3416_v33 = vmul.f32 %v3400_v39, %v3400_v39 }
 0xdab   :  { %v3417_v59 = vmul.f32 %v3401_v50, %v3401_v50 }
 0xdac   :  { %v6724_v1 = vadd.f32 %v2998_v51, %v2709_v14  ;;  %v3398_v14 = vsub.f32 %v3320_v18, %v3376_v54  ;;  %v3404_v51 = vmul.f32 %v3388_v57, %v3388_v57  ;;  %v3406_v8 = vmul.f32 %v3390_v26, %v3390_v26 }
 0xdad   :  { %v3408_v7 = vmul.f32 %v3392_v40, %v3392_v40  ;;  %v3418_v18 = vmul.f32 %v3402_v16, %v3402_v16  ;;  %v3487_v60 = vcombine.low %v3416_v33, %v3417_v59  ;;  %v3439_v57 = vcombine.low %v3410_v28, %v3411_v42 }
 0xdae   :  { %5464 = vtanh.f32 %v6724_v1  ;;  %3023 = vst.msk [vmem:[%s3022_s22] sm:$0x1] %vm94_vm5, %v6724_v1  ;;  %v3414_v52 = vmul.f32 %v3398_v14, %v3398_v14  ;;  %v3436_v56 = vcombine.low %v3404_v51, %v3405_v24  ;;  %v3437_v23 = vcombine.low %v3406_v8, %v3407_v47 }
 0xdaf   :  { %v3488_v43 = vcombine.low %v3418_v18, %v3419_v36  ;;  %v3509_v2 = vrot.slane %v3487_v60, %v5674_v31  ;;  %v3438_v16 = vcombine.low %v3408_v7, %v3409_v29  ;;  %v3467_v26 = vrot.slane %v3439_v57, %v5674_v31 }
 0xdb0   :  { %v3486_v45 = vcombine.low %v3414_v52, %v3415_v21  ;;  %v3446_v44 = vrot.slane %v3436_v56, %v5674_v31 }
 0xdb1   :  { %v3516_v54 = vrot.slane %v3488_v43, %v5674_v31  ;;  %v3460_v35 = vrot.slane %v3438_v16, %v5674_v31 }
 0xdb2   :  { %v3502_v20 = vrot.slane %v3486_v45, %v5674_v31 }
 0xdb3   :  { %v3518_v62 = vcombine.low %v3509_v2, %v3516_v54  ;;  %v3469_v14 = vcombine.low %v3460_v35, %v3467_v26 }
 0xdb5   :  { %v3532_v17 = vrot.slane %v3518_v62, %v5674_v31  ;;  %v3483_v51 = vrot.slane %v3469_v14, %v5674_v31 }
 0xdb8   :  { %v5465_v32 = vpop.eup %5464 }
 0xdb9   :  { %3003 = vrot.lane.b32.xlu1 %v5465_v32, %s5515_s6  ;;  %v3413_v32 = vmul.f32 %v3397_v0, %v3397_v0  ;;  %v3453_v0 = vrot.slane %v3437_v23, %v5674_v31 }
 0xdbb   :  { %v3485_v3 = vcombine.low %v3412_v48, %v3413_v32  ;;  %v3468_v40 = vcombine.low %v3446_v44, %v3453_v0  ;;  %v3544_v32 = vstv %s3309_s21 }
 0xdbc   :  { %vm6843_vm3 = vcmp.lt.s32.totalorder %v5623_v13, %v3544_v32  ;;  %vm6848_vm4 = vcmp.lt.s32.totalorder %v5854_v30, %v3544_v32 }
 0xdbd   :  { %v3495_v34 = vrot.slane %v3485_v3, %v5674_v31  ;;  %v3476_v8 = vrot.slane %v3468_v40, %v5674_v31 }
 0xdbf   :  { %v3517_v46 = vcombine.low %v3495_v34, %v3502_v20  ;;  %v3484_v61 = vcombine.low %v3476_v8, %v3483_v51 }
 0xdc1   :  { %v3525_v48 = vrot.slane %v3517_v46, %v5674_v31  ;;  %v3536_v39 = vsel %vm209_vm2, %v3484_v61, 0.0  ;;  %v3581_v46 = vstv %s5083_s25 }
 0xdc2   :  { %vm3582_vm14 = vcmp.eq.s32.totalorder %v3581_v46, 1  ;;  %v3921_v46 = vld [vmem:[%s7416_s12 + $0xe] sm:$0x1] }
 0xdc3   :  { %v3533_v24 = vcombine.low %v3525_v48, %v3532_v17 }
 0xdc5   :  { %v3539_v37 = vsel %vm209_vm2, %v3533_v24, 0.0 }
 0xddd   :  { %3537 = vadd.xlane.f32.xlu1 %v3536_v39 }
 0xe2b   :  { %v3004_v50 = vpop.permute.xlu1 %3003 }
 0xe2c   :  { %v3006_v12 = vmul.f32 %v6711_v11, %v3004_v50 }
 0xe2e   :  { %3025 = vrot.lane.b32.xlu0 %v3006_v12, %s5515_s6 }
 0xe4d   :  { %3540 = vadd.xlane.f32.xlu0 %v3539_v37 }
 0xe6a   :  { %v3538_v6 = vpop.xlane.xlu1 %3537 }
 0xea0   :  { %v6815_v5 = vpop.permute.xlu0 %3025 }
 0xea1   :  { %7486 = vst [vmem:[#allocation26_spill] sm:$0xff] %v6815_v5  ;;  %5181 = vmatmul.mubr.msk.f32.vlgmr.msra.gmra.mrb[8].mxu1 %vm134_vm1, %v6815_v5 }
 0xea2   :  { %5309 = vmatpush1.bf16.msra.mxu1 %v5612_v9  ;;  %3206 = vmatprep.mubr.f32.mxu1 %v7459_v15 }
 0xea3   :  { %5311 = vmatprep.subr.bf16.mxu1 %v5614_v10 }
 0xea6   :  { %5313 = vmatpush1.bf16.msra.mxu1 %v5636_v19 }
 0xea7   :  { %5315 = vmatprep.subr.bf16.mxu1 %v5653_v25 }
 0xea9   :  { %5033 = vmatmul.mubr.msk.f32.vlgmr.msra.gmra.mrb[10].mxu1 %vm134_vm1, %v6815_v5 }
 0xeaa   :  { %5317 = vmatpush1.bf16.msra.mxu1 %v5719_v38  ;;  %3280 = vmatprep.mubr.f32.mxu1 %v7459_v15 }
 0xeab   :  { %5336 = vmatprep.subr.bf16.mxu1 %v7460_v53 }
 0xeb1   :  { %5034 = vmatmul.mubr.msk.f32.vlgmr.msra.gmra.mrb[10].mxu1 %vm209_vm2, %v6730_v41  ;;  %v3542_v41 = vsub.f32 0.0, %v3538_v6 }
 0xeb2   :  { %5338 = vmatpush3.bf16.msra.mxu1 %v6132_v55  ;;  %5202 = vmatprep.mubr.msk.f32.mxu1 %vm5517_vm15, %v7459_v15 }
 0xeb3   :  { %5339 = vmatprep.subr.bf16.mxu1 %v7460_v53  ;;  %v3547_v33 = vsel %vm6843_vm3, %v3542_v41, -1e+30 }
 0xeb6   :  { %5341 = vmatpush3.bf16.msra.mxu1 %v6143_v58 }
 0xeb7   :  { %5343 = vmatprep.subr.bf16.mxu1 %v5600_v4 }
 0xeda   :  { %v3541_v4 = vpop.xlane.xlu0 %3540 }
 0xedb   :  { %v3543_v21 = vsub.f32 0.0, %v3541_v4 }
 0xedd   :  { %v3548_v59 = vsel %vm6848_vm4, %v3543_v21, -1e+30  ;;  %v6895_v21 = vld [vmem:[%s7405_s1 + $0x6] sm:$0x1] }
 0xede   :  { %v3549_v18 = vmax.f32 %v3547_v33, %v3548_v59 }
 0xee0   :  { %v3550_v47 = vrot.slane %v3549_v18, 4 }
 0xee2   :  { %v3551_v29 = vmax.f32 %v3549_v18, %v3550_v47  ;;  %v3908_v18 = vld [vmem:[%s7416_s12 + $0x1] sm:$0x1]  ;;  %v3909_v47 = vld [vmem:[%s7416_s12 + $0x2] sm:$0x1] }
 0xee4   :  { %v3552_v36 = vrot.slane %v3551_v29, 2 }
 0xee6   :  { %v3553_v3 = vmax.f32 %v3551_v29, %v3552_v36  ;;  %v3910_v29 = vld [vmem:[%s7416_s12 + $0x3] sm:$0x1]  ;;  %v3911_v36 = vld [vmem:[%s7416_s12 + $0x4] sm:$0x1] }
 0xee8   :  { %v3554_v28 = vrot.slane %v3553_v3, 1 }
 0xeea   :  { %v3555_v42 = vmax.f32 %v3553_v3, %v3554_v28  ;;  %v3912_v3 = vld [vmem:[%s7416_s12 + $0x5] sm:$0x1]  ;;  %v3913_v28 = vld [vmem:[%s7416_s12 + $0x6] sm:$0x1] }
 0xeec   :  { %5396 = vpush %v3555_v42  ;;  %v3914_v42 = vld [vmem:[%s7416_s12 + $0x7] sm:$0x1] }
 0xf1d   :  { %s5397_s22 = spop %5396 }
 0xf1e   :  { %v3557_v45 = vstv %s5397_s22  ;;  %s4798_s22 = sadd.s32 7, %s6015_s19 }
 0xf1f   :  { %vm3558_vm6 = vcmp.eq.f32.partialorder %v3547_v33, %v3557_v45  ;;  %vm3559_vm7 = vcmp.eq.f32.partialorder %v3548_v59, %v3557_v45  ;;  %v3926_v33 = vrot.slane %v6895_v21, %v5647_v22  ;;  %v3907_v59 = vld [vmem:[%s7416_s12] sm:$0x1]  ;;  %p4799_p5 = scmp.lt.s32.totalorder %s4798_s22, 0 }
 0xf20   :  { %vm3560_vm8 = vmand %vm3558_vm6, %vm6843_vm3 }
 0xf21   :  { %vm3561_vm9 = vmand %vm3559_vm7, %vm6848_vm4  ;;  %v3562_v60 = vsel %vm3560_vm8, %v5623_v13, 15  ;;  %v3928_v45 = vcombine.high %v3926_v33, %v3926_v33 }
 0xf22   :  { %v3563_v43 = vsel %vm3561_vm9, %v5854_v30, 15 }
 0xf23   :  { %vm3564_vm10 = vcmp.lt.s32.totalorder %v3562_v60, %v3563_v43 }
 0xf24   :  { %v3565_v34 = vsel %vm3564_vm10, %v3562_v60, %v3563_v43  ;;  %v3935_v60 = vrot.slane %v3926_v33, %v5674_v31  ;;  %v3915_v43 = vld [vmem:[%s7416_s12 + $0x8] sm:$0x1] }
 0xf25   :  { %v3566_v20 = vrot.slane %v3565_v34, 4 }
 0xf27   :  { %vm3567_vm11 = vcmp.lt.s32.totalorder %v3565_v34, %v3566_v20 }
 0xf28   :  { %v3568_v2 = vsel %vm3567_vm11, %v3565_v34, %v3566_v20  ;;  %v3916_v34 = vld [vmem:[%s7416_s12 + $0x9] sm:$0x1]  ;;  %v3917_v20 = vld [vmem:[%s7416_s12 + $0xa] sm:$0x1] }
 0xf29   :  { %v3569_v56 = vrot.slane %v3568_v2, 2 }
 0xf2b   :  { %vm3570_vm12 = vcmp.lt.s32.totalorder %v3568_v2, %v3569_v56 }
 0xf2c   :  { %v3571_v54 = vsel %vm3570_vm12, %v3568_v2, %v3569_v56  ;;  %v3918_v2 = vld [vmem:[%s7416_s12 + $0xb] sm:$0x1]  ;;  %v3919_v56 = vld [vmem:[%s7416_s12 + $0xc] sm:$0x1] }
 0xf2d   :  { %v3572_v23 = vrot.slane %v3571_v54, 1 }
 0xf2f   :  { %vm3573_vm13 = vcmp.lt.s32.totalorder %v3571_v54, %v3572_v23 }
 0xf30   :  { %v3574_v16 = vsel %vm3573_vm13, %v3571_v54, %v3572_v23  ;;  %v3942_v54 = vrot.slane %v3928_v45, %v5674_v31  ;;  %v3943_v23 = vcombine.high %v3935_v60, %v3935_v60 }
 0xf31   :  { %5398 = vpush %v3574_v16  ;;  %v3951_v16 = vrot.slane %v3935_v60, %v5674_v31 }
 0xf62   :  { %s5399_s17 = spop %5398 }
 0xf63   :  { %s3576_s24 = scalar_lea.vmem %s7417_s13, %s5399_s17  ;;  %s4800_s17 = ssub.s32 0, %s4798_s22 }
 0xf64   :  { %v3577_v57 = vld [vmem:[%s3576_s24] sm:$0x1]  ;;  %s5067_s23 = smin.u32 %s4800_s17, %s4798_s22 }
 0xf65   :  { %5466 = vtanh.f32 %v3577_v57  ;;  %v3920_v57 = vld [vmem:[%s7416_s12 + $0xd] sm:$0x1]  ;;  %s4802_s27 = sand.u32 15, %s5067_s23  }
 0xf66   :  { %s4803_s24 = ssub.s32 0, %s4802_s27 }
 0xf67   :  { %s7559_s24 = smov (!%p4799_p5, %s4803_s24), %s4802_s27 }
 0xf68   :  { %p5069_p6 = scmp.lt.s32.totalorder %s7559_s24, 0  ;;  %s4809_s8 = sadd.s32 16, %s7559_s24 }
 0xf6a   :  { %s7561_s8 = smov (!%p5069_p6, %s4809_s8), %s7559_s24 }
 0xf6b   :  { %s4811_s14 = scalar_lea.vmem %s7416_s12, %s7561_s8  ;;  %s4813_s3 = scalar_lea.vmem %s7417_s13, %s7561_s8 }
 0xf6f   :  { %v5467_v62 = vpop.eup %5466 }
 0xf70   :  { %v3583_v48 = vsel %vm3582_vm14, %v5467_v62, 0.0  ;;  %v3922_v62 = vld [vmem:[%s7416_s12 + $0xf] sm:$0x1] }
 0xf71   :  { %v6867_v17 = vrot.slane %v3583_v48, %v5647_v22  ;;  %4215 = vst.msk [vmem:[%s4214_s9] sm:$0x1] %vm61_vm0, %v6895_v21  ;;  %v3944_v48 = vcombine.high %v3942_v54, %v3942_v54  ;;  %s7002_s9 = sadd.s32 6, %s5849_s30 }
 0xf72   :  { %p3905_p3 = scmp.lt.s32.totalorder %s7002_s9, 16  ;;  %p5049_p4 = scmp.gt.s32.totalorder %s7002_s9, 0 }
 0xf73   :  { %7491 = vst [vmem:[#allocation27_spill] sm:$0xff] %v6867_v17  ;;  %3589 = vrot.lane.b32.xlu1 %v6867_v17, %s5514_s18 }
 0xf74   :  { %v6871_v44 = vpop.f32.mrb[8].mxu1  ;;  %s3906_s15 = scalar_select %p3905_p3, %s7002_s9, 16 }
 0xf75   :  { %7492 = vst [vmem:[#allocation28_spill] sm:$0xff] %v6871_v44  ;;  %v5182_v0 = vpop.f32.mrb[9].mxu1  ;;  %s5085_s21 = scalar_select %p5049_p4, 1, 0 }
 0xf76   :  { %v3958_v0 = vrot.slane %v3942_v54, %v5674_v31 }
 0xf78   :  { %v3997_v33 = vsub.f32 %v3919_v56, %v3958_v0 }
 0xf84   :  { %v3282_v35 = vpop.f32.mrb[10].mxu1 }
 0xf85   :  { %v3284_v26 = vpop.f32.mrb[11].mxu1  ;;  %v3287_v14 = vadd.f32 %v3282_v35, %v6001_v27  ;;  %v3965_v35 = vrot.slane %v3943_v23, %v5674_v31 }
 0xf86   :  { %v3288_v24 = vadd.f32 %v3284_v26, %v5986_v63  ;;  %v3972_v26 = vrot.slane %v3944_v48, %v5674_v31 }
 0xf87   :  { %v5035_v8 = vmul.f32 -1.442695, %v3287_v14  ;;  %v3975_v14 = vcombine.high %v3965_v35, %v3965_v35 }
 0xf88   :  { %5468 = vtanh.f32 %v3288_v24  ;;  %v3973_v24 = vcombine.high %v3951_v16, %v3951_v16  ;;  %v3998_v45 = vsub.f32 %v3920_v57, %v3972_v26  ;;  %v3990_v54 = vsub.f32 %v3912_v3, %v3972_v26 }
 0xf89   :  { %5470 = vpow2.f32 %v5035_v8  ;;  %v3985_v8 = vsub.f32 %v3907_v59, %v3951_v16  ;;  %v3988_v60 = vsub.f32 %v3910_v29, %v3975_v14 }
 0xf92   :  { %v5469_v40 = vpop.eup %5468 }
 0xf93   :  { %3298 = vrot.lane.b32.xlu0 %v5469_v40, %s5513_s16  ;;  %v5471_v51 = vpop.eup %5470 }
 0xf94   :  { %v3292_v61 = vadd.f32 1.0, %v5471_v51  ;;  %v3974_v51 = vcombine.high %v3958_v0, %v3958_v0 }
 0xf96   :  { %5472 = vrcp.f32 %v3292_v61  ;;  %v3976_v61 = vcombine.high %v3972_v26, %v3972_v26  ;;  %v3991_v23 = vsub.f32 %v3913_v28, %v3974_v51  ;;  %v3999_v48 = vsub.f32 %v3921_v46, %v3974_v51 }
 0xf98   :  { %v3992_v5 = vsub.f32 %v3914_v42, %v3976_v61  ;;  %v4000_v59 = vsub.f32 %v3922_v62, %v3976_v61  ;;  %v4007_v29 = vmul.f32 %v3991_v23, %v3991_v23 }
 0xf9a   :  { %v4016_v56 = vmul.f32 %v4000_v59, %v4000_v59  ;;  %v4008_v3 = vmul.f32 %v3992_v5, %v3992_v5 }
 0xf9c   :  { %v4036_v51 = vcombine.low %v4007_v29, %v4008_v3 }
 0xfa0   :  { %v6876_v39 = vpop.eup %5472 }
 0xfa1   :  { %v3296_v32 = vmul.f32 %v6876_v39, %v6724_v1 }
 0xfe5   :  { %v3590_v50 = vpop.permute.xlu1 %3589 }
 0xfe6   :  { %v3592_v12 = vmul.f32 %v6876_v39, %v3590_v50  ;;  %v3993_v50 = vsub.f32 %v3915_v43, %v3951_v16  ;;  %v4004_v16 = vmul.f32 %v3988_v60, %v3988_v60 }
 0xfe8   :  { %3594 = vrot.lane.b32.xlu0 %v3592_v12, %s5513_s16  ;;  %v3994_v12 = vsub.f32 %v3916_v34, %v3965_v35  ;;  %v4009_v11 = vmul.f32 %v3993_v50, %v3993_v50 }
0x1005   :  { %v3299_v37 = vpop.permute.xlu0 %3298 }
0x1006   :  { %v3301_v6 = vmul.f32 %v6876_v39, %v3299_v37  ;;  %v3986_v37 = vsub.f32 %v3908_v18, %v3965_v35 }
0x1008   :  { %3303 = vrot.lane.b32.xlu1 %v3301_v6, %s5514_s18  ;;  %v3987_v6 = vsub.f32 %v3909_v47, %v3973_v24  ;;  %v4002_v44 = vmul.f32 %v3986_v37, %v3986_v37  ;;  %v4013_v47 = vmul.f32 %v3997_v33, %v3997_v33 }
0x100a   :  { %v4003_v17 = vmul.f32 %v3987_v6, %v3987_v6 }
0x105a   :  { %v3595_v52 = vpop.permute.xlu0 %3594 }
0x107a   :  { %v3304_v41 = vpop.permute.xlu1 %3303 }
0x107b   :  { %v3306_v7 = vadd.f32 %v3304_v41, %v3296_v32  ;;  %v3989_v32 = vsub.f32 %v3911_v36, %v3958_v0  ;;  %v3995_v41 = vsub.f32 %v3917_v20, %v3973_v24  ;;  %v4014_v36 = vmul.f32 %v3998_v45, %v3998_v45 }
0x107c   :  { %v4015_v20 = vmul.f32 %v3999_v48, %v3999_v48 }
0x107d   :  { %v6889_v4 = vadd.f32 %v3595_v52, %v3306_v7  ;;  %v4001_v7 = vmul.f32 %v3985_v8, %v3985_v8  ;;  %v3996_v52 = vsub.f32 %v3918_v2, %v3975_v14  ;;  %v4005_v43 = vmul.f32 %v3989_v32, %v3989_v32 }
0x107e   :  { %v4011_v34 = vmul.f32 %v3995_v41, %v3995_v41  ;;  %v4006_v2 = vmul.f32 %v3990_v54, %v3990_v54  ;;  %v4084_v46 = vcombine.low %v4013_v47, %v4014_v36  ;;  %v4085_v42 = vcombine.low %v4015_v20, %v4016_v56 }
0x107f   :  { %5474 = vtanh.f32 %v6889_v4  ;;  %3620 = vst.msk [vmem:[%s3619_s5] sm:$0x1] %vm94_vm5, %v6889_v4  ;;  %v4012_v18 = vmul.f32 %v3996_v52, %v3996_v52  ;;  %v4033_v26 = vcombine.low %v4001_v7, %v4002_v44  ;;  %v4034_v14 = vcombine.low %v4003_v17, %v4004_v16 }
0x1080   :  { %v4106_v35 = vrot.slane %v4084_v46, %v5674_v31  ;;  %v4113_v24 = vrot.slane %v4085_v42, %v5674_v31  ;;  %v4035_v8 = vcombine.low %v4005_v43, %v4006_v2  ;;  %v4064_v32 = vrot.slane %v4036_v51, %v5674_v31 }
0x1081   :  { %v4083_v28 = vcombine.low %v4011_v34, %v4012_v18  ;;  %v4050_v37 = vrot.slane %v4034_v14, %v5674_v31 }
0x1082   :  { %v4115_v50 = vcombine.low %v4106_v35, %v4113_v24  ;;  %v4057_v6 = vrot.slane %v4035_v8, %v5674_v31  ;;  %v4178_v8 = vstv %s5085_s21 }
0x1083   :  { %v4099_v0 = vrot.slane %v4083_v28, %v5674_v31  ;;  %vm4179_vm13 = vcmp.eq.s32.totalorder %v4178_v8, 1 }
0x1084   :  { %v4129_v5 = vrot.slane %v4115_v50, %v5674_v31  ;;  %v4066_v7 = vcombine.low %v4057_v6, %v4064_v32 }
0x1086   :  { %v4080_v52 = vrot.slane %v4066_v7, %v5674_v31 }
0x1089   :  { %v5475_v40 = vpop.eup %5474 }
0x108a   :  { %3600 = vrot.lane.b32.xlu1 %v5475_v40, %s5515_s6  ;;  %v4010_v40 = vmul.f32 %v3994_v12, %v3994_v12  ;;  %v4043_v12 = vrot.slane %v4033_v26, %v5674_v31 }
0x108c   :  { %v4082_v57 = vcombine.low %v4009_v11, %v4010_v40  ;;  %v4065_v41 = vcombine.low %v4043_v12, %v4050_v37  ;;  %v4141_v40 = vstv %s3906_s15 }
0x108d   :  { %vm7007_vm3 = vcmp.lt.s32.totalorder %v5623_v13, %v4141_v40 }
0x108e   :  { %v4092_v62 = vrot.slane %v4082_v57, %v5674_v31  ;;  %v4073_v17 = vrot.slane %v4065_v41, %v5674_v31 }
0x1090   :  { %v4114_v61 = vcombine.low %v4092_v62, %v4099_v0  ;;  %v4081_v33 = vcombine.low %v4073_v17, %v4080_v52 }
0x1092   :  { %v4122_v11 = vrot.slane %v4114_v61, %v5674_v31  ;;  %v4133_v45 = vsel %vm209_vm2, %v4081_v33, 0.0 }
0x1094   :  { %v4130_v44 = vcombine.low %v4122_v11, %v4129_v5 }
0x1096   :  { %v4136_v23 = vsel %vm209_vm2, %v4130_v44, 0.0 }
0x10ae   :  { %4134 = vadd.xlane.f32.xlu1 %v4133_v45 }
0x10fc   :  { %v3601_v60 = vpop.permute.xlu1 %3600 }
0x10fd   :  { %v3603_v54 = vmul.f32 %v6876_v39, %v3601_v60 }
0x10ff   :  { %3622 = vrot.lane.b32.xlu0 %v3603_v54, %s5515_s6 }
0x111e   :  { %4137 = vadd.xlane.f32.xlu0 %v4136_v23 }
0x113b   :  { %v4135_v59 = vpop.xlane.xlu1 %4134 }
0x113c   :  { %v4139_v43 = vsub.f32 0.0, %v4135_v59 }
0x113e   :  { %v4144_v34 = vsel %vm7007_vm3, %v4139_v43, -1e+30 }
0x1171   :  { %v6980_v48 = vpop.permute.xlu0 %3622 }
0x1172   :  { %7493 = vst [vmem:[#allocation29_spill] sm:$0xff] %v6980_v48  ;;  %5192 = vmatmul.mubr.msk.f32.vlgmr.msra.gmra.mrb[10].mxu0 %vm134_vm1, %v6980_v48 }
0x1173   :  { %5327 = vmatpush1.bf16.msra.mxu0 %v5612_v9  ;;  %3803 = vmatprep.mubr.f32.mxu0 %v7459_v15 }
0x1174   :  { %5329 = vmatprep.subr.bf16.mxu0 %v5614_v10 }
0x1177   :  { %5331 = vmatpush1.bf16.msra.mxu0 %v5636_v19 }
0x1178   :  { %5333 = vmatprep.subr.bf16.mxu0 %v5653_v25 }
0x117a   :  { %5046 = vmatmul.mubr.msk.f32.vlgmr.msra.gmra.mrb[12].mxu0 %vm134_vm1, %v6980_v48 }
0x117b   :  { %5335 = vmatpush1.bf16.msra.mxu0 %v5719_v38  ;;  %3877 = vmatprep.mubr.f32.mxu0 %v7459_v15 }
0x117c   :  { %5354 = vmatprep.subr.bf16.mxu0 %v7460_v53 }
0x1182   :  { %5047 = vmatmul.mubr.msk.f32.vlgmr.msra.gmra.mrb[12].mxu0 %vm209_vm2, %v6895_v21 }
0x1183   :  { %5356 = vmatpush3.bf16.msra.mxu0 %v6132_v55  ;;  %5213 = vmatprep.mubr.msk.f32.mxu0 %vm5517_vm15, %v7459_v15  ;;  %vm7012_vm15 = vcmp.lt.s32.totalorder %v5854_v30, %v4141_v40  ;;  %v7059_v55 = vld [vmem:[%s7405_s1 + $0x7] sm:$0x1] }
0x1184   :  { %5357 = vmatprep.subr.bf16.mxu0 %v7460_v53 }
0x1187   :  { %5359 = vmatpush3.bf16.msra.mxu0 %v6143_v58 }
0x11ab   :  { %v4138_v58 = vpop.xlane.xlu0 %4137 }
0x11ac   :  { %v4140_v53 = vsub.f32 0.0, %v4138_v58  ;;  %v4523_v58 = vrot.slane %v7059_v55, %v5647_v22 }
0x11ae   :  { %v4145_v18 = vsel %vm7012_vm15, %v4140_v53, -1e+30  ;;  %v4504_v53 = vld [vmem:[%s7416_s12] sm:$0x1] }
0x11af   :  { %v4146_v47 = vmax.f32 %v4144_v34, %v4145_v18 }
0x11b1   :  { %v4147_v36 = vrot.slane %v4146_v47, 4 }
0x11b3   :  { %v4148_v20 = vmax.f32 %v4146_v47, %v4147_v36  ;;  %v4507_v47 = vld [vmem:[%s7416_s12 + $0x3] sm:$0x1]  ;;  %v4508_v36 = vld [vmem:[%s7416_s12 + $0x4] sm:$0x1] }
0x11b5   :  { %v4149_v16 = vrot.slane %v4148_v20, 2 }
0x11b7   :  { %v4150_v2 = vmax.f32 %v4148_v20, %v4149_v16  ;;  %v4509_v20 = vld [vmem:[%s7416_s12 + $0x5] sm:$0x1]  ;;  %v4510_v16 = vld [vmem:[%s7416_s12 + $0x6] sm:$0x1] }
0x11b9   :  { %v4151_v56 = vrot.slane %v4150_v2, 1 }
0x11bb   :  { %v4152_v57 = vmax.f32 %v4150_v2, %v4151_v56  ;;  %v4511_v2 = vld [vmem:[%s7416_s12 + $0x7] sm:$0x1]  ;;  %v4525_v56 = vcombine.high %v4523_v58, %v4523_v58 }
0x11bd   :  { %5400 = vpush %v4152_v57  ;;  %v4532_v57 = vrot.slane %v4523_v58, %v5674_v31 }
0x11ee   :  { %s5401_s5 = spop %5400 }
0x11ef   :  { %v4154_v29 = vstv %s5401_s5 }
0x11f0   :  { %vm4155_vm4 = vcmp.eq.f32.partialorder %v4144_v34, %v4154_v29  ;;  %vm4156_vm6 = vcmp.eq.f32.partialorder %v4145_v18, %v4154_v29  ;;  %v4505_v34 = vld [vmem:[%s7416_s12 + $0x1] sm:$0x1]  ;;  %v4506_v18 = vld [vmem:[%s7416_s12 + $0x2] sm:$0x1]  ;;  %v4512_v29 = vld [vmem:[%s7416_s12 + $0x8] sm:$0x1] }
0x11f1   :  { %vm4157_vm7 = vmand %vm4155_vm4, %vm7007_vm3 }
0x11f2   :  { %vm4158_vm8 = vmand %vm4156_vm6, %vm7012_vm15  ;;  %v4159_v3 = vsel %vm4157_vm7, %v5623_v13, 15 }
0x11f3   :  { %v4160_v28 = vsel %vm4158_vm8, %v5854_v30, 15 }
0x11f4   :  { %vm4161_vm9 = vcmp.lt.s32.totalorder %v4159_v3, %v4160_v28 }
0x11f5   :  { %v4162_v46 = vsel %vm4161_vm9, %v4159_v3, %v4160_v28  ;;  %v4513_v3 = vld [vmem:[%s7416_s12 + $0x9] sm:$0x1]  ;;  %v4514_v28 = vld [vmem:[%s7416_s12 + $0xa] sm:$0x1] }
0x11f6   :  { %v4163_v42 = vrot.slane %v4162_v46, 4 }
0x11f8   :  { %vm4164_vm10 = vcmp.lt.s32.totalorder %v4162_v46, %v4163_v42 }
0x11f9   :  { %v4165_v62 = vsel %vm4164_vm10, %v4162_v46, %v4163_v42  ;;  %v4515_v46 = vld [vmem:[%s7416_s12 + $0xb] sm:$0x1]  ;;  %v4516_v42 = vld [vmem:[%s7416_s12 + $0xc] sm:$0x1] }
0x11fa   :  { %v4166_v0 = vrot.slane %v4165_v62, 2 }
0x11fc   :  { %vm4167_vm11 = vcmp.lt.s32.totalorder %v4165_v62, %v4166_v0 }
0x11fd   :  { %v4168_v35 = vsel %vm4167_vm11, %v4165_v62, %v4166_v0  ;;  %v4539_v62 = vrot.slane %v4525_v56, %v5674_v31  ;;  %v4540_v0 = vcombine.high %v4532_v57, %v4532_v57  ;;  %vm724_vm11 = vcmask 523264  }
0x11fe   :  { %v4169_v26 = vrot.slane %v4168_v35, 1 }
0x11ff   :  { %v4541_v8 = vcombine.high %v4539_v62, %v4539_v62 }
0x1200   :  { %vm4170_vm12 = vcmp.lt.s32.totalorder %v4168_v35, %v4169_v26 }
0x1201   :  { %v4171_v24 = vsel %vm4170_vm12, %v4168_v35, %v4169_v26  ;;  %v4548_v35 = vrot.slane %v4532_v57, %v5674_v31  ;;  %v4517_v26 = vld [vmem:[%s7416_s12 + $0xd] sm:$0x1]  ;;  %vm726_vm12 = vcmask 785408  }
0x1202   :  { %5402 = vpush %v4171_v24  ;;  %v4518_v24 = vld [vmem:[%s7416_s12 + $0xe] sm:$0x1] }
0x1233   :  { %s5403_s2 = spop %5402 }
0x1234   :  { %s4173_s20 = scalar_lea.vmem %s7417_s13, %s5403_s2 }
0x1235   :  { %v4174_v14 = vld [vmem:[%s4173_s20] sm:$0x1] }
0x1236   :  { %5476 = vtanh.f32 %v4174_v14  ;;  %v4519_v14 = vld [vmem:[%s7416_s12 + $0xf] sm:$0x1]  ;;  %s7160_s12 = sadd.s32 7, %s5849_s30 }
0x1237   :  { %4812 = vst.msk [vmem:[%s4811_s14] sm:$0x1] %vm61_vm0, %v7059_v55  ;;  %p4502_p7 = scmp.lt.s32.totalorder %s7160_s12, 16  ;;  %p5062_p8 = scmp.gt.s32.totalorder %s7160_s12, 0 }
0x1239   :  { %s4503_s14 = scalar_select %p4502_p7, %s7160_s12, 16 }
0x123a   :  { %s5087_s26 = scalar_select %p5062_p8, 1, 0 }
0x1240   :  { %v5477_v51 = vpop.eup %5476 }
0x1241   :  { %v4180_v61 = vsel %vm4179_vm13, %v5477_v51, 0.0  ;;  %v4555_v51 = vrot.slane %v4539_v62, %v5674_v31 }
0x1242   :  { %v7031_v50 = vrot.slane %v4180_v61, %v5647_v22  ;;  %v4562_v61 = vrot.slane %v4540_v0, %v5674_v31 }
0x1244   :  { %4186 = vrot.lane.b32.xlu1 %v7031_v50, %s5514_s18 }
0x1245   :  { %v7035_v11 = vpop.f32.mrb[10].mxu0 }
0x1246   :  { %v5193_v5 = vpop.f32.mrb[11].mxu0 }
0x1247   :  { %v4570_v5 = vcombine.high %v4548_v35, %v4548_v35 }
0x1255   :  { %v3879_v12 = vpop.f32.mrb[12].mxu0 }
0x1256   :  { %v3881_v37 = vpop.f32.mrb[13].mxu0  ;;  %v3884_v44 = vadd.f32 %v3879_v12, %v6001_v27  ;;  %v4590_v12 = vsub.f32 %v4512_v29, %v4548_v35 }
0x1257   :  { %v3885_v6 = vadd.f32 %v3881_v37, %v5986_v63  ;;  %v4569_v37 = vrot.slane %v4541_v8, %v5674_v31 }
0x1258   :  { %v5048_v41 = vmul.f32 -1.442695, %v3884_v44  ;;  %v4582_v44 = vsub.f32 %v4504_v53, %v4548_v35  ;;  %v4606_v53 = vmul.f32 %v4590_v12, %v4590_v12 }
0x1259   :  { %5478 = vtanh.f32 %v3885_v6  ;;  %v4587_v56 = vsub.f32 %v4509_v20, %v4569_v37 }
0x125a   :  { %5480 = vpow2.f32 %v5048_v41  ;;  %v4591_v41 = vsub.f32 %v4513_v3, %v4562_v61 }
0x125c   :  { %v4607_v3 = vmul.f32 %v4591_v41, %v4591_v41 }
0x1263   :  { %v5479_v32 = vpop.eup %5478 }
0x1264   :  { %3895 = vrot.lane.b32.xlu0 %v5479_v32, %s5513_s16  ;;  %v5481_v7 = vpop.eup %5480  ;;  %v4572_v32 = vcombine.high %v4562_v61, %v4562_v61 }
0x1265   :  { %v3889_v17 = vadd.f32 1.0, %v5481_v7  ;;  %v4571_v7 = vcombine.high %v4555_v51, %v4555_v51 }
0x1266   :  { %v4585_v58 = vsub.f32 %v4507_v47, %v4572_v32 }
0x1267   :  { %5482 = vrcp.f32 %v3889_v17  ;;  %v4573_v17 = vcombine.high %v4569_v37, %v4569_v37  ;;  %v4588_v57 = vsub.f32 %v4510_v16, %v4571_v7  ;;  %v4596_v29 = vsub.f32 %v4518_v24, %v4571_v7 }
0x1269   :  { %v4589_v62 = vsub.f32 %v4511_v2, %v4573_v17  ;;  %v4597_v0 = vsub.f32 %v4519_v14, %v4573_v17  ;;  %v4604_v47 = vmul.f32 %v4588_v57, %v4588_v57 }
0x126b   :  { %v4605_v20 = vmul.f32 %v4589_v62, %v4589_v62 }
0x126d   :  { %v4633_v41 = vcombine.low %v4604_v47, %v4605_v20 }
0x1271   :  { %v7040_v52 = vpop.eup %5482 }
0x1272   :  { %v3893_v23 = vmul.f32 %v7040_v52, %v6889_v4 }
0x12b6   :  { %v4187_v33 = vpop.permute.xlu1 %4186 }
0x12b7   :  { %v4189_v45 = vmul.f32 %v7040_v52, %v4187_v33  ;;  %v4592_v33 = vsub.f32 %v4514_v28, %v4570_v5 }
0x12b9   :  { %4191 = vrot.lane.b32.xlu0 %v4189_v45, %s5513_s16  ;;  %v4583_v45 = vsub.f32 %v4505_v34, %v4562_v61  ;;  %v4608_v48 = vmul.f32 %v4592_v33, %v4592_v33  ;;  %v4601_v61 = vmul.f32 %v4585_v58, %v4585_v58 }
0x12bb   :  { %v4599_v35 = vmul.f32 %v4583_v45, %v4583_v45 }
0x12d6   :  { %v3896_v60 = vpop.permute.xlu0 %3895 }
0x12d7   :  { %v3898_v54 = vmul.f32 %v7040_v52, %v3896_v60  ;;  %v4584_v60 = vsub.f32 %v4506_v18, %v4570_v5 }
0x12d9   :  { %3900 = vrot.lane.b32.xlu1 %v3898_v54, %s5514_s18  ;;  %v4586_v54 = vsub.f32 %v4508_v36, %v4555_v51  ;;  %v4600_v8 = vmul.f32 %v4584_v60, %v4584_v60  ;;  %v4612_v36 = vmul.f32 %v4596_v29, %v4596_v29 }
0x132b   :  { %v4192_v43 = vpop.permute.xlu0 %4191 }
0x134b   :  { %v3901_v59 = vpop.permute.xlu1 %3900 }
0x134c   :  { %v3903_v40 = vadd.f32 %v3901_v59, %v3893_v23  ;;  %v4598_v23 = vmul.f32 %v4582_v44, %v4582_v44  ;;  %v4593_v59 = vsub.f32 %v4515_v46, %v4572_v32  ;;  %v4603_v46 = vmul.f32 %v4587_v56, %v4587_v56 }
0x134d   :  { %v4631_v32 = vcombine.low %v4600_v8, %v4601_v61 }
0x134e   :  { %v7053_v21 = vadd.f32 %v4192_v43, %v3903_v40  ;;  %v4594_v40 = vsub.f32 %v4516_v42, %v4555_v51  ;;  %v4595_v43 = vsub.f32 %v4517_v26, %v4569_v37  ;;  %v4609_v28 = vmul.f32 %v4593_v59, %v4593_v59 }
0x134f   :  { %v4613_v42 = vmul.f32 %v4597_v0, %v4597_v0  ;;  %v4679_v26 = vcombine.low %v4606_v53, %v4607_v3  ;;  %v4630_v12 = vcombine.low %v4598_v23, %v4599_v35  ;;  %v4647_v60 = vrot.slane %v4631_v32, %v5674_v31 }
0x1350   :  { %5484 = vtanh.f32 %v7053_v21  ;;  %4217 = vst.msk [vmem:[%s4216_s28] sm:$0x1] %vm94_vm5, %v7053_v21  ;;  %v4610_v34 = vmul.f32 %v4594_v40, %v4594_v40  ;;  %v4611_v18 = vmul.f32 %v4595_v43, %v4595_v43  ;;  %v4680_v16 = vcombine.low %v4608_v48, %v4609_v28 }
0x1351   :  { %v4682_v2 = vcombine.low %v4612_v36, %v4613_v42  ;;  %v4689_v14 = vrot.slane %v4679_v26, %v5674_v31  ;;  %v4640_v45 = vrot.slane %v4630_v12, %v5674_v31  ;;  %v4661_v59 = vrot.slane %v4633_v41, %v5674_v31 }
0x1352   :  { %v4681_v24 = vcombine.low %v4610_v34, %v4611_v18  ;;  %v4696_v51 = vrot.slane %v4680_v16, %v5674_v31 }
0x1353   :  { %v4710_v37 = vrot.slane %v4682_v2, %v5674_v31  ;;  %v4662_v40 = vcombine.low %v4640_v45, %v4647_v60 }
0x1354   :  { %v4703_v5 = vrot.slane %v4681_v24, %v5674_v31  ;;  %v4711_v7 = vcombine.low %v4689_v14, %v4696_v51 }
0x1355   :  { %v4670_v58 = vrot.slane %v4662_v40, %v5674_v31 }
0x1356   :  { %v4712_v17 = vcombine.low %v4703_v5, %v4710_v37  ;;  %v4719_v33 = vrot.slane %v4711_v7, %v5674_v31 }
0x1358   :  { %v4726_v48 = vrot.slane %v4712_v17, %v5674_v31 }
0x135a   :  { %v5485_v6 = vpop.eup %5484  ;;  %v4727_v23 = vcombine.low %v4719_v33, %v4726_v48 }
0x135b   :  { %4197 = vrot.lane.b32.xlu1 %v5485_v6, %s5515_s6  ;;  %v4602_v6 = vmul.f32 %v4586_v54, %v4586_v54 }
0x135c   :  { %v4733_v53 = vsel %vm209_vm2, %v4727_v23, 0.0 }
0x135d   :  { %v4632_v44 = vcombine.low %v4602_v6, %v4603_v46 }
0x135f   :  { %v4654_v54 = vrot.slane %v4632_v44, %v5674_v31 }
0x1361   :  { %v4663_v43 = vcombine.low %v4654_v54, %v4661_v59 }
0x1363   :  { %v4677_v56 = vrot.slane %v4663_v43, %v5674_v31 }
0x1365   :  { %v4678_v57 = vcombine.low %v4670_v58, %v4677_v56 }
0x1367   :  { %v4730_v29 = vsel %vm209_vm2, %v4678_v57, 0.0 }
0x137f   :  { %4731 = vadd.xlane.f32.xlu1 %v4730_v29 }
0x13cd   :  { %v4198_v62 = vpop.permute.xlu1 %4197 }
0x13ce   :  { %v4200_v0 = vmul.f32 %v7040_v52, %v4198_v62 }
0x13d0   :  { %4219 = vrot.lane.b32.xlu0 %v4200_v0, %s5515_s6  ;;  %v7502_v0 = vld [vmem:[#allocation5_spill] sm:$0xff] }
0x13ef   :  { %4734 = vadd.xlane.f32.xlu0 %v4733_v53  ;;  %v7503_v53 = vld [vmem:[#allocation11_spill] sm:$0xff] }
0x1442   :  { %v7144_v3 = vpop.permute.xlu0 %4219 }
0x1443   :  { %5203 = vmatmul.mubr.msk.f32.vlgmr.msra.gmra.mrb[12].mxu1 %vm134_vm1, %v7144_v3 }
0x1444   :  { %5345 = vmatpush1.bf16.msra.mxu1 %v5612_v9  ;;  %4400 = vmatprep.mubr.f32.mxu1 %v7459_v15  ;;  %v4732_v9 = vpop.xlane.xlu1 %4731 }
0x1445   :  { %5347 = vmatprep.subr.bf16.mxu1 %v5614_v10  ;;  %v4738_v10 = vstv %s4503_s14 }
0x1446   :  { %vm7165_vm0 = vcmp.lt.s32.totalorder %v5623_v13, %v4738_v10  ;;  %vm7170_vm14 = vcmp.lt.s32.totalorder %v5854_v30, %v4738_v10  ;;  %v7505_v10 = vld [vmem:[#allocation9_spill] sm:$0xff] }
0x1448   :  { %5349 = vmatpush1.bf16.msra.mxu1 %v5636_v19  ;;  %v4736_v19 = vsub.f32 0.0, %v4732_v9  ;;  %v7504_v9 = vld [vmem:[#allocation16_spill] sm:$0xff] }
0x1449   :  { %5351 = vmatprep.subr.bf16.mxu1 %v5653_v25  ;;  %v7508_v25 = vld [vmem:[#allocation23_spill] sm:$0xff] }
0x144a   :  { %v4741_v35 = vsel %vm7165_vm0, %v4736_v19, -1e+30  ;;  %v7507_v19 = vld [vmem:[#allocation18_spill] sm:$0xff] }
0x144b   :  { %5059 = vmatmul.mubr.msk.f32.vlgmr.msra.gmra.mrb[14].mxu1 %vm134_vm1, %v7144_v3 }
0x144c   :  { %5353 = vmatpush1.bf16.msra.mxu1 %v5719_v38  ;;  %4474 = vmatprep.mubr.f32.mxu1 %v7459_v15  ;;  %v7509_v38 = vld [vmem:[#allocation27_spill] sm:$0xff] }
0x1453   :  { %5060 = vmatmul.mubr.msk.f32.vlgmr.msra.gmra.mrb[14].mxu1 %vm209_vm2, %v7059_v55 }
0x147c   :  { %v4735_v15 = vpop.xlane.xlu0 %4734 }
0x147d   :  { %v4737_v55 = vsub.f32 0.0, %v4735_v15 }
0x147f   :  { %v4742_v8 = vsel %vm7170_vm14, %v4737_v55, -1e+30  ;;  %v7511_v55 = vld [vmem:[#allocation28_spill] sm:$0xff] }
0x1480   :  { %v4743_v6 = vmax.f32 %v4741_v35, %v4742_v8 }
0x1482   :  { %v4744_v28 = vrot.slane %v4743_v6, 4 }
0x1484   :  { %v4745_v34 = vmax.f32 %v4743_v6, %v4744_v28 }
0x1486   :  { %v4746_v18 = vrot.slane %v4745_v34, 2 }
0x1488   :  { %v4747_v36 = vmax.f32 %v4745_v34, %v4746_v18 }
0x148a   :  { %v4748_v61 = vrot.slane %v4747_v36, 1 }
0x148c   :  { %v4749_v46 = vmax.f32 %v4747_v36, %v4748_v61  ;;  %v7512_v36 = vld [vmem:[#allocation8_spill] sm:$0xff] }
0x148e   :  { %5404 = vpush %v4749_v46  ;;  %v7513_v46 = vld [vmem:[#allocation6_spill] sm:$0xff] }
0x14bf   :  { %s5405_s30 = spop %5404 }
0x14c0   :  { %v4751_v42 = vstv %s5405_s30 }
0x14c1   :  { %vm4752_vm2 = vcmp.eq.f32.partialorder %v4741_v35, %v4751_v42  ;;  %vm4753_vm3 = vcmp.eq.f32.partialorder %v4742_v8, %v4751_v42 }
0x14c2   :  { %vm4754_vm15 = vmand %vm4752_vm2, %vm7165_vm0 }
0x14c3   :  { %vm4755_vm4 = vmand %vm4753_vm3, %vm7170_vm14  ;;  %v4756_v26 = vsel %vm4754_vm15, %v5623_v13, 15 }
0x14c4   :  { %v4757_v47 = vsel %vm4755_vm4, %v5854_v30, 15  ;;  %v4775_v30 = vstv %s5087_s26 }
0x14c5   :  { %vm4758_vm6 = vcmp.lt.s32.totalorder %v4756_v26, %v4757_v47  ;;  %vm4776_vm10 = vcmp.eq.s32.totalorder %v4775_v30, 1 }
0x14c6   :  { %v4759_v20 = vsel %vm4758_vm6, %v4756_v26, %v4757_v47  ;;  %v7514_v26 = vld [vmem:[#allocation10_spill] sm:$0xff]  ;;  %v7515_v47 = vld [vmem:[#allocation21_spill] sm:$0xff] }
0x14c7   :  { %v4760_v16 = vrot.slane %v4759_v20, 4 }
0x14c9   :  { %vm4761_vm7 = vcmp.lt.s32.totalorder %v4759_v20, %v4760_v16 }
0x14ca   :  { %v4762_v24 = vsel %vm4761_vm7, %v4759_v20, %v4760_v16  ;;  %v7516_v20 = vld [vmem:[#allocation15_spill] sm:$0xff]  ;;  %v7517_v16 = vld [vmem:[#allocation20_spill] sm:$0xff] }
0x14cb   :  { %v4763_v2 = vrot.slane %v4762_v24, 2 }
0x14cd   :  { %vm4764_vm8 = vcmp.lt.s32.totalorder %v4762_v24, %v4763_v2 }
0x14ce   :  { %v4765_v14 = vsel %vm4764_vm8, %v4762_v24, %v4763_v2  ;;  %v7518_v24 = vld [vmem:[#allocation25_spill] sm:$0xff]  ;;  %v7519_v2 = vld [vmem:[#allocation14_spill] sm:$0xff] }
0x14cf   :  { %v4766_v51 = vrot.slane %v4765_v14, 1 }
0x14d1   :  { %vm4767_vm9 = vcmp.lt.s32.totalorder %v4765_v14, %v4766_v51 }
0x14d2   :  { %v4768_v5 = vsel %vm4767_vm9, %v4765_v14, %v4766_v51  ;;  %v7520_v14 = vld [vmem:[#allocation24_spill] sm:$0xff] }
0x14d3   :  { %5406 = vpush %v4768_v5 }
0x1504   :  { %s5407_s23 = spop %5406 }
0x1505   :  { %s4770_s25 = scalar_lea.vmem %s7417_s13, %s5407_s23 }
0x1506   :  { %v4771_v13 = vld [vmem:[%s4770_s25] sm:$0x1] }
0x1507   :  { %5486 = vtanh.f32 %v4771_v13 }
0x1511   :  { %v5487_v12 = vpop.eup %5486 }
0x1512   :  { %v4777_v37 = vsel %vm4776_vm10, %v5487_v12, 0.0 }
0x1513   :  { %v4782_v32 = vrot.slane %v4777_v37, %v5647_v22 }
0x1515   :  { %4783 = vrot.lane.b32.xlu1 %v4782_v32, %s5514_s18 }
0x1516   :  { %v4289_v44 = vpop.f32.mrb[12].mxu1 }
0x1517   :  { %v5204_v41 = vpop.f32.mrb[13].mxu1 }
0x1526   :  { %v4476_v7 = vpop.f32.mrb[14].mxu1 }
0x1527   :  { %v4478_v17 = vpop.f32.mrb[15].mxu1  ;;  %v4481_v45 = vadd.f32 %v4476_v7, %v6001_v27 }
0x1528   :  { %v4482_v33 = vadd.f32 %v4478_v17, %v5986_v63 }
0x1529   :  { %v5061_v60 = vmul.f32 -1.442695, %v4481_v45  ;;  %v7521_v45 = vld [vmem:[#allocation7_spill] sm:$0xff] }
0x152a   :  { %5488 = vtanh.f32 %v4482_v33 }
0x152b   :  { %5490 = vpow2.f32 %v5061_v60 }
0x1534   :  { %v5489_v48 = vpop.eup %5488 }
0x1535   :  { %4492 = vrot.lane.b32.xlu0 %v5489_v48, %s5513_s16  ;;  %v5491_v54 = vpop.eup %5490 }
0x1536   :  { %v4486_v59 = vadd.f32 1.0, %v5491_v54 }
0x1538   :  { %5492 = vrcp.f32 %v4486_v59 }
0x1542   :  { %v5493_v22 = vpop.eup %5492 }
0x1543   :  { %v4490_v63 = vmul.f32 %v5493_v22, %v7053_v21 }
0x1587   :  { %v4784_v23 = vpop.permute.xlu1 %4783 }
0x1588   :  { %v4786_v40 = vmul.f32 %v5493_v22, %v4784_v23 }
0x158a   :  { %4788 = vrot.lane.b32.xlu0 %v4786_v40, %s5513_s16 }
0x15a7   :  { %v4493_v43 = vpop.permute.xlu0 %4492 }
0x15a8   :  { %v4495_v58 = vmul.f32 %v5493_v22, %v4493_v43 }
0x15aa   :  { %4497 = vrot.lane.b32.xlu1 %v4495_v58, %s5514_s18 }
0x15fc   :  { %v4789_v27 = vpop.permute.xlu0 %4788 }
0x161c   :  { %v4498_v56 = vpop.permute.xlu1 %4497 }
0x161d   :  { %v4500_v57 = vadd.f32 %v4498_v56, %v4490_v63 }
0x161f   :  { %v4791_v29 = vadd.f32 %v4789_v27, %v4500_v57  ;;  %v7522_v27 = vlaneseq }
0x1621   :  { %5494 = vtanh.f32 %v4791_v29  ;;  %4814 = vst.msk [vmem:[%s4813_s3] sm:$0x1] %vm94_vm5, %v4791_v29  ;;  %vm705_vm5 = vcmask 39936   ;;  %vm7297_vm13 = vcmp.lt.s32.totalorder %v7522_v27, 256 }
0x162b   :  { %v5495_v62 = vpop.eup %5494 }
0x162c   :  { %4794 = vrot.lane.b32.xlu1 %v5495_v62, %s5515_s6 }
0x1630   :  { %709 = vrot.lane.b32.xlu1 %v6027_v49, %s5513_s16  ;;  %v7506_v49 = vld [vmem:[#allocation13_spill] sm:$0xff] }
0x1634   :  { %716 = vrot.lane.b32.xlu1 %v7502_v0, %s5515_s6 }
0x1638   :  { %1311 = vrot.lane.b32.xlu1 %v7503_v53, %s5513_s16 }
0x163c   :  { %1908 = vrot.lane.b32.xlu1 %v7504_v9, %s5513_s16 }
0x1640   :  { %3102 = vrot.lane.b32.xlu1 %v6724_v1, %s5513_s16  ;;  %v7229_v1 = vld [vmem:[%s7414_s10] sm:$0x1] }
0x1641   :  { %v3096_v35 = vadd.f32 %v7511_v55, %v7229_v1  ;;  %v702_v61 = vadd.f32 %v7512_v36, %v7229_v1  ;;  %v2499_v51 = vadd.f32 %v7520_v14, %v7229_v1  ;;  %v3693_v13 = vadd.f32 %v7035_v11, %v7229_v1  ;;  %v7526_v36 = vld [vmem:[#allocation26_spill] sm:$0xff] }
0x1643   :  { %v3099_v6 = vsel %vm705_vm5, %v3096_v35, 0.0  ;;  %v706_v42 = vsel %vm705_vm5, %v702_v61, 0.0 }
0x1644   :  { %4296 = vrot.lane.b32.xlu1 %v7053_v21, %s5513_s16  ;;  %v7510_v21 = vld [vmem:[#allocation19_spill] sm:$0xff] }
0x1645   :  { %v1902_v15 = vadd.f32 %v7510_v21, %v7229_v1 }
0x1647   :  { %v1905_v8 = vsel %vm705_vm5, %v1902_v15, 0.0 }
0x1648   :  { %1318 = vrot.lane.b32.xlu1 %v7505_v10, %s5515_s6 }
0x164c   :  { %1915 = vrot.lane.b32.xlu1 %v7506_v49, %s5515_s6 }
0x1650   :  { %2512 = vrot.lane.b32.xlu1 %v7507_v19, %s5515_s6 }
0x1654   :  { %3109 = vrot.lane.b32.xlu1 %v7508_v25, %s5515_s6  ;;  %v7525_v25 = vld [vmem:[#allocation17_spill] sm:$0xff] }
0x1658   :  { %3706 = vrot.lane.b32.xlu1 %v7509_v38, %s5515_s6 }
0x165c   :  { %4303 = vrot.lane.b32.xlu1 %v7031_v50, %s5515_s6  ;;  %v4290_v50 = vadd.f32 %v4289_v44, %v7229_v1 }
0x165e   :  { %v4293_v28 = vsel %vm705_vm5, %v4290_v50, 0.0 }
0x1660   :  { %4900 = vrot.lane.b32.xlu1 %v4782_v32, %s5515_s6 }
0x1664   :  { %1919 = vrot.lane.b32.xlu1 %v1905_v8, %s5514_s18 }
0x1668   :  { %3113 = vrot.lane.b32.xlu1 %v3099_v6, %s5514_s18 }
0x166c   :  { %4307 = vrot.lane.b32.xlu1 %v4293_v28, %s5514_s18 }
0x169e   :  { %v4795_v34 = vpop.permute.xlu1 %4794 }
0x169f   :  { %v4797_v18 = vmul.f32 %v5493_v22, %v4795_v34 }
0x16a1   :  { %4816 = vrot.lane.b32.xlu0 %v4797_v18, %s5515_s6 }
0x16a2   :  { %v710_v30 = vpop.permute.xlu1 %709 }
0x16a3   :  { %v723_v60 = vsel %vm134_vm1, %v7521_v45, %v710_v30 }
0x16a5   :  { %713 = vrot.lane.b32.xlu0 %v7513_v46, %s5515_s6 }
0x16a6   :  { %v717_v12 = vpop.permute.xlu1 %716 }
0x16a9   :  { %720 = vrot.lane.b32.xlu0 %v706_v42, %s5514_s18 }
0x16aa   :  { %v7280_v37 = vpop.permute.xlu1 %1311 }
0x16ad   :  { %1315 = vrot.lane.b32.xlu0 %v7514_v26, %s5515_s6 }
0x16ae   :  { %v1909_v32 = vpop.permute.xlu1 %1908 }
0x16af   :  { %v1922_v38 = vsel %vm134_vm1, %v7525_v25, %v1909_v32 }
0x16b1   :  { %2505 = vrot.lane.b32.xlu0 %v7515_v47, %s5513_s16 }
0x16b2   :  { %v3103_v44 = vpop.permute.xlu1 %3102 }
0x16b3   :  { %v3116_v61 = vsel %vm134_vm1, %v7526_v36, %v3103_v44 }
0x16b5   :  { %3699 = vrot.lane.b32.xlu0 %v6889_v4, %s5513_s16  ;;  %v1305_v4 = vadd.f32 %v7519_v2, %v7229_v1 }
0x16b6   :  { %v4297_v41 = vpop.permute.xlu1 %4296 }
0x16b7   :  { %v1308_v5 = vsel %vm705_vm5, %v1305_v4, 0.0 }
0x16b9   :  { %4893 = vrot.lane.b32.xlu0 %v4791_v29, %s5513_s16 }
0x16ba   :  { %v7282_v7 = vpop.permute.xlu1 %1318 }
0x16bd   :  { %1912 = vrot.lane.b32.xlu0 %v7516_v20, %s5515_s6 }
0x16be   :  { %v1916_v17 = vpop.permute.xlu1 %1915 }
0x16c1   :  { %2509 = vrot.lane.b32.xlu0 %v7517_v16, %s5515_s6 }
0x16c2   :  { %v7284_v33 = vpop.permute.xlu1 %2512 }
0x16c5   :  { %3106 = vrot.lane.b32.xlu0 %v7518_v24, %s5515_s6 }
0x16c6   :  { %v3110_v54 = vpop.permute.xlu1 %3109 }
0x16c9   :  { %3703 = vrot.lane.b32.xlu0 %v6876_v39, %s5515_s6  ;;  %v2502_v39 = vsel %vm705_vm5, %v2499_v51, 0.0  ;;  %v4310_v51 = vsel %vm134_vm1, %v7144_v3, %v4297_v41  ;;  %v7527_v3 = vld [vmem:[#allocation12_spill] sm:$0xff] }
0x16ca   :  { %v7293_v63 = vpop.permute.xlu1 %3706  ;;  %v1325_v41 = vsel %vm134_vm1, %v7527_v3, %v7280_v37 }
0x16cd   :  { %4300 = vrot.lane.b32.xlu0 %v7040_v52, %s5515_s6  ;;  %v3696_v52 = vsel %vm705_vm5, %v3693_v13, 0.0 }
0x16ce   :  { %v4304_v53 = vpop.permute.xlu1 %4303 }
0x16d1   :  { %4897 = vrot.lane.b32.xlu0 %v5493_v22, %s5515_s6 }
0x16d2   :  { %v4901_v10 = vpop.permute.xlu1 %4900 }
0x16d5   :  { %1322 = vrot.lane.b32.xlu0 %v1308_v5, %s5514_s18 }
0x16d6   :  { %v1920_v15 = vpop.permute.xlu1 %1919 }
0x16d9   :  { %2516 = vrot.lane.b32.xlu0 %v2502_v39, %s5514_s18 }
0x16da   :  { %v3114_v42 = vpop.permute.xlu1 %3113 }
0x16dd   :  { %3710 = vrot.lane.b32.xlu0 %v3696_v52, %s5514_s18 }
0x16de   :  { %v4308_v13 = vpop.permute.xlu1 %4307 }
0x1713   :  { %v4817_v11 = vpop.permute.xlu0 %4816 }
0x1714   :  { %5214 = vmatmul.mubr.msk.f32.vlgmr.msra.gmra.mrb[14].mxu0 %vm134_vm1, %v4817_v11 }
0x1717   :  { %v714_v48 = vpop.permute.xlu0 %713 }
0x1718   :  { %v725_v59 = vsel %vm724_vm11, %v723_v60, %v714_v48  ;;  %v728_v22 = vsel %vm724_vm11, %v714_v48, %v717_v12 }
0x1719   :  { %v727_v40 = vsel %vm726_vm12, %v725_v59, %v714_v48 }
0x171b   :  { %v721_v23 = vpop.permute.xlu0 %720 }
0x171c   :  { %v729_v43 = vsel %vm726_vm12, %v728_v22, %v721_v23 }
0x171d   :  { %v732_v58 = vcombine.low %v727_v40, %v729_v43  ;;  %v7528_v40 = vld [vmem:[#allocation22_spill] sm:$0xff] }
0x171f   :  { %v739_v56 = vrot.slane %v732_v58, %v5674_v31  ;;  %v1316_v57 = vpop.permute.xlu0 %1315 }
0x1720   :  { %v1326_v45 = vsel %vm724_vm11, %v1325_v41, %v1316_v57  ;;  %v1328_v59 = vsel %vm724_vm11, %v1316_v57, %v7282_v7 }
0x1721   :  { %v746_v62 = vrot.slane %v739_v56, %v5674_v31  ;;  %v1327_v23 = vsel %vm726_vm12, %v1326_v45, %v1316_v57 }
0x1723   :  { %752 = vst.msk [vmem:[%s7415_s11] sm:$0x3] %vm7297_vm13, %v746_v62  ;;  %v2506_v0 = vpop.permute.xlu0 %2505  ;;  %v7529_v62 = vld [vmem:[#allocation29_spill] sm:$0xff] }
0x1724   :  { %v2519_v37 = vsel %vm134_vm1, %v7528_v40, %v2506_v0 }
0x1727   :  { %v3700_v9 = vpop.permute.xlu0 %3699 }
0x1728   :  { %v3713_v0 = vsel %vm134_vm1, %v7529_v62, %v3700_v9 }
0x172b   :  { %v4894_v49 = vpop.permute.xlu0 %4893 }
0x172c   :  { %v4907_v19 = vsel %vm134_vm1, %v4817_v11, %v4894_v49 }
0x172f   :  { %v1913_v21 = vpop.permute.xlu0 %1912 }
0x1730   :  { %v1923_v55 = vsel %vm724_vm11, %v1922_v38, %v1913_v21  ;;  %v1925_v35 = vsel %vm724_vm11, %v1913_v21, %v1916_v17 }
0x1731   :  { %v1924_v8 = vsel %vm726_vm12, %v1923_v55, %v1913_v21  ;;  %v1926_v50 = vsel %vm726_vm12, %v1925_v35, %v1920_v15 }
0x1732   :  { %v1929_v6 = vcombine.low %v1924_v8, %v1926_v50 }
0x1733   :  { %v2510_v28 = vpop.permute.xlu0 %2509 }
0x1734   :  { %v1936_v34 = vrot.slane %v1929_v6, %v5674_v31  ;;  %v2520_v58 = vsel %vm724_vm11, %v2519_v37, %v2510_v28  ;;  %v2522_v7 = vsel %vm724_vm11, %v2510_v28, %v7284_v33 }
0x1736   :  { %v1943_v18 = vrot.slane %v1936_v34, %v5674_v31 }
0x1737   :  { %v3107_v46 = vpop.permute.xlu0 %3106 }
0x1738   :  { %5006 = vst.msk [vmem:[%s7415_s11 + $0x4] sm:$0x3] %vm7297_vm13, %v1943_v18  ;;  %v3117_v26 = vsel %vm724_vm11, %v3116_v61, %v3107_v46  ;;  %v3119_v47 = vsel %vm724_vm11, %v3107_v46, %v3110_v54 }
0x1739   :  { %v3118_v20 = vsel %vm726_vm12, %v3117_v26, %v3107_v46  ;;  %v3120_v16 = vsel %vm726_vm12, %v3119_v47, %v3114_v42 }
0x173a   :  { %v3123_v24 = vcombine.low %v3118_v20, %v3120_v16 }
0x173b   :  { %v3704_v2 = vpop.permute.xlu0 %3703 }
0x173c   :  { %v3130_v4 = vrot.slane %v3123_v24, %v5674_v31  ;;  %v3714_v49 = vsel %vm724_vm11, %v3713_v0, %v3704_v2  ;;  %v3716_v38 = vsel %vm724_vm11, %v3704_v2, %v7293_v63 }
0x173d   :  { %v3715_v21 = vsel %vm726_vm12, %v3714_v49, %v3704_v2 }
0x173e   :  { %v3137_v14 = vrot.slane %v3130_v4, %v5674_v31 }
0x173f   :  { %v4301_v5 = vpop.permute.xlu0 %4300 }
0x1740   :  { %5032 = vst.msk [vmem:[%s7415_s11 + $0x8] sm:$0x3] %vm7297_vm13, %v3137_v14  ;;  %v4311_v39 = vsel %vm724_vm11, %v4310_v51, %v4301_v5  ;;  %v4313_v52 = vsel %vm724_vm11, %v4301_v5, %v4304_v53  ;;  %v2521_v53 = vsel %vm726_vm12, %v2520_v58, %v2510_v28 }
0x1741   :  { %v4312_v30 = vsel %vm726_vm12, %v4311_v39, %v4301_v5  ;;  %v4314_v12 = vsel %vm726_vm12, %v4313_v52, %v4308_v13 }
0x1742   :  { %v4317_v32 = vcombine.low %v4312_v30, %v4314_v12 }
0x1743   :  { %v4898_v44 = vpop.permute.xlu0 %4897 }
0x1744   :  { %v4324_v17 = vrot.slane %v4317_v32, %v5674_v31  ;;  %v4908_v11 = vsel %vm724_vm11, %v4907_v19, %v4898_v44  ;;  %v4910_v48 = vsel %vm724_vm11, %v4898_v44, %v4901_v10 }
0x1745   :  { %v4909_v60 = vsel %vm726_vm12, %v4908_v11, %v4898_v44 }
0x1746   :  { %v4331_v54 = vrot.slane %v4324_v17, %v5674_v31 }
0x1747   :  { %v1323_v22 = vpop.permute.xlu0 %1322 }
0x1748   :  { %5058 = vst.msk [vmem:[%s7415_s11 + $0xc] sm:$0x3] %vm7297_vm13, %v4331_v54  ;;  %v1329_v43 = vsel %vm726_vm12, %v1328_v59, %v1323_v22 }
0x1749   :  { %v1332_v56 = vcombine.low %v1327_v23, %v1329_v43 }
0x174b   :  { %v1339_v27 = vrot.slane %v1332_v56, %v5674_v31  ;;  %v2517_v57 = vpop.permute.xlu0 %2516 }
0x174c   :  { %v2523_v10 = vsel %vm726_vm12, %v2522_v7, %v2517_v57 }
0x174d   :  { %v1346_v19 = vrot.slane %v1339_v27, %v5674_v31  ;;  %v2526_v25 = vcombine.low %v2521_v53, %v2523_v10 }
0x174f   :  { %4993 = vst.msk [vmem:[%s7415_s11 + $0x2] sm:$0x3] %vm7297_vm13, %v1346_v19  ;;  %v2533_v33 = vrot.slane %v2526_v25, %v5674_v31  ;;  %v3711_v9 = vpop.permute.xlu0 %3710 }
0x1750   :  { %v3717_v15 = vsel %vm726_vm12, %v3716_v38, %v3711_v9 }
0x1751   :  { %v2540_v55 = vrot.slane %v2533_v33, %v5674_v31  ;;  %v3720_v35 = vcombine.low %v3715_v21, %v3717_v15 }
0x1753   :  { %5019 = vst.msk [vmem:[%s7415_s11 + $0x6] sm:$0x3] %vm7297_vm13, %v2540_v55  ;;  %v3727_v63 = vrot.slane %v3720_v35, %v5674_v31 }
0x1755   :  { %v3734_v8 = vrot.slane %v3727_v63, %v5674_v31 }
0x1757   :  { %5045 = vst.msk [vmem:[%s7415_s11 + $0xa] sm:$0x3] %vm7297_vm13, %v3734_v8 }
0x17e7   :  { %v4886_v50 = vpop.f32.mrb[14].mxu0 }
0x17e8   :  { %v4887_v6 = vadd.f32 %v4886_v50, %v7229_v1  ;;  %v5215_v28 = vpop.f32.mrb[15].mxu0 }
0x17ea   :  { %v4890_v34 = vsel %vm705_vm5, %v4887_v6, 0.0 }
0x17eb   :  { %4904 = vrot.lane.b32.xlu0 %v4890_v34, %s5514_s18 }
0x185d   :  { %v4905_v18 = vpop.permute.xlu0 %4904 }
0x185e   :  { %v4911_v36 = vsel %vm726_vm12, %v4910_v48, %v4905_v18 }
0x185f   :  { %v4914_v61 = vcombine.low %v4909_v60, %v4911_v36 }
0x1861   :  { %v4921_v46 = vrot.slane %v4914_v61, %v5674_v31 }
0x1863   :  { %v4928_v42 = vrot.slane %v4921_v46, %v5674_v31 }
0x1865   :  { %5071 = vst.msk [vmem:[%s7415_s11 + $0xe] sm:$0x3] %vm7297_vm13, %v4928_v42 }

</bundles_post_ra>
